<compile_context>
chip_gen: v5e
topology: v5e:2x2
jax: 0.10.0
libtpu: 0.0.40
codegen_flags: <defaults>
</compile_context>

<pallas_src>
import functools

import numpy as np
import jax
import jax.numpy as jnp
from jax.experimental import pallas as pl
from jax.experimental.pallas import tpu as pltpu


_NEG_MASK = -1e9                       # large-negative finite mask (safer than -inf)
_GELU_C = 0.7978845608028654           # sqrt(2/pi)


# ----------------------------- small math helpers -----------------------------

def _layernorm(x, gamma, beta, eps=1e-5):
    mu = jnp.mean(x, axis=-1, keepdims=True)
    xc = x - mu
    var = jnp.mean(xc * xc, axis=-1, keepdims=True)
    return xc * jax.lax.rsqrt(var + eps) * gamma + beta


def _gelu_tanh(x):
    # tanh-approximate GELU: the transcendental goes to the EUP slot instead of
    # a ~20-op VALU erf polynomial.  |err| vs exact erf-GELU < ~1e-3.
    return 0.5 * x * (1.0 + jnp.tanh(_GELU_C * (x + 0.044715 * (x * x * x))))


# --------------------------------- fused kernel --------------------------------

def _block_kernel(x_ref, rel_ref, mask_ref, g1_ref, be1_ref,
                  wqkv_ref, bqkv_ref, wp_ref, bp_ref, g2_ref, be2_ref,
                  w1_ref, b1_ref, w2_ref, b2_ref, o_ref, attn_sc):
    """One (batch, window-tile) token slab: LN1 + WMSA + res + LN2 + MLP + res."""
    T, C = x_ref.shape[1], x_ref.shape[2]
    nH, P, _ = rel_ref.shape
    hd = C // nH
    wpt = T // P                                           # windows in this tile

    x = x_ref[0]                                           # (T, C) f32 residual stream

    # ---------------- LN1 + fused-QKV windowed multi-head attention ------------
    # (attention scale already folded into the Q columns of wqkv / bqkv)
    xn = _layernorm(x, g1_ref[...], be1_ref[...]).astype(jnp.bfloat16)
    qkv = (jnp.dot(xn, wqkv_ref[...], preferred_element_type=jnp.float32)
           + bqkv_ref[...])                                # (T, 3C) f32

    rel = rel_ref[...]                                     # (nH, P, P) f32
    mask = mask_ref[...]                                   # (wpt | 1, P, P) f32

    for h in range(nH):                                    # nH is small & static
        qh = qkv[:, h * hd:(h + 1) * hd].reshape(wpt, P, hd).astype(jnp.bfloat16)
        kh = qkv[:, C + h * hd:C + (h + 1) * hd].reshape(wpt, P, hd).astype(jnp.bfloat16)
        vh = qkv[:, 2 * C + h * hd:2 * C + (h + 1) * hd].reshape(wpt, P, hd).astype(jnp.bfloat16)

        # batched over all windows of the tile (single batch dim)
        sim = jnp.einsum('wpd,wqd->wpq', qh, kh,
                         preferred_element_type=jnp.float32)       # (wpt, P, P)
        sim = sim + rel[h] + mask                          # rel-pos bias + SW mask
        m = jnp.max(sim, axis=-1, keepdims=True)
        e = jnp.exp(sim - m)
        s = jnp.sum(e, axis=-1, keepdims=True)
        prob = (e * pl.reciprocal(s, approx=True)).astype(jnp.bfloat16)
        oh = jnp.einsum('wpq,wqd->wpd', prob, vh,
                        preferred_element_type=jnp.float32)        # (wpt, P, hd)
        # lay this head back onto its lane columns (no concat, no per-head matmul)
        attn_sc[:, h * hd:(h + 1) * hd] = oh.reshape(T, hd)

    # single C-wide output projection + MSA residual (DropPath == Identity)
    attn = attn_sc[...].astype(jnp.bfloat16)               # (T, C)
    x = x + jnp.dot(attn, wp_ref[...], preferred_element_type=jnp.float32) + bp_ref[...]

    # ---------------- LN2 + MLP (Linear -> GELU -> Linear) + residual ----------
    xn2 = _layernorm(x, g2_ref[...], be2_ref[...]).astype(jnp.bfloat16)
    h1 = jnp.dot(xn2, w1_ref[...], preferred_element_type=jnp.float32) + b1_ref[...]
    h1 = _gelu_tanh(h1).astype(jnp.bfloat16)
    y = jnp.dot(h1, w2_ref[...], preferred_element_type=jnp.float32) + b2_ref[...]
    o_ref[0] = x + y                                       # MLP residual


# ------------------------------ glue (pure JAX / numpy) --------------------------

def relative_embedding(rel_params, window_size):
    ws = window_size
    coords = np.array([[i, j] for i in range(ws) for j in range(ws)])   # (P, 2)
    relation = coords[:, None, :] - coords[None, :, :] + ws - 1         # (P, P, 2)
    # rel_params: (n_heads, 2w-1, 2w-1) -> (n_heads, P, P)
    return rel_params[:, relation[:, :, 0], relation[:, :, 1]]


def generate_mask_bias(hw, ww, p, shift):
    """Additive SW-MSA mask: 0 where allowed, large-negative where masked."""
    m = np.zeros((hw, ww, p, p, p, p), dtype=bool)
    s = p - shift
    m[-1, :, :s, :, s:, :] = True
    m[-1, :, s:, :, :s, :] = True
    m[:, -1, :, :s, :, s:] = True
    m[:, -1, :, s:, :, :s] = True
    m = m.reshape(hw * ww, p * p, p * p)
    return np.where(m, _NEG_MASK, 0.0).astype(np.float32)


def block_forward(x, p, *, window_size, shifted, windows_per_tile=None):
    B, H, W, C = x.shape
    ws = window_size
    shift = ws // 2
    hw, ww = H // ws, W // ws
    NW, P = hw * ww, ws * ws
    nH = p["rel"].shape[0]
    hd = C // nH
    assert p["w2"].shape[1] == C, "residual requires output_dim == input_dim"

    # ---- roll + window partition (pure token permutation) ----
    h = jnp.roll(x, shift=(-shift, -shift), axis=(1, 2)) if shifted else x
    h = (h.reshape(B, hw, ws, ww, ws, C)
          .transpose(0, 1, 3, 2, 4, 5)
          .reshape(B, NW * P, C))

    # ---- rel-pos bias (nH,P,P), SW mask kept separate (no NW replication) ----
    rel = relative_embedding(p["rel"], ws)                          # (nH, P, P)
    if shifted:
        mask = jnp.asarray(generate_mask_bias(hw, ww, ws, shift))   # (NW, P, P)
    else:
        mask = jnp.zeros((1, P, P), jnp.float32)

    # ---- weight plumbing (free, wrapper-side): fused lane-dense QKV weight,
    #      attention scale folded into its Q columns, matmul operands -> bf16 ----
    scale = float(hd) ** (-0.5)
    wqkv = jnp.concatenate([p["wqkv"][:, :C] * scale, p["wqkv"][:, C:]],
                           axis=1).astype(jnp.bfloat16)             # (C, 3C)
    bqkv = jnp.concatenate([p["bqkv"][:, :C] * scale, p["bqkv"][:, C:]],
                           axis=1)                                  # (1, 3C) f32
    wp = p["wproj"].astype(jnp.bfloat16)
    w1 = p["w1"].astype(jnp.bfloat16)
    w2 = p["w2"].astype(jnp.bfloat16)

    # ---- tiling: as many whole windows per grid step as fit the token cap.
    # Cap ~ a few thousand tokens (per-step overhead amortization) further
    # clamped by a crude f32-activation VMEM budget (safe on v7x's 64 MiB), and
    # keep >=2 parallel grid steps so v7x's second TensorCore has work. ----
    if windows_per_tile is None:
        bytes_per_token = 4 * 14 * C            # x, qkv, h1, scratch + 2x2 in/out bufs
        max_tokens = max(P, min(4096, (24 * 1024 * 1024) // bytes_per_token))
        windows_per_tile = 1
        for d in range(1, NW + 1):
            if NW % d != 0 or d * P > max_tokens:
                continue
            if B == 1 and NW >= 2 and NW // d < 2:
                continue                          # keep >=2 parallel steps (v7x 2 TCs)
            windows_per_tile = d
    wpt = windows_per_tile
    T_loc = wpt * P
    grid = (B, NW // wpt)

    # advisory cost estimate (helps XLA schedule around the custom call)
    T_tot = B * NW * P
    flops = int(2 * T_tot * C * (12 * C) + 4 * T_tot * P * C)
    transcendentals = int(B * NW * nH * P * P + T_tot * 4 * C)
    bytes_accessed = int(4 * 2 * T_tot * C + 4 * (nH + NW) * P * P
                         + 2 * 13 * C * C + 4 * 16 * C)

    tok_map = lambda b, t: (b, t, 0)
    c2 = lambda b, t: (0, 0)
    c3 = lambda b, t: (0, 0, 0)
    mask_spec = (pl.BlockSpec((wpt, P, P), lambda b, t: (t, 0, 0)) if shifted
                 else pl.BlockSpec((1, P, P), c3))

    out = pl.pallas_call(
        _block_kernel,
        out_shape=jax.ShapeDtypeStruct((B, NW * P, C), jnp.float32),
        grid=grid,
        in_specs=[
            pl.BlockSpec((1, T_loc, C), tok_map),                     # token slab
            pl.BlockSpec((nH, P, P), c3),                             # rel-pos bias
            mask_spec,                                                # SW mask (or zeros)
            pl.BlockSpec((1, C), c2), pl.BlockSpec((1, C), c2),       # ln1 gamma/beta
            pl.BlockSpec((C, 3 * C), c2), pl.BlockSpec((1, 3 * C), c2),   # fused qkv w/b
            pl.BlockSpec((C, C), c2), pl.BlockSpec((1, C), c2),       # out proj w / b
            pl.BlockSpec((1, C), c2), pl.BlockSpec((1, C), c2),       # ln2 gamma/beta
            pl.BlockSpec((C, 4 * C), c2), pl.BlockSpec((1, 4 * C), c2),   # mlp fc1
            pl.BlockSpec((4 * C, C), c2), pl.BlockSpec((1, C), c2),       # mlp fc2
        ],
        out_specs=pl.BlockSpec((1, T_loc, C), tok_map),
        scratch_shapes=[pltpu.VMEM((T_loc, C), jnp.float32)],         # head re-assembly
        compiler_params=pltpu.CompilerParams(
            dimension_semantics=("parallel", "parallel"),
            vmem_limit_bytes=48 * 1024 * 1024),
        cost_estimate=pl.CostEstimate(flops=flops,
                                      transcendentals=transcendentals,
                                      bytes_accessed=bytes_accessed),
    )(h, rel, mask, p["g1"], p["be1"], wqkv, bqkv,
      wp, p["bproj"], p["g2"], p["be2"], w1, p["b1"], w2, p["b2"])

    # ---- single window de-partition + un-roll at the very end ----
    y = (out.reshape(B, hw, ww, ws, ws, C)
            .transpose(0, 1, 3, 2, 4, 5)
            .reshape(B, H, W, C))
    if shifted:
        y = jnp.roll(y, shift=(shift, shift), axis=(1, 2))
    return y


# ------------------------------ parameters --------------------------------------

def init_params(key, input_dim, output_dim, head_dim, window_size):
    C = input_dim
    nH = C // head_dim
    ks = jax.random.split(key, 12)

    def n(k, shape, s):
        return (s * jax.random.normal(k, shape)).astype(jnp.float32)

    std = 0.1
    return {
        "g1":    1.0 + n(ks[0], (1, C), 0.05),
        "be1":   n(ks[1], (1, C), 0.05),
        "wqkv":  n(ks[2], (C, 3 * C), std),
        "bqkv":  n(ks[3], (1, 3 * C), 0.02),
        "rel":   n(ks[4], (nH, 2 * window_size - 1, 2 * window_size - 1), 0.02),
        "wproj": n(ks[5], (C, C), std),
        "bproj": n(ks[6], (1, C), 0.02),
        "g2":    1.0 + n(ks[7], (1, C), 0.05),
        "be2":   n(ks[8], (1, C), 0.05),
        "w1":    n(ks[9], (C, 4 * C), std),
        "b1":    n(ks[10], (1, 4 * C), 0.02),
        "w2":    n(ks[11], (4 * C, output_dim), std),
        "b2":    jnp.zeros((1, output_dim), jnp.float32),
    }


# -------------------------- pure-JAX reference (sanity) --------------------------

def block_reference(x, p, *, window_size, head_dim, shifted):
    def ln(t, g, b, eps=1e-5):
        mu = t.mean(-1, keepdims=True)
        var = ((t - mu) ** 2).mean(-1, keepdims=True)
        return (t - mu) / jnp.sqrt(var + eps) * g + b

    B, H, W, C = x.shape
    ws = window_size
    shift = ws // 2
    hw, ww = H // ws, W // ws
    nH = C // head_dim

    h = ln(x, p["g1"], p["be1"])
    if shifted:
        h = jnp.roll(h, shift=(-shift, -shift), axis=(1, 2))
    h = (h.reshape(B, hw, ws, ww, ws, C).transpose(0, 1, 3, 2, 4, 5)
          .reshape(B, hw * ww, ws * ws, C))
    qkv = h @ p["wqkv"] + p["bqkv"]
    qkv = qkv.reshape(B, hw * ww, ws * ws, 3 * nH, head_dim).transpose(3, 0, 1, 2, 4)
    q, k, v = qkv[:nH], qkv[nH:2 * nH], qkv[2 * nH:]
    sim = jnp.einsum('hbwpc,hbwqc->hbwpq', q, k) * (float(head_dim) ** -0.5)
    sim = sim + relative_embedding(p["rel"], ws)[:, None, None]
    if shifted:
        sim = sim + jnp.asarray(generate_mask_bias(hw, ww, ws, shift))[None, None]
    probs = jax.nn.softmax(sim, axis=-1)
    out = jnp.einsum('hbwij,hbwjc->hbwic', probs, v)
    out = out.transpose(1, 2, 3, 0, 4).reshape(B, hw * ww, ws * ws, C)
    out = out @ p["wproj"] + p["bproj"]
    out = (out.reshape(B, hw, ww, ws, ws, C).transpose(0, 1, 3, 2, 4, 5)
              .reshape(B, H, W, C))
    if shifted:
        out = jnp.roll(out, shift=(shift, shift), axis=(1, 2))
    x = x + out

    h2 = ln(x, p["g2"], p["be2"])
    h2 = h2 @ p["w1"] + p["b1"]
    h2 = jax.nn.gelu(h2, approximate=False)
    h2 = h2 @ p["w2"] + p["b2"]
    return x + h2


# ------------------------------------ main ---------------------------------------

if __name__ == "__main__":
    B, H, W, C = 2, 8, 8, 32
    head_dim, window_size = 8, 4
    input_resolution = H                    # 8 > window_size=4, so 'SW' type is kept
    block_type = "SW"
    shifted = (block_type == "SW") and (input_resolution > window_size)

    key = jax.random.PRNGKey(0)
    kx, kp = jax.random.split(key)
    x = jax.random.normal(kx, (B, H, W, C), dtype=jnp.float32)
    params = init_params(kp, C, C, head_dim, window_size)

    fwd = jax.jit(functools.partial(block_forward,
                                    window_size=window_size, shifted=shifted))
    out = fwd(x, params)
    jax.block_until_ready(out)

    ref = block_reference(x, params, window_size=window_size,
                          head_dim=head_dim, shifted=shifted)
    # Tolerance covers bf16 matmuls + tanh-GELU + approx reciprocal (~5e-3 observed).
    np.testing.assert_allclose(np.asarray(out), np.asarray(ref), rtol=3e-2, atol=3e-2)

    print("KERNEL_OK")
</pallas_src>

<mosaic_0001>
module attributes {stable_mosaic.version = 11 : i64} {
  func.func @_block_kernel(%arg0: i32, %arg1: i32, %arg2: memref<1x64x32xf32, #tpu.memory_space<vmem>>, %arg3: memref<4x16x16xf32, #tpu.memory_space<vmem>>, %arg4: memref<4x16x16xf32, #tpu.memory_space<vmem>>, %arg5: memref<1x32xf32, #tpu.memory_space<vmem>>, %arg6: memref<1x32xf32, #tpu.memory_space<vmem>>, %arg7: memref<32x96xbf16, #tpu.memory_space<vmem>>, %arg8: memref<1x96xf32, #tpu.memory_space<vmem>>, %arg9: memref<32x32xbf16, #tpu.memory_space<vmem>>, %arg10: memref<1x32xf32, #tpu.memory_space<vmem>>, %arg11: memref<1x32xf32, #tpu.memory_space<vmem>>, %arg12: memref<1x32xf32, #tpu.memory_space<vmem>>, %arg13: memref<32x128xbf16, #tpu.memory_space<vmem>>, %arg14: memref<1x128xf32, #tpu.memory_space<vmem>>, %arg15: memref<128x32xbf16, #tpu.memory_space<vmem>>, %arg16: memref<1x32xf32, #tpu.memory_space<vmem>>, %arg17: memref<1x64x32xf32, #tpu.memory_space<vmem>>, %arg18: memref<64x32xf32, #tpu.memory_space<vmem>>) attributes {dimension_semantics = [#tpu.dimension_semantics<parallel>, #tpu.dimension_semantics<parallel>], iteration_bounds = array<i64: 2, 1>, scalar_prefetch = 0 : i64, scratch_operands = 1 : i64, tpu.core_type = #tpu.core_type<tc>, window_params = [{transform_indices = @transform_0, window_bounds = array<i64: 1, 64, 32>}, {pipeline_mode = #tpu.pipeline_mode<synchronous>, transform_indices = @transform_1, window_bounds = array<i64: 4, 16, 16>}, {transform_indices = @transform_2, window_bounds = array<i64: 4, 16, 16>}, {pipeline_mode = #tpu.pipeline_mode<synchronous>, transform_indices = @transform_3, window_bounds = array<i64: 1, 32>}, {pipeline_mode = #tpu.pipeline_mode<synchronous>, transform_indices = @transform_4, window_bounds = array<i64: 1, 32>}, {pipeline_mode = #tpu.pipeline_mode<synchronous>, transform_indices = @transform_5, window_bounds = array<i64: 32, 96>}, {pipeline_mode = #tpu.pipeline_mode<synchronous>, transform_indices = @transform_6, window_bounds = array<i64: 1, 96>}, {pipeline_mode = #tpu.pipeline_mode<synchronous>, transform_indices = @transform_7, window_bounds = array<i64: 32, 32>}, {pipeline_mode = #tpu.pipeline_mode<synchronous>, transform_indices = @transform_8, window_bounds = array<i64: 1, 32>}, {pipeline_mode = #tpu.pipeline_mode<synchronous>, transform_indices = @transform_9, window_bounds = array<i64: 1, 32>}, {pipeline_mode = #tpu.pipeline_mode<synchronous>, transform_indices = @transform_10, window_bounds = array<i64: 1, 32>}, {pipeline_mode = #tpu.pipeline_mode<synchronous>, transform_indices = @transform_11, window_bounds = array<i64: 32, 128>}, {pipeline_mode = #tpu.pipeline_mode<synchronous>, transform_indices = @transform_12, window_bounds = array<i64: 1, 128>}, {pipeline_mode = #tpu.pipeline_mode<synchronous>, transform_indices = @transform_13, window_bounds = array<i64: 128, 32>}, {pipeline_mode = #tpu.pipeline_mode<synchronous>, transform_indices = @transform_14, window_bounds = array<i64: 1, 32>}, {transform_indices = @transform_15, window_bounds = array<i64: 1, 64, 32>}]} {
    %c0 = arith.constant 0 : index
    %c0_0 = arith.constant 0 : index
    %c0_1 = arith.constant 0 : index
    %0 = vector.load %arg2[%c0, %c0_0, %c0_1] : memref<1x64x32xf32, #tpu.memory_space<vmem>>, vector<1x64x32xf32>
    %1 = vector.shape_cast %0 : vector<1x64x32xf32> to vector<64x32xf32>
    %c0_2 = arith.constant 0 : index
    %c0_3 = arith.constant 0 : index
    %2 = vector.load %arg5[%c0_2, %c0_3] : memref<1x32xf32, #tpu.memory_space<vmem>>, vector<1x32xf32>
    %c0_4 = arith.constant 0 : index
    %c0_5 = arith.constant 0 : index
    %3 = vector.load %arg6[%c0_4, %c0_5] : memref<1x32xf32, #tpu.memory_space<vmem>>, vector<1x32xf32>
    %cst = arith.constant dense<0.000000e+00> : vector<64xf32>
    %4 = vector.multi_reduction <add>, %1, %cst [1] : vector<64x32xf32> to vector<64xf32>
    %5 = vector.shape_cast %4 : vector<64xf32> to vector<64x1xf32>
    %cst_6 = arith.constant 3.200000e+01 : f32
    %6 = vector.broadcast %cst_6 : f32 to vector<64x1xf32>
    %7 = arith.divf %5, %6 : vector<64x1xf32>
    %8 = vector.broadcast %7 : vector<64x1xf32> to vector<64x32xf32>
    %9 = arith.subf %1, %8 : vector<64x32xf32>
    %10 = arith.mulf %9, %9 : vector<64x32xf32>
    %cst_7 = arith.constant dense<0.000000e+00> : vector<64xf32>
    %11 = vector.multi_reduction <add>, %10, %cst_7 [1] : vector<64x32xf32> to vector<64xf32>
    %12 = vector.shape_cast %11 : vector<64xf32> to vector<64x1xf32>
    %cst_8 = arith.constant 3.200000e+01 : f32
    %13 = vector.broadcast %cst_8 : f32 to vector<64x1xf32>
    %14 = arith.divf %12, %13 : vector<64x1xf32>
    %cst_9 = arith.constant 9.99999974E-6 : f32
    %15 = vector.broadcast %cst_9 : f32 to vector<64x1xf32>
    %16 = arith.addf %14, %15 : vector<64x1xf32>
    %17 = math.rsqrt %16 : vector<64x1xf32>
    %18 = vector.broadcast %17 : vector<64x1xf32> to vector<64x32xf32>
    %19 = arith.mulf %9, %18 : vector<64x32xf32>
    %20 = vector.broadcast %2 : vector<1x32xf32> to vector<64x32xf32>
    %21 = arith.mulf %19, %20 : vector<64x32xf32>
    %22 = vector.broadcast %3 : vector<1x32xf32> to vector<64x32xf32>
    %23 = arith.addf %21, %22 : vector<64x32xf32>
    %24 = arith.truncf %23 : vector<64x32xf32> to vector<64x32xbf16>
    %c0_10 = arith.constant 0 : index
    %c0_11 = arith.constant 0 : index
    %25 = vector.load %arg7[%c0_10, %c0_11] : memref<32x96xbf16, #tpu.memory_space<vmem>>, vector<32x96xbf16>
    %cst_12 = arith.constant dense<0.000000e+00> : vector<64x96xf32>
    %26 = tpu.matmul %24, %25, %cst_12 {dimension_numbers = #tpu.dot_dimension_numbers<[1], [0], [0], [1], [0, 0, 1, 1], [], []>} : vector<64x32xbf16>, vector<32x96xbf16>, vector<64x96xf32> -> vector<64x96xf32>
    %c0_13 = arith.constant 0 : index
    %c0_14 = arith.constant 0 : index
    %27 = vector.load %arg8[%c0_13, %c0_14] : memref<1x96xf32, #tpu.memory_space<vmem>>, vector<1x96xf32>
    %28 = vector.broadcast %27 : vector<1x96xf32> to vector<64x96xf32>
    %29 = arith.addf %26, %28 : vector<64x96xf32>
    %c0_15 = arith.constant 0 : index
    %c0_16 = arith.constant 0 : index
    %c0_17 = arith.constant 0 : index
    %30 = vector.load %arg3[%c0_15, %c0_16, %c0_17] : memref<4x16x16xf32, #tpu.memory_space<vmem>>, vector<4x16x16xf32>
    %c0_18 = arith.constant 0 : index
    %c0_19 = arith.constant 0 : index
    %c0_20 = arith.constant 0 : index
    %31 = vector.load %arg4[%c0_18, %c0_19, %c0_20] : memref<4x16x16xf32, #tpu.memory_space<vmem>>, vector<4x16x16xf32>
    %32 = vector.extract_strided_slice %29 {offsets = [0, 0], sizes = [64, 8], strides = [1, 1]} : vector<64x96xf32> to vector<64x8xf32>
    %33 = vector.shape_cast %32 : vector<64x8xf32> to vector<4x16x8xf32>
    %34 = arith.truncf %33 : vector<4x16x8xf32> to vector<4x16x8xbf16>
    %35 = vector.extract_strided_slice %29 {offsets = [0, 32], sizes = [64, 8], strides = [1, 1]} : vector<64x96xf32> to vector<64x8xf32>
    %36 = vector.shape_cast %35 : vector<64x8xf32> to vector<4x16x8xf32>
    %37 = arith.truncf %36 : vector<4x16x8xf32> to vector<4x16x8xbf16>
    %38 = vector.extract_strided_slice %29 {offsets = [0, 64], sizes = [64, 8], strides = [1, 1]} : vector<64x96xf32> to vector<64x8xf32>
    %39 = vector.shape_cast %38 : vector<64x8xf32> to vector<4x16x8xf32>
    %40 = arith.truncf %39 : vector<4x16x8xf32> to vector<4x16x8xbf16>
    "tpu.trace_start"() <{level = 10 : i32, message = "wpd,wqd->wpq"}> : () -> ()
    %cst_21 = arith.constant dense<0.000000e+00> : vector<4x16x16xf32>
    %41 = tpu.matmul %34, %37, %cst_21 {dimension_numbers = #tpu.dot_dimension_numbers<[2], [2], [1], [1], [0, 0, 0, 1, 1, 1], [0], [0]>} : vector<4x16x8xbf16>, vector<4x16x8xbf16>, vector<4x16x16xf32> -> vector<4x16x16xf32>
    "tpu.trace_stop"() : () -> ()
    %42 = vector.extract_strided_slice %30 {offsets = [0, 0, 0], sizes = [1, 16, 16], strides = [1, 1, 1]} : vector<4x16x16xf32> to vector<1x16x16xf32>
    %43 = vector.shape_cast %42 : vector<1x16x16xf32> to vector<16x16xf32>
    %44 = vector.shape_cast %43 : vector<16x16xf32> to vector<1x16x16xf32>
    %45 = vector.broadcast %44 : vector<1x16x16xf32> to vector<4x16x16xf32>
    %46 = arith.addf %41, %45 : vector<4x16x16xf32>
    %47 = arith.addf %46, %31 : vector<4x16x16xf32>
    %cst_22 = arith.constant dense<0xFF800000> : vector<4x16xf32>
    %48 = vector.multi_reduction <maximumf>, %47, %cst_22 [2] : vector<4x16x16xf32> to vector<4x16xf32>
    %49 = vector.shape_cast %48 : vector<4x16xf32> to vector<4x16x1xf32>
    %50 = vector.broadcast %49 : vector<4x16x1xf32> to vector<4x16x16xf32>
    %51 = arith.subf %47, %50 : vector<4x16x16xf32>
    %52 = math.exp %51 : vector<4x16x16xf32>
    %cst_23 = arith.constant dense<0.000000e+00> : vector<4x16xf32>
    %53 = vector.multi_reduction <add>, %52, %cst_23 [2] : vector<4x16x16xf32> to vector<4x16xf32>
    %54 = vector.shape_cast %53 : vector<4x16xf32> to vector<4x16x1xf32>
    %55 = tpu.reciprocal %54 {approx = true} : vector<4x16x1xf32> -> vector<4x16x1xf32>
    %56 = vector.broadcast %55 : vector<4x16x1xf32> to vector<4x16x16xf32>
    %57 = arith.mulf %52, %56 : vector<4x16x16xf32>
    %58 = arith.truncf %57 : vector<4x16x16xf32> to vector<4x16x16xbf16>
    "tpu.trace_start"() <{level = 10 : i32, message = "wpq,wqd->wpd"}> : () -> ()
    %cst_24 = arith.constant dense<0.000000e+00> : vector<4x16x8xf32>
    %59 = tpu.matmul %58, %40, %cst_24 {dimension_numbers = #tpu.dot_dimension_numbers<[2], [1], [1], [2], [0, 0, 0, 1, 1, 2], [0], [0]>} : vector<4x16x16xbf16>, vector<4x16x8xbf16>, vector<4x16x8xf32> -> vector<4x16x8xf32>
    "tpu.trace_stop"() : () -> ()
    %60 = vector.shape_cast %59 : vector<4x16x8xf32> to vector<64x8xf32>
    %c0_25 = arith.constant 0 : index
    %c0_26 = arith.constant 0 : index
    %61 = vector.load %arg18[%c0_25, %c0_26] : memref<64x32xf32, #tpu.memory_space<vmem>>, vector<64x8xf32>
    tpu.vector_store %arg18[%c0_25, %c0_26], %60 {strides = array<i32>} : memref<64x32xf32, #tpu.memory_space<vmem>>, vector<64x8xf32>,
    %62 = vector.extract_strided_slice %29 {offsets = [0, 8], sizes = [64, 8], strides = [1, 1]} : vector<64x96xf32> to vector<64x8xf32>
    %63 = vector.shape_cast %62 : vector<64x8xf32> to vector<4x16x8xf32>
    %64 = arith.truncf %63 : vector<4x16x8xf32> to vector<4x16x8xbf16>
    %65 = vector.extract_strided_slice %29 {offsets = [0, 40], sizes = [64, 8], strides = [1, 1]} : vector<64x96xf32> to vector<64x8xf32>
    %66 = vector.shape_cast %65 : vector<64x8xf32> to vector<4x16x8xf32>
    %67 = arith.truncf %66 : vector<4x16x8xf32> to vector<4x16x8xbf16>
    %68 = vector.extract_strided_slice %29 {offsets = [0, 72], sizes = [64, 8], strides = [1, 1]} : vector<64x96xf32> to vector<64x8xf32>
    %69 = vector.shape_cast %68 : vector<64x8xf32> to vector<4x16x8xf32>
    %70 = arith.truncf %69 : vector<4x16x8xf32> to vector<4x16x8xbf16>
    "tpu.trace_start"() <{level = 10 : i32, message = "wpd,wqd->wpq"}> : () -> ()
    %cst_27 = arith.constant dense<0.000000e+00> : vector<4x16x16xf32>
    %71 = tpu.matmul %64, %67, %cst_27 {dimension_numbers = #tpu.dot_dimension_numbers<[2], [2], [1], [1], [0, 0, 0, 1, 1, 1], [0], [0]>} : vector<4x16x8xbf16>, vector<4x16x8xbf16>, vector<4x16x16xf32> -> vector<4x16x16xf32>
    "tpu.trace_stop"() : () -> ()
    %72 = vector.extract_strided_slice %30 {offsets = [1, 0, 0], sizes = [1, 16, 16], strides = [1, 1, 1]} : vector<4x16x16xf32> to vector<1x16x16xf32>
    %73 = vector.shape_cast %72 : vector<1x16x16xf32> to vector<16x16xf32>
    %74 = vector.shape_cast %73 : vector<16x16xf32> to vector<1x16x16xf32>
    %75 = vector.broadcast %74 : vector<1x16x16xf32> to vector<4x16x16xf32>
    %76 = arith.addf %71, %75 : vector<4x16x16xf32>
    %77 = arith.addf %76, %31 : vector<4x16x16xf32>
    %cst_28 = arith.constant dense<0xFF800000> : vector<4x16xf32>
    %78 = vector.multi_reduction <maximumf>, %77, %cst_28 [2] : vector<4x16x16xf32> to vector<4x16xf32>
    %79 = vector.shape_cast %78 : vector<4x16xf32> to vector<4x16x1xf32>
    %80 = vector.broadcast %79 : vector<4x16x1xf32> to vector<4x16x16xf32>
    %81 = arith.subf %77, %80 : vector<4x16x16xf32>
    %82 = math.exp %81 : vector<4x16x16xf32>
    %cst_29 = arith.constant dense<0.000000e+00> : vector<4x16xf32>
    %83 = vector.multi_reduction <add>, %82, %cst_29 [2] : vector<4x16x16xf32> to vector<4x16xf32>
    %84 = vector.shape_cast %83 : vector<4x16xf32> to vector<4x16x1xf32>
    %85 = tpu.reciprocal %84 {approx = true} : vector<4x16x1xf32> -> vector<4x16x1xf32>
    %86 = vector.broadcast %85 : vector<4x16x1xf32> to vector<4x16x16xf32>
    %87 = arith.mulf %82, %86 : vector<4x16x16xf32>
    %88 = arith.truncf %87 : vector<4x16x16xf32> to vector<4x16x16xbf16>
    "tpu.trace_start"() <{level = 10 : i32, message = "wpq,wqd->wpd"}> : () -> ()
    %cst_30 = arith.constant dense<0.000000e+00> : vector<4x16x8xf32>
    %89 = tpu.matmul %88, %70, %cst_30 {dimension_numbers = #tpu.dot_dimension_numbers<[2], [1], [1], [2], [0, 0, 0, 1, 1, 2], [0], [0]>} : vector<4x16x16xbf16>, vector<4x16x8xbf16>, vector<4x16x8xf32> -> vector<4x16x8xf32>
    "tpu.trace_stop"() : () -> ()
    %90 = vector.shape_cast %89 : vector<4x16x8xf32> to vector<64x8xf32>
    %c0_31 = arith.constant 0 : index
    %c8 = arith.constant 8 : index
    %91 = vector.load %arg18[%c0_31, %c8] : memref<64x32xf32, #tpu.memory_space<vmem>>, vector<64x8xf32>
    tpu.vector_store %arg18[%c0_31, %c8], %90 {strides = array<i32>} : memref<64x32xf32, #tpu.memory_space<vmem>>, vector<64x8xf32>,
    %92 = vector.extract_strided_slice %29 {offsets = [0, 16], sizes = [64, 8], strides = [1, 1]} : vector<64x96xf32> to vector<64x8xf32>
    %93 = vector.shape_cast %92 : vector<64x8xf32> to vector<4x16x8xf32>
    %94 = arith.truncf %93 : vector<4x16x8xf32> to vector<4x16x8xbf16>
    %95 = vector.extract_strided_slice %29 {offsets = [0, 48], sizes = [64, 8], strides = [1, 1]} : vector<64x96xf32> to vector<64x8xf32>
    %96 = vector.shape_cast %95 : vector<64x8xf32> to vector<4x16x8xf32>
    %97 = arith.truncf %96 : vector<4x16x8xf32> to vector<4x16x8xbf16>
    %98 = vector.extract_strided_slice %29 {offsets = [0, 80], sizes = [64, 8], strides = [1, 1]} : vector<64x96xf32> to vector<64x8xf32>
    %99 = vector.shape_cast %98 : vector<64x8xf32> to vector<4x16x8xf32>
    %100 = arith.truncf %99 : vector<4x16x8xf32> to vector<4x16x8xbf16>
    "tpu.trace_start"() <{level = 10 : i32, message = "wpd,wqd->wpq"}> : () -> ()
    %cst_32 = arith.constant dense<0.000000e+00> : vector<4x16x16xf32>
    %101 = tpu.matmul %94, %97, %cst_32 {dimension_numbers = #tpu.dot_dimension_numbers<[2], [2], [1], [1], [0, 0, 0, 1, 1, 1], [0], [0]>} : vector<4x16x8xbf16>, vector<4x16x8xbf16>, vector<4x16x16xf32> -> vector<4x16x16xf32>
    "tpu.trace_stop"() : () -> ()
    %102 = vector.extract_strided_slice %30 {offsets = [2, 0, 0], sizes = [1, 16, 16], strides = [1, 1, 1]} : vector<4x16x16xf32> to vector<1x16x16xf32>
    %103 = vector.shape_cast %102 : vector<1x16x16xf32> to vector<16x16xf32>
    %104 = vector.shape_cast %103 : vector<16x16xf32> to vector<1x16x16xf32>
    %105 = vector.broadcast %104 : vector<1x16x16xf32> to vector<4x16x16xf32>
    %106 = arith.addf %101, %105 : vector<4x16x16xf32>
    %107 = arith.addf %106, %31 : vector<4x16x16xf32>
    %cst_33 = arith.constant dense<0xFF800000> : vector<4x16xf32>
    %108 = vector.multi_reduction <maximumf>, %107, %cst_33 [2] : vector<4x16x16xf32> to vector<4x16xf32>
    %109 = vector.shape_cast %108 : vector<4x16xf32> to vector<4x16x1xf32>
    %110 = vector.broadcast %109 : vector<4x16x1xf32> to vector<4x16x16xf32>
    %111 = arith.subf %107, %110 : vector<4x16x16xf32>
    %112 = math.exp %111 : vector<4x16x16xf32>
    %cst_34 = arith.constant dense<0.000000e+00> : vector<4x16xf32>
    %113 = vector.multi_reduction <add>, %112, %cst_34 [2] : vector<4x16x16xf32> to vector<4x16xf32>
    %114 = vector.shape_cast %113 : vector<4x16xf32> to vector<4x16x1xf32>
    %115 = tpu.reciprocal %114 {approx = true} : vector<4x16x1xf32> -> vector<4x16x1xf32>
    %116 = vector.broadcast %115 : vector<4x16x1xf32> to vector<4x16x16xf32>
    %117 = arith.mulf %112, %116 : vector<4x16x16xf32>
    %118 = arith.truncf %117 : vector<4x16x16xf32> to vector<4x16x16xbf16>
    "tpu.trace_start"() <{level = 10 : i32, message = "wpq,wqd->wpd"}> : () -> ()
    %cst_35 = arith.constant dense<0.000000e+00> : vector<4x16x8xf32>
    %119 = tpu.matmul %118, %100, %cst_35 {dimension_numbers = #tpu.dot_dimension_numbers<[2], [1], [1], [2], [0, 0, 0, 1, 1, 2], [0], [0]>} : vector<4x16x16xbf16>, vector<4x16x8xbf16>, vector<4x16x8xf32> -> vector<4x16x8xf32>
    "tpu.trace_stop"() : () -> ()
    %120 = vector.shape_cast %119 : vector<4x16x8xf32> to vector<64x8xf32>
    %c0_36 = arith.constant 0 : index
    %c16 = arith.constant 16 : index
    %121 = vector.load %arg18[%c0_36, %c16] : memref<64x32xf32, #tpu.memory_space<vmem>>, vector<64x8xf32>
    tpu.vector_store %arg18[%c0_36, %c16], %120 {strides = array<i32>} : memref<64x32xf32, #tpu.memory_space<vmem>>, vector<64x8xf32>,
    %122 = vector.extract_strided_slice %29 {offsets = [0, 24], sizes = [64, 8], strides = [1, 1]} : vector<64x96xf32> to vector<64x8xf32>
    %123 = vector.shape_cast %122 : vector<64x8xf32> to vector<4x16x8xf32>
    %124 = arith.truncf %123 : vector<4x16x8xf32> to vector<4x16x8xbf16>
    %125 = vector.extract_strided_slice %29 {offsets = [0, 56], sizes = [64, 8], strides = [1, 1]} : vector<64x96xf32> to vector<64x8xf32>
    %126 = vector.shape_cast %125 : vector<64x8xf32> to vector<4x16x8xf32>
    %127 = arith.truncf %126 : vector<4x16x8xf32> to vector<4x16x8xbf16>
    %128 = vector.extract_strided_slice %29 {offsets = [0, 88], sizes = [64, 8], strides = [1, 1]} : vector<64x96xf32> to vector<64x8xf32>
    %129 = vector.shape_cast %128 : vector<64x8xf32> to vector<4x16x8xf32>
    %130 = arith.truncf %129 : vector<4x16x8xf32> to vector<4x16x8xbf16>
    "tpu.trace_start"() <{level = 10 : i32, message = "wpd,wqd->wpq"}> : () -> ()
    %cst_37 = arith.constant dense<0.000000e+00> : vector<4x16x16xf32>
    %131 = tpu.matmul %124, %127, %cst_37 {dimension_numbers = #tpu.dot_dimension_numbers<[2], [2], [1], [1], [0, 0, 0, 1, 1, 1], [0], [0]>} : vector<4x16x8xbf16>, vector<4x16x8xbf16>, vector<4x16x16xf32> -> vector<4x16x16xf32>
    "tpu.trace_stop"() : () -> ()
    %132 = vector.extract_strided_slice %30 {offsets = [3, 0, 0], sizes = [1, 16, 16], strides = [1, 1, 1]} : vector<4x16x16xf32> to vector<1x16x16xf32>
    %133 = vector.shape_cast %132 : vector<1x16x16xf32> to vector<16x16xf32>
    %134 = vector.shape_cast %133 : vector<16x16xf32> to vector<1x16x16xf32>
    %135 = vector.broadcast %134 : vector<1x16x16xf32> to vector<4x16x16xf32>
    %136 = arith.addf %131, %135 : vector<4x16x16xf32>
    %137 = arith.addf %136, %31 : vector<4x16x16xf32>
    %cst_38 = arith.constant dense<0xFF800000> : vector<4x16xf32>
    %138 = vector.multi_reduction <maximumf>, %137, %cst_38 [2] : vector<4x16x16xf32> to vector<4x16xf32>
    %139 = vector.shape_cast %138 : vector<4x16xf32> to vector<4x16x1xf32>
    %140 = vector.broadcast %139 : vector<4x16x1xf32> to vector<4x16x16xf32>
    %141 = arith.subf %137, %140 : vector<4x16x16xf32>
    %142 = math.exp %141 : vector<4x16x16xf32>
    %cst_39 = arith.constant dense<0.000000e+00> : vector<4x16xf32>
    %143 = vector.multi_reduction <add>, %142, %cst_39 [2] : vector<4x16x16xf32> to vector<4x16xf32>
    %144 = vector.shape_cast %143 : vector<4x16xf32> to vector<4x16x1xf32>
    %145 = tpu.reciprocal %144 {approx = true} : vector<4x16x1xf32> -> vector<4x16x1xf32>
    %146 = vector.broadcast %145 : vector<4x16x1xf32> to vector<4x16x16xf32>
    %147 = arith.mulf %142, %146 : vector<4x16x16xf32>
    %148 = arith.truncf %147 : vector<4x16x16xf32> to vector<4x16x16xbf16>
    "tpu.trace_start"() <{level = 10 : i32, message = "wpq,wqd->wpd"}> : () -> ()
    %cst_40 = arith.constant dense<0.000000e+00> : vector<4x16x8xf32>
    %149 = tpu.matmul %148, %130, %cst_40 {dimension_numbers = #tpu.dot_dimension_numbers<[2], [1], [1], [2], [0, 0, 0, 1, 1, 2], [0], [0]>} : vector<4x16x16xbf16>, vector<4x16x8xbf16>, vector<4x16x8xf32> -> vector<4x16x8xf32>
    "tpu.trace_stop"() : () -> ()
    %150 = vector.shape_cast %149 : vector<4x16x8xf32> to vector<64x8xf32>
    %c0_41 = arith.constant 0 : index
    %c24 = arith.constant 24 : index
    %151 = vector.load %arg18[%c0_41, %c24] : memref<64x32xf32, #tpu.memory_space<vmem>>, vector<64x8xf32>
    tpu.vector_store %arg18[%c0_41, %c24], %150 {strides = array<i32>} : memref<64x32xf32, #tpu.memory_space<vmem>>, vector<64x8xf32>,
    %c0_42 = arith.constant 0 : index
    %c0_43 = arith.constant 0 : index
    %152 = vector.load %arg18[%c0_42, %c0_43] : memref<64x32xf32, #tpu.memory_space<vmem>>, vector<64x32xf32>
    %153 = arith.truncf %152 : vector<64x32xf32> to vector<64x32xbf16>
    %c0_44 = arith.constant 0 : index
    %c0_45 = arith.constant 0 : index
    %154 = vector.load %arg9[%c0_44, %c0_45] : memref<32x32xbf16, #tpu.memory_space<vmem>>, vector<32x32xbf16>
    %cst_46 = arith.constant dense<0.000000e+00> : vector<64x32xf32>
    %155 = tpu.matmul %153, %154, %cst_46 {dimension_numbers = #tpu.dot_dimension_numbers<[1], [0], [0], [1], [0, 0, 1, 1], [], []>} : vector<64x32xbf16>, vector<32x32xbf16>, vector<64x32xf32> -> vector<64x32xf32>
    %156 = arith.addf %1, %155 : vector<64x32xf32>
    %c0_47 = arith.constant 0 : index
    %c0_48 = arith.constant 0 : index
    %157 = vector.load %arg10[%c0_47, %c0_48] : memref<1x32xf32, #tpu.memory_space<vmem>>, vector<1x32xf32>
    %158 = vector.broadcast %157 : vector<1x32xf32> to vector<64x32xf32>
    %159 = arith.addf %156, %158 : vector<64x32xf32>
    %c0_49 = arith.constant 0 : index
    %c0_50 = arith.constant 0 : index
    %160 = vector.load %arg11[%c0_49, %c0_50] : memref<1x32xf32, #tpu.memory_space<vmem>>, vector<1x32xf32>
    %c0_51 = arith.constant 0 : index
    %c0_52 = arith.constant 0 : index
    %161 = vector.load %arg12[%c0_51, %c0_52] : memref<1x32xf32, #tpu.memory_space<vmem>>, vector<1x32xf32>
    %cst_53 = arith.constant dense<0.000000e+00> : vector<64xf32>
    %162 = vector.multi_reduction <add>, %159, %cst_53 [1] : vector<64x32xf32> to vector<64xf32>
    %163 = vector.shape_cast %162 : vector<64xf32> to vector<64x1xf32>
    %cst_54 = arith.constant 3.200000e+01 : f32
    %164 = vector.broadcast %cst_54 : f32 to vector<64x1xf32>
    %165 = arith.divf %163, %164 : vector<64x1xf32>
    %166 = vector.broadcast %165 : vector<64x1xf32> to vector<64x32xf32>
    %167 = arith.subf %159, %166 : vector<64x32xf32>
    %168 = arith.mulf %167, %167 : vector<64x32xf32>
    %cst_55 = arith.constant dense<0.000000e+00> : vector<64xf32>
    %169 = vector.multi_reduction <add>, %168, %cst_55 [1] : vector<64x32xf32> to vector<64xf32>
    %170 = vector.shape_cast %169 : vector<64xf32> to vector<64x1xf32>
    %cst_56 = arith.constant 3.200000e+01 : f32
    %171 = vector.broadcast %cst_56 : f32 to vector<64x1xf32>
    %172 = arith.divf %170, %171 : vector<64x1xf32>
    %cst_57 = arith.constant 9.99999974E-6 : f32
    %173 = vector.broadcast %cst_57 : f32 to vector<64x1xf32>
    %174 = arith.addf %172, %173 : vector<64x1xf32>
    %175 = math.rsqrt %174 : vector<64x1xf32>
    %176 = vector.broadcast %175 : vector<64x1xf32> to vector<64x32xf32>
    %177 = arith.mulf %167, %176 : vector<64x32xf32>
    %178 = vector.broadcast %160 : vector<1x32xf32> to vector<64x32xf32>
    %179 = arith.mulf %177, %178 : vector<64x32xf32>
    %180 = vector.broadcast %161 : vector<1x32xf32> to vector<64x32xf32>
    %181 = arith.addf %179, %180 : vector<64x32xf32>
    %182 = arith.truncf %181 : vector<64x32xf32> to vector<64x32xbf16>
    %c0_58 = arith.constant 0 : index
    %c0_59 = arith.constant 0 : index
    %183 = vector.load %arg13[%c0_58, %c0_59] : memref<32x128xbf16, #tpu.memory_space<vmem>>, vector<32x128xbf16>
    %cst_60 = arith.constant dense<0.000000e+00> : vector<64x128xf32>
    %184 = tpu.matmul %182, %183, %cst_60 {dimension_numbers = #tpu.dot_dimension_numbers<[1], [0], [0], [1], [0, 0, 1, 1], [], []>} : vector<64x32xbf16>, vector<32x128xbf16>, vector<64x128xf32> -> vector<64x128xf32>
    %c0_61 = arith.constant 0 : index
    %c0_62 = arith.constant 0 : index
    %185 = vector.load %arg14[%c0_61, %c0_62] : memref<1x128xf32, #tpu.memory_space<vmem>>, vector<1x128xf32>
    %186 = vector.broadcast %185 : vector<1x128xf32> to vector<64x128xf32>
    %187 = arith.addf %184, %186 : vector<64x128xf32>
    %cst_63 = arith.constant 5.000000e-01 : f32
    %188 = vector.broadcast %cst_63 : f32 to vector<64x128xf32>
    %189 = arith.mulf %188, %187 : vector<64x128xf32>
    %190 = arith.mulf %187, %187 : vector<64x128xf32>
    %191 = arith.mulf %190, %187 : vector<64x128xf32>
    %cst_64 = arith.constant 4.471500e-02 : f32
    %192 = vector.broadcast %cst_64 : f32 to vector<64x128xf32>
    %193 = arith.mulf %192, %191 : vector<64x128xf32>
    %194 = arith.addf %187, %193 : vector<64x128xf32>
    %cst_65 = arith.constant 0.797884583 : f32
    %195 = vector.broadcast %cst_65 : f32 to vector<64x128xf32>
    %196 = arith.mulf %195, %194 : vector<64x128xf32>
    %197 = math.tanh %196 : vector<64x128xf32>
    %cst_66 = arith.constant 1.000000e+00 : f32
    %198 = vector.broadcast %cst_66 : f32 to vector<64x128xf32>
    %199 = arith.addf %198, %197 : vector<64x128xf32>
    %200 = arith.mulf %189, %199 : vector<64x128xf32>
    %201 = arith.truncf %200 : vector<64x128xf32> to vector<64x128xbf16>
    %c0_67 = arith.constant 0 : index
    %c0_68 = arith.constant 0 : index
    %202 = vector.load %arg15[%c0_67, %c0_68] : memref<128x32xbf16, #tpu.memory_space<vmem>>, vector<128x32xbf16>
    %cst_69 = arith.constant dense<0.000000e+00> : vector<64x32xf32>
    %203 = tpu.matmul %201, %202, %cst_69 {dimension_numbers = #tpu.dot_dimension_numbers<[1], [0], [0], [1], [0, 0, 1, 1], [], []>} : vector<64x128xbf16>, vector<128x32xbf16>, vector<64x32xf32> -> vector<64x32xf32>
    %c0_70 = arith.constant 0 : index
    %c0_71 = arith.constant 0 : index
    %204 = vector.load %arg16[%c0_70, %c0_71] : memref<1x32xf32, #tpu.memory_space<vmem>>, vector<1x32xf32>
    %205 = vector.broadcast %204 : vector<1x32xf32> to vector<64x32xf32>
    %206 = arith.addf %203, %205 : vector<64x32xf32>
    %207 = arith.addf %159, %206 : vector<64x32xf32>
    %c0_72 = arith.constant 0 : index
    %c0_73 = arith.constant 0 : index
    %c0_74 = arith.constant 0 : index
    %208 = vector.load %arg17[%c0_72, %c0_73, %c0_74] : memref<1x64x32xf32, #tpu.memory_space<vmem>>, vector<1x64x32xf32>
    %209 = vector.shape_cast %208 : vector<1x64x32xf32> to vector<64x32xf32>
    %210 = vector.shape_cast %207 : vector<64x32xf32> to vector<1x64x32xf32>
    tpu.vector_store %arg17[%c0_72, %c0_73, %c0_74], %210 {strides = array<i32>} : memref<1x64x32xf32, #tpu.memory_space<vmem>>, vector<1x64x32xf32>,
    return
  }
  func.func @transform_0(%arg0: i32, %arg1: i32) -> (i32, i32, i32) {
    %c0_i32 = arith.constant 0 : i32
    %c0_i32_0 = arith.constant 0 : i32
    return %arg0, %arg1, %c0_i32 : i32, i32, i32
  }
  func.func @transform_1(%arg0: i32, %arg1: i32) -> (i32, i32, i32) {
    %c0_i32 = arith.constant 0 : i32
    %c0_i32_0 = arith.constant 0 : i32
    %c0_i32_1 = arith.constant 0 : i32
    %c0_i32_2 = arith.constant 0 : i32
    return %c0_i32, %c0_i32_0, %c0_i32_1 : i32, i32, i32
  }
  func.func @transform_2(%arg0: i32, %arg1: i32) -> (i32, i32, i32) {
    %c0_i32 = arith.constant 0 : i32
    %c0_i32_0 = arith.constant 0 : i32
    %c0_i32_1 = arith.constant 0 : i32
    return %arg1, %c0_i32, %c0_i32_0 : i32, i32, i32
  }
  func.func @transform_3(%arg0: i32, %arg1: i32) -> (i32, i32) {
    %c0_i32 = arith.constant 0 : i32
    %c0_i32_0 = arith.constant 0 : i32
    %c0_i32_1 = arith.constant 0 : i32
    return %c0_i32, %c0_i32_0 : i32, i32
  }
  func.func @transform_4(%arg0: i32, %arg1: i32) -> (i32, i32) {
    %c0_i32 = arith.constant 0 : i32
    %c0_i32_0 = arith.constant 0 : i32
    %c0_i32_1 = arith.constant 0 : i32
    return %c0_i32, %c0_i32_0 : i32, i32
  }
  func.func @transform_5(%arg0: i32, %arg1: i32) -> (i32, i32) {
    %c0_i32 = arith.constant 0 : i32
    %c0_i32_0 = arith.constant 0 : i32
    %c0_i32_1 = arith.constant 0 : i32
    return %c0_i32, %c0_i32_0 : i32, i32
  }
  func.func @transform_6(%arg0: i32, %arg1: i32) -> (i32, i32) {
    %c0_i32 = arith.constant 0 : i32
    %c0_i32_0 = arith.constant 0 : i32
    %c0_i32_1 = arith.constant 0 : i32
    return %c0_i32, %c0_i32_0 : i32, i32
  }
  func.func @transform_7(%arg0: i32, %arg1: i32) -> (i32, i32) {
    %c0_i32 = arith.constant 0 : i32
    %c0_i32_0 = arith.constant 0 : i32
    %c0_i32_1 = arith.constant 0 : i32
    return %c0_i32, %c0_i32_0 : i32, i32
  }
  func.func @transform_8(%arg0: i32, %arg1: i32) -> (i32, i32) {
    %c0_i32 = arith.constant 0 : i32
    %c0_i32_0 = arith.constant 0 : i32
    %c0_i32_1 = arith.constant 0 : i32
    return %c0_i32, %c0_i32_0 : i32, i32
  }
  func.func @transform_9(%arg0: i32, %arg1: i32) -> (i32, i32) {
    %c0_i32 = arith.constant 0 : i32
    %c0_i32_0 = arith.constant 0 : i32
    %c0_i32_1 = arith.constant 0 : i32
    return %c0_i32, %c0_i32_0 : i32, i32
  }
  func.func @transform_10(%arg0: i32, %arg1: i32) -> (i32, i32) {
    %c0_i32 = arith.constant 0 : i32
    %c0_i32_0 = arith.constant 0 : i32
    %c0_i32_1 = arith.constant 0 : i32
    return %c0_i32, %c0_i32_0 : i32, i32
  }
  func.func @transform_11(%arg0: i32, %arg1: i32) -> (i32, i32) {
    %c0_i32 = arith.constant 0 : i32
    %c0_i32_0 = arith.constant 0 : i32
    %c0_i32_1 = arith.constant 0 : i32
    return %c0_i32, %c0_i32_0 : i32, i32
  }
  func.func @transform_12(%arg0: i32, %arg1: i32) -> (i32, i32) {
    %c0_i32 = arith.constant 0 : i32
    %c0_i32_0 = arith.constant 0 : i32
    %c0_i32_1 = arith.constant 0 : i32
    return %c0_i32, %c0_i32_0 : i32, i32
  }
  func.func @transform_13(%arg0: i32, %arg1: i32) -> (i32, i32) {
    %c0_i32 = arith.constant 0 : i32
    %c0_i32_0 = arith.constant 0 : i32
    %c0_i32_1 = arith.constant 0 : i32
    return %c0_i32, %c0_i32_0 : i32, i32
  }
  func.func @transform_14(%arg0: i32, %arg1: i32) -> (i32, i32) {
    %c0_i32 = arith.constant 0 : i32
    %c0_i32_0 = arith.constant 0 : i32
    %c0_i32_1 = arith.constant 0 : i32
    return %c0_i32, %c0_i32_0 : i32, i32
  }
  func.func @transform_15(%arg0: i32, %arg1: i32) -> (i32, i32, i32) {
    %c0_i32 = arith.constant 0 : i32
    %c0_i32_0 = arith.constant 0 : i32
    return %arg0, %arg1, %c0_i32 : i32, i32, i32
  }
}

</mosaic_0001>

<bundles_post_ra>
// kernel: block_forward.1
= control target key start
LH: loop header
LB: loop body
LE: loop exit
PB: predicated region body
PF: predicated region fallthrough
CT: control target
= control target key end

     0   :  { %s3343_s18 = smov 0   ;;  %s3345_s19 = smov 0   ;;  %s4313_s0 = inlined_call_operand.vmem [shape: f32[2,64,32], index: 0, kind: input, shape index: {}]   ;;  %s4314_s1 = inlined_call_operand.vmem [shape: f32[4,16,16], index: 1, kind: input, shape index: {}]   ;;  %s4315_s2 = inlined_call_operand.vmem [shape: f32[4,16,16], index: 2, kind: input, shape index: {}]   ;;  %s4316_s3 = inlined_call_operand.vmem [shape: f32[1,32], index: 3, kind: input, shape index: {}]   ;;  %s4317_s4 = inlined_call_operand.vmem [shape: f32[1,32], index: 4, kind: input, shape index: {}]   ;;  %s4318_s5 = inlined_call_operand.vmem [shape: bf16[32,96], index: 5, kind: input, shape index: {}]   ;;  %s4319_s6 = inlined_call_operand.vmem [shape: f32[1,96], index: 6, kind: input, shape index: {}]   ;;  %s4320_s7 = inlined_call_operand.vmem [shape: bf16[32,32], index: 7, kind: input, shape index: {}]   ;;  %s4321_s8 = inlined_call_operand.vmem [shape: f32[1,32], index: 8, kind: input, shape index: {}]   ;;  %s4322_s9 = inlined_call_operand.vmem [shape: f32[1,32], index: 9, kind: input, shape index: {}]   ;;  %s4323_s10 = inlined_call_operand.vmem [shape: f32[1,32], index: 10, kind: input, shape index: {}]   ;;  %s4324_s11 = inlined_call_operand.vmem [shape: bf16[32,128], index: 11, kind: input, shape index: {}]   ;;  %s4325_s12 = inlined_call_operand.vmem [shape: f32[1,128], index: 12, kind: input, shape index: {}]   ;;  %s4326_s13 = inlined_call_operand.vmem [shape: bf16[128,32], index: 13, kind: input, shape index: {}]   ;;  %s4327_s14 = inlined_call_operand.vmem [shape: f32[1,32], index: 14, kind: input, shape index: {}]   ;;  %s4328_s15 = inlined_call_operand.vmem [shape: f32[2,64,32], index: 15, kind: output, shape index: {}]  }
   0x1   :  { %s3347_s20 = smov 0  }
   0x2 LB: > { %s37_s21 = sadd.s32 1, %s3242_s19  ;;  %p2860_p0 = scmp.ge.s32.totalorder %s3246_s20, 1  ;;  %s3246_s20 = sphi %s3347_s20, %s25_s20   ;;  %s3242_s19 = sphi %s3345_s19, %s4330_s19   ;;  %s3238_s18 = sphi %s3343_s18, %s4329_s18  }
   0x3   : > { %p39_p1 = scmp.ge.s32.totalorder %s37_s21, 2  ;;  %p470_p2 = scmp.lt.s32.totalorder %s3246_s20, 3 }
   0x5   : > { %s4332_s21 = smov (%p39_p1, %s37_s21), 0  ;;  %p471_p3 = pnand %p2860_p0, %p470_p2 }
   0x6   : > { %p533_p4 = scmp.lt.s32.totalorder (!%p471_p3), %s3238_s18, 1  ;;  %s3249_s27 = smov (!%p471_p3), 96  }
   0x7   : > { %474 = sbr.rel (%p471_p3) target bundleno = 3408 (0xd50), region = 80  ;;  %s3250_s26 = smov (!%p471_p3), 64  }
   0x8   : > { %s3252_s17 = smov (!%p471_p3), 120   ;;  %s3253_s23 = smov (!%p471_p3), 80  }
   0x9   : > { %s3254_s29 = smov (!%p471_p3), 56   ;;  %s3255_s30 = smov (!%p471_p3), 112  }
   0xa   : > { %s3256_s16 = smov (!%p471_p3), 48   ;;  %s3258_s28 = smov (!%p471_p3), 72  }
   0xb   : > { %s3262_s24 = smov (!%p471_p3), 24  }
   0xc   : > { %s4334_s18 = smov (!%p533_p4, %s3238_s18), 1  ;;  %vm570_vm0 = vcmask 261120   ;;  %v3248_v14 = vmov 32.0   ;;  %v2970_v58 = vld [vmem:[%s4318_s5 + $0x8] sm:$0xff]  ;;  %v2969_v62 = vld [vmem:[%s4318_s5] sm:$0xff] }
   0xd   : > { %s2967_s22 = sshll.u32 %s4334_s18, 6  ;;  %3030 = vrcp.f32 %v3248_v14  ;;  %818 = vmatpush.bf16.msra.mxu0 %v2970_v58 }
   0xe   : > { %s3369_s25 = scalar_lea.vmem %s4313_s0, %s2967_s22 }
   0xf   : > { %v564_v0 = vld [vmem:[%s3369_s25 + $0x20] sm:$0xff]  ;;  %v562_v1 = vld [vmem:[%s3369_s25 + $0x10] sm:$0xff]  ;;  %v565_v6 = vld [vmem:[%s3369_s25 + $0x28] sm:$0xff] }
  0x10   : > { %v560_v2 = vld [vmem:[%s3369_s25] sm:$0xff]  ;;  %v583_v3 = vsel %vm570_vm0, %v564_v0, 0.0  ;;  %v577_v4 = vsel %vm570_vm0, %v562_v1, 0.0  ;;  %v563_v7 = vld [vmem:[%s3369_s25 + $0x18] sm:$0xff]  ;;  %v561_v8 = vld [vmem:[%s3369_s25 + $0x8] sm:$0xff]  ;;  %v586_v9 = vsel %vm570_vm0, %v565_v6, 0.0 }
  0x11   : > { %v571_v5 = vsel %vm570_vm0, %v560_v2, 0.0  ;;  %584 = vadd.xlane.f32.xlu2 %v583_v3  ;;  %578 = vadd.xlane.f32.xlu1 %v577_v4  ;;  %v580_v10 = vsel %vm570_vm0, %v563_v7, 0.0  ;;  %v574_v11 = vsel %vm570_vm0, %v561_v8, 0.0  ;;  %v566_v12 = vld [vmem:[%s3369_s25 + $0x30] sm:$0xff]  ;;  %v567_v36 = vld [vmem:[%s3369_s25 + $0x38] sm:$0xff] }
  0x12   : > { %572 = vadd.xlane.f32.xlu0 %v571_v5  ;;  %v589_v13 = vsel %vm570_vm0, %v566_v12, 0.0  ;;  %v592_v41 = vsel %vm570_vm0, %v567_v36, 0.0  ;;  %819 = vmatpush.bf16.msra.mxu0 %v2969_v62 }
  0x13   : > { %v3031_v15 = vpop.eup %3030 }
  0x14   : > { %v596_v16 = vmul.f32 32.0, %v3031_v15  ;;  %vm600_vm1 = vweird.f32 %v3031_v15 }
  0x16   : > { %v597_v17 = vsub.f32 1.0, %v596_v16 }
  0x18   : > { %v598_v18 = vmul.f32 %v3031_v15, %v597_v17 }
  0x19   : > { %587 = vadd.xlane.f32.xlu2 %v586_v9  ;;  %581 = vadd.xlane.f32.xlu1 %v580_v10 }
  0x1a   : > { %575 = vadd.xlane.f32.xlu0 %v574_v11  ;;  %v599_v19 = vadd.f32 %v3031_v15, %v598_v18 }
  0x1c   : > { %v3385_v20 = vsel %vm600_vm1, %v3031_v15, %v599_v19 }
  0x21   : > { %590 = vadd.xlane.f32.xlu2 %v589_v13 }
  0x84   : > { %v585_v21 = vpop.xlane.xlu2 %584  ;;  %v579_v22 = vpop.xlane.xlu1 %578 }
  0x85   : > { %v573_v23 = vpop.xlane.xlu0 %572  ;;  %v606_v32 = vmul.f32 %v3385_v20, %v585_v21  ;;  %v604_v33 = vmul.f32 %v3385_v20, %v579_v22 }
  0x86   : > { %v602_v24 = vmul.f32 %v3385_v20, %v573_v23 }
  0x87   : > { %v3404_v39 = vsub.f32 %v564_v0, %v606_v32  ;;  %v3406_v40 = vsub.f32 %v562_v1, %v604_v33 }
  0x88   : > { %v3388_v25 = vsub.f32 %v560_v2, %v602_v24 }
  0x89   : > { %v622_v48 = vmul.f32 %v3404_v39, %v3404_v39  ;;  %v620_v49 = vmul.f32 %v3406_v40, %v3406_v40 }
  0x8a   : > { %v618_v26 = vmul.f32 %v3388_v25, %v3388_v25 }
  0x8b   : > { %v638_v53 = vsel %vm570_vm0, %v622_v48, 0.0  ;;  %v632_v54 = vsel %vm570_vm0, %v620_v49, 0.0 }
  0x8c   : > { %v588_v27 = vpop.xlane.xlu2 %587  ;;  %v582_v28 = vpop.xlane.xlu1 %581  ;;  %v626_v29 = vsel %vm570_vm0, %v618_v26, 0.0 }
  0x8d   : > { %v605_v30 = vmul.f32 %v3385_v20, %v582_v28  ;;  %627 = vadd.xlane.f32.xlu0 %v626_v29  ;;  %v576_v31 = vpop.xlane.xlu0 %575  ;;  %v607_v47 = vmul.f32 %v3385_v20, %v588_v27 }
  0x8e   : > { %v603_v34 = vmul.f32 %v3385_v20, %v576_v31 }
  0x8f   : > { %v3397_v35 = vsub.f32 %v563_v7, %v605_v30  ;;  %v3423_v52 = vsub.f32 %v565_v6, %v607_v47 }
  0x90   : > { %v3400_v37 = vsub.f32 %v561_v8, %v603_v34 }
  0x91   : > { %v621_v38 = vmul.f32 %v3397_v35, %v3397_v35  ;;  %v623_v56 = vmul.f32 %v3423_v52, %v3423_v52 }
  0x92   : > { %v619_v42 = vmul.f32 %v3400_v37, %v3400_v37 }
  0x93   : > { %v635_v43 = vsel %vm570_vm0, %v621_v38, 0.0  ;;  %v641_v57 = vsel %vm570_vm0, %v623_v56, 0.0 }
  0x94   : > { %v591_v44 = vpop.xlane.xlu2 %590  ;;  %636 = vadd.xlane.f32.xlu2 %v635_v43  ;;  %v629_v45 = vsel %vm570_vm0, %v619_v42, 0.0 }
  0x95   : > { %v608_v46 = vmul.f32 %v3385_v20, %v591_v44  ;;  %593 = vadd.xlane.f32.xlu0 %v592_v41  ;;  %630 = vadd.xlane.f32.xlu1 %v629_v45  ;;  %v3461_v44 = vld [vmem:[%s4316_s3] ss:$0 sm:$0xff] }
  0x97   : > { %v3419_v50 = vsub.f32 %v566_v12, %v608_v46 }
  0x99   : > { %v624_v51 = vmul.f32 %v3419_v50, %v3419_v50 }
  0x9b   : > { %v644_v55 = vsel %vm570_vm0, %v624_v51, 0.0 }
  0x9c   : > { %645 = vadd.xlane.f32.xlu2 %v644_v55 }
  0x9d   : > { %639 = vadd.xlane.f32.xlu0 %v638_v53  ;;  %633 = vadd.xlane.f32.xlu1 %v632_v54 }
  0xa5   : > { %642 = vadd.xlane.f32.xlu1 %v641_v57 }
 0x100   : > { %v628_v59 = vpop.xlane.xlu0 %627 }
 0x101   : > { %v650_v60 = vmul.f32 %v628_v59, %v3385_v20 }
 0x103   : > { %v658_v61 = vadd.f32 1e-05, %v650_v60 }
 0x105   : > { %3032 = vrsqrt.f32 %v658_v61  ;;  %vm672_vm3 = vweird.f32 %v658_v61 }
 0x107   : > { %v637_v63 = vpop.xlane.xlu2 %636 }
 0x108   : > { %v653_v0 = vmul.f32 %v637_v63, %v3385_v20  ;;  %v631_v1 = vpop.xlane.xlu1 %630  ;;  %v594_v2 = vpop.xlane.xlu0 %593 }
 0x109   : > { %v651_v3 = vmul.f32 %v631_v1, %v3385_v20  ;;  %v609_v4 = vmul.f32 %v3385_v20, %v594_v2 }
 0x10a   : > { %v3441_v5 = vadd.f32 1e-05, %v653_v0 }
 0x10b   : > { %v3033_v6 = vpop.eup %3032  ;;  %v659_v7 = vadd.f32 1e-05, %v651_v3  ;;  %v3443_v8 = vsub.f32 %v567_v36, %v609_v4 }
 0x10c   : > { %v667_v9 = vmul.f32 %v3033_v6, %v658_v61  ;;  %3034 = vrsqrt.f32 %v3441_v5  ;;  %vm673_vm2 = vweird.f32 %v3033_v6  ;;  %vm702_vm10 = vweird.f32 %v3441_v5 }
 0x10d   : > { %3036 = vrsqrt.f32 %v659_v7  ;;  %v625_v10 = vmul.f32 %v3443_v8, %v3443_v8  ;;  %vm674_vm4 = vmor %vm672_vm3, %vm673_vm2  ;;  %vm682_vm5 = vweird.f32 %v659_v7 }
 0x10e   : > { %v668_v11 = vmul.f32 %v3033_v6, %v667_v9 }
 0x10f   : > { %v647_v12 = vsel %vm570_vm0, %v625_v10, 0.0 }
 0x110   : > { %v669_v13 = vmul.f32 0.5, %v668_v11  ;;  %v634_v14 = vpop.xlane.xlu1 %633  ;;  %648 = vadd.xlane.f32.xlu0 %v647_v12  ;;  %v640_v16 = vpop.xlane.xlu0 %639 }
 0x111   : > { %v652_v15 = vmul.f32 %v634_v14, %v3385_v20  ;;  %v654_v23 = vmul.f32 %v640_v16, %v3385_v20 }
 0x112   : > { %v3450_v17 = vpop.eup %3034  ;;  %v670_v18 = vsub.f32 1.5, %v669_v13 }
 0x113   : > { %v3037_v19 = vpop.eup %3036  ;;  %v660_v21 = vadd.f32 1e-05, %v652_v15  ;;  %v697_v26 = vmul.f32 %v3450_v17, %v3441_v5  ;;  %v662_v29 = vadd.f32 1e-05, %v654_v23  ;;  %vm703_vm11 = vweird.f32 %v3450_v17 }
 0x114   : > { %v677_v22 = vmul.f32 %v3037_v19, %v659_v7  ;;  %v671_v24 = vmul.f32 %v3033_v6, %v670_v18  ;;  %vm683_vm6 = vweird.f32 %v3037_v19  ;;  %vm704_vm13 = vmor %vm702_vm10, %vm703_vm11  ;;  %vm872_vm11 = vcmask 64512  }
 0x115   : > { %3038 = vrsqrt.f32 %v660_v21  ;;  %v698_v32 = vmul.f32 %v3450_v17, %v697_v26  ;;  %vm684_vm7 = vmor %vm682_vm5, %vm683_vm6  ;;  %vm692_vm8 = vweird.f32 %v660_v21  ;;  %vm712_vm1 = vweird.f32 %v662_v29 }
 0x116   : > { %v678_v27 = vmul.f32 %v3037_v19, %v677_v22  ;;  %v675_v31 = vsel %vm674_vm4, %v3033_v6, %v671_v24  ;;  %3040 = vrsqrt.f32 %v662_v29 }
 0x117   : > { %v746_v41 = vmul.f32 %v675_v31, %v3388_v25  ;;  %v699_v45 = vmul.f32 0.5, %v698_v32  ;;  %v3468_v25 = vld [vmem:[%s4317_s4] ss:$0 sm:$0xff] }
 0x118   : > { %v679_v28 = vmul.f32 0.5, %v678_v27  ;;  %v643_v30 = vpop.xlane.xlu1 %642  ;;  %v646_v27 = vpop.xlane.xlu2 %645 }
 0x119   : > { %v655_v33 = vmul.f32 %v643_v30, %v3385_v20  ;;  %v757_v51 = vmul.f32 %v3461_v44, %v746_v41  ;;  %v700_v53 = vsub.f32 1.5, %v699_v45 }
 0x11a   : > { %v680_v34 = vsub.f32 1.5, %v679_v28  ;;  %v656_v28 = vmul.f32 %v646_v27, %v3385_v20 }
 0x11b   : > { %v3039_v36 = vpop.eup %3038  ;;  %v663_v38 = vadd.f32 1e-05, %v655_v33  ;;  %v768_v59 = vadd.f32 %v3468_v25, %v757_v51  ;;  %v701_v60 = vmul.f32 %v3450_v17, %v700_v53 }
 0x11c   : > { %v681_v42 = vmul.f32 %v3037_v19, %v680_v34  ;;  %v687_v43 = vmul.f32 %v3039_v36, %v660_v21  ;;  %vm693_vm9 = vweird.f32 %v3039_v36  ;;  %v3041_v55 = vpop.eup %3040 }
 0x11d   : > { %3042 = vrsqrt.f32 %v663_v38  ;;  %vm694_vm12 = vmor %vm692_vm8, %vm693_vm9  ;;  %v707_v61 = vmul.f32 %v3041_v55, %v662_v29  ;;  %v705_v2 = vsel %vm704_vm13, %v3450_v17, %v701_v60  ;;  %vm722_vm14 = vweird.f32 %v663_v38 }
 0x11e   : > { %v685_v46 = vsel %vm684_vm7, %v3037_v19, %v681_v42  ;;  %v688_v47 = vmul.f32 %v3039_v36, %v687_v43  ;;  %v749_v6 = vmul.f32 %v705_v2, %v3397_v35  ;;  %vm713_vm2 = vweird.f32 %v3041_v55 }
 0x11f   : > { %v747_v48 = vmul.f32 %v685_v46, %v3400_v37  ;;  %v708_v3 = vmul.f32 %v3041_v55, %v707_v61  ;;  %vm714_vm4 = vmor %vm712_vm1, %vm713_vm2  ;;  %v664_v29 = vadd.f32 1e-05, %v656_v28  ;;  %vm1519_vm13 = vcmask 130112  }
 0x120   : > { %v689_v49 = vmul.f32 0.5, %v688_v47  ;;  %v760_v11 = vmul.f32 %v3461_v44, %v749_v6 }
 0x121   : > { %v758_v54 = vmul.f32 %v3461_v44, %v747_v48  ;;  %v709_v7 = vmul.f32 0.5, %v708_v3  ;;  %3044 = vrsqrt.f32 %v664_v29  ;;  %vm732_vm5 = vweird.f32 %v664_v29 }
 0x122   : > { %v690_v56 = vsub.f32 1.5, %v689_v49 }
 0x123   : > { %v769_v37 = vadd.f32 %v3468_v25, %v758_v54  ;;  %v3043_v57 = vpop.eup %3042  ;;  %v710_v12 = vsub.f32 1.5, %v709_v7 }
 0x124   : > { %v691_v58 = vmul.f32 %v3039_v36, %v690_v56  ;;  %v717_v62 = vmul.f32 %v3043_v57, %v663_v38  ;;  %vm723_vm15 = vweird.f32 %v3043_v57 }
 0x125   : > { %v776_v63 = vpack.c.bf16 %v769_v37, %v768_v59  ;;  %vm724_vm3 = vmor %vm722_vm14, %vm723_vm15  ;;  %v711_v15 = vmul.f32 %v3041_v55, %v710_v12  ;;  %vm1860_vm14 = vcmask 195712   ;;  %vm2201_vm15 = vcmask 261312  }
 0x126   : > { %v695_v0 = vsel %vm694_vm12, %v3039_v36, %v691_v58  ;;  %v718_v1 = vmul.f32 %v3043_v57, %v717_v62  ;;  %vm982_vm12 = vcmask 130048  }
 0x127   : > { %2873 = vmatmul.msk.bf16.vlgmr.msra.gmra.mxu0 %vm570_vm0, %v776_v63  ;;  %v748_v4 = vmul.f32 %v695_v0, %v3406_v40  ;;  %v771_v40 = vadd.f32 %v3468_v25, %v760_v11  ;;  %v715_v17 = vsel %vm714_vm4, %v3041_v55, %v711_v15  ;;  %v3045_v30 = vpop.eup %3044 }
 0x128   : > { %v719_v5 = vmul.f32 0.5, %v718_v1  ;;  %v750_v19 = vmul.f32 %v715_v17, %v3404_v39  ;;  %vm733_vm6 = vweird.f32 %v3045_v30 }
 0x129   : > { %v759_v9 = vmul.f32 %v3461_v44, %v748_v4  ;;  %vm734_vm7 = vmor %vm732_vm5, %vm733_vm6 }
 0x12a   : > { %v720_v10 = vsub.f32 1.5, %v719_v5  ;;  %v761_v22 = vmul.f32 %v3461_v44, %v750_v19 }
 0x12b   : > { %v770_v13 = vadd.f32 %v3468_v25, %v759_v9 }
 0x12c   : > { %v721_v14 = vmul.f32 %v3043_v57, %v720_v10  ;;  %v772_v24 = vadd.f32 %v3468_v25, %v761_v22 }
 0x12d   : > { %v777_v35 = vpack.c.bf16 %v771_v40, %v770_v13 }
 0x12e   : > { %v725_v16 = vsel %vm724_vm3, %v3043_v57, %v721_v14 }
 0x12f   : > { %v751_v18 = vmul.f32 %v725_v16, %v3423_v52  ;;  %v727_v52 = vmul.f32 %v3045_v30, %v664_v29 }
 0x131   : > { %v762_v21 = vmul.f32 %v3461_v44, %v751_v18  ;;  %v728_v31 = vmul.f32 %v3045_v30, %v727_v52 }
 0x133   : > { %v773_v23 = vadd.f32 %v3468_v25, %v762_v21  ;;  %v729_v34 = vmul.f32 0.5, %v728_v31 }
 0x135   : > { %v778_v26 = vpack.c.bf16 %v773_v23, %v772_v24  ;;  %v730_v36 = vsub.f32 1.5, %v729_v34  ;;  %v841_v34 = vld [vmem:[%s4314_s1] sm:$0xff] }
 0x137   : > { %2874 = vmatmul.msk.bf16.gmra.mxu0 %vm570_vm0, %v777_v35  ;;  %v731_v41 = vmul.f32 %v3045_v30, %v730_v36 }
 0x139   : > { %v735_v45 = vsel %vm734_vm7, %v3045_v30, %v731_v41 }
 0x13a   : > { %v752_v48 = vmul.f32 %v735_v45, %v3419_v50  ;;  %v3024_v50 = vld [vmem:[%s4319_s6] ss:$0 sm:$0xff]  ;;  %v842_v45 = vld [vmem:[%s4314_s1 + $0x8] sm:$0xff] }
 0x13c   : > { %v763_v54 = vmul.f32 %v3461_v44, %v752_v48 }
 0x13e   : > { %v774_v56 = vadd.f32 %v3468_v25, %v763_v54  ;;  %v3558_v54 = vld [vmem:[%s4315_s2 + $0x10] sm:$0xff] }
 0x147   : > { %2875 = vmatmul.msk.bf16.gmra.mxu0 %vm570_vm0, %v778_v26 }
 0x183   : > { %v649_v39 = vpop.xlane.xlu0 %648 }
 0x184   : > { %v657_v32 = vmul.f32 %v649_v39, %v3385_v20 }
 0x186   : > { %v665_v33 = vadd.f32 1e-05, %v657_v32 }
 0x188   : > { %3046 = vrsqrt.f32 %v665_v33  ;;  %vm742_vm9 = vweird.f32 %v665_v33 }
 0x18e   : > { %v3047_v38 = vpop.eup %3046 }
 0x18f   : > { %v737_v42 = vmul.f32 %v3047_v38, %v665_v33  ;;  %vm743_vm8 = vweird.f32 %v3047_v38 }
 0x190   : > { %vm744_vm10 = vmor %vm742_vm9, %vm743_vm8 }
 0x191   : > { %v738_v43 = vmul.f32 %v3047_v38, %v737_v42 }
 0x193   : > { %v739_v46 = vmul.f32 0.5, %v738_v43 }
 0x195   : > { %v740_v47 = vsub.f32 1.5, %v739_v46 }
 0x197   : > { %v741_v49 = vmul.f32 %v3047_v38, %v740_v47  ;;  %v3551_v47 = vld [vmem:[%s4315_s2 + $0x8] sm:$0xff] }
 0x199   : > { %v745_v51 = vsel %vm744_vm10, %v3047_v38, %v741_v49  ;;  %v3538_v38 = vld [vmem:[%s4315_s2] sm:$0xff] }
 0x19a   : > { %v753_v53 = vmul.f32 %v745_v51, %v3443_v8 }
 0x19c   : > { %v764_v55 = vmul.f32 %v3461_v44, %v753_v53 }
 0x19e   : > { %v775_v37 = vadd.f32 %v3468_v25, %v764_v55 }
 0x1a0   : > { %v779_v57 = vpack.c.bf16 %v775_v37, %v774_v56 }
 0x1a2   : > { %2876 = vmatmul.msk.bf16.gmra.mxu0 %vm570_vm0, %v779_v57 }
 0x1a4   : > { %v821_v58 = vpop.f32.mrf.mxu0 }
 0x1a5   : > { %v822_v59 = vadd.f32 %v3024_v50, %v821_v58  ;;  %v3568_v58 = vld [vmem:[%s4315_s2 + $0x18] sm:$0xff] }
 0x1a7   : > { %v857_v61 = vpack.c.bf16 %v822_v59, %v822_v59 }
 0x1a9   : > { %v867_v63 = vunpack.c.l.b16 %v857_v61 }
 0x1ac   : > { %v823_v60 = vpop.f32.mrf.mxu0 }
 0x1ad   : > { %v824_v8 = vadd.f32 %v3024_v50, %v823_v60 }
 0x1af   : > { %v858_v62 = vpack.c.bf16 %v824_v8, %v824_v8  ;;  %v3575_v8 = vld [vmem:[%s4315_s2 + $0x20] sm:$0xff] }
 0x1b1   : > { %v868_v0 = vunpack.c.l.b16 %v858_v62 }
 0x1b3   : > { %v3504_v44 = vpack.c.b16 %v868_v0, %v867_v63 }
 0x1b4   : > { %v826_v1 = vpop.f32.mrf.mxu0 }
 0x1b5   : > { %870 = vrot.lane.b32.xlu1 %v3504_v44, %s3249_s27  ;;  %v827_v25 = vadd.f32 %v3024_v50, %v826_v1 }
 0x1b7   : > { %v859_v3 = vpack.c.bf16 %v827_v25, %v827_v25  ;;  %v3585_v25 = vld [vmem:[%s4315_s2 + $0x28] sm:$0xff] }
 0x1b9   : > { %v895_v6 = vunpack.c.l.b16 %v859_v3 }
 0x1bc   : > { %v828_v2 = vpop.f32.mrf.mxu0 }
 0x1bd   : > { %v829_v4 = vadd.f32 %v3024_v50, %v828_v2 }
 0x1bf   : > { %v860_v5 = vpack.c.bf16 %v829_v4, %v829_v4 }
 0x1c1   : > { %v896_v7 = vunpack.c.l.b16 %v860_v5 }
 0x1c3   : > { %v3508_v9 = vpack.c.b16 %v896_v7, %v895_v6  ;;  %v3599_v6 = vld [vmem:[%s4315_s2 + $0x30] sm:$0xff] }
 0x1c4   : > { %v831_v10 = vpop.f32.mrf.mxu0 }
 0x1c5   : > { %898 = vrot.lane.b32.xlu2 %v3508_v9, %s3249_s27  ;;  %v832_v11 = vadd.f32 %v3024_v50, %v831_v10 }
 0x1c7   : > { %v861_v13 = vpack.c.bf16 %v832_v11, %v832_v11 }
 0x1c9   : > { %v922_v15 = vunpack.c.l.b16 %v861_v13  ;;  %v3609_v13 = vld [vmem:[%s4315_s2 + $0x38] sm:$0xff] }
 0x1cc   : > { %v833_v12 = vpop.f32.mrf.mxu0 }
 0x1cd   : > { %v834_v14 = vadd.f32 %v3024_v50, %v833_v12 }
 0x1cf   : > { %v862_v40 = vpack.c.bf16 %v834_v14, %v834_v14 }
 0x1d1   : > { %v923_v35 = vunpack.c.l.b16 %v862_v40 }
 0x1d3   : > { %v3512_v16 = vpack.c.b16 %v923_v35, %v922_v15 }
 0x1d5   : > { %925 = vrot.lane.b32.xlu2 %v3512_v16, %s3249_s27 }
 0x21f   : > { %v836_v17 = vpop.f32.mrf.mxu0  ;;  %v899_v19 = vpop.permute.xlu2 %898 }
 0x220   : > { %v837_v18 = vadd.f32 %v3024_v50, %v836_v17  ;;  %v904_v28 = vsel %vm872_vm11, %v899_v19, 0 }
 0x222   : > { %v863_v22 = vpack.c.bf16 %v837_v18, %v837_v18 }
 0x224   : > { %v949_v29 = vunpack.c.l.b16 %v863_v22 }
 0x227   : > { %v838_v21 = vpop.f32.mrf.mxu0  ;;  %v871_v23 = vpop.permute.xlu1 %870 }
 0x228   : > { %v839_v24 = vadd.f32 %v3024_v50, %v838_v21  ;;  %v877_v26 = vsel %vm872_vm11, %v871_v23, 0 }
 0x229   : > { %886 = vmatpush.bf16.xpose.msra.mxu3 %v877_v26 }
 0x22a   : > { %v864_v27 = vpack.c.bf16 %v839_v24, %v839_v24 }
 0x22c   : > { %v950_v30 = vunpack.c.l.b16 %v864_v27 }
 0x22e   : > { %v3518_v52 = vpack.c.b16 %v950_v30, %v949_v29 }
 0x22f   : > { %v926_v31 = vpop.permute.xlu2 %925 }
 0x230   : > { %952 = vrot.lane.b32.xlu0 %v3518_v52, %s3249_s27  ;;  %v931_v39 = vsel %vm872_vm11, %v926_v31, 0  ;;  %2877 = vmatmul.msk.bf16.vlgmr.msra.gmra.mxu3 %vm872_vm11, %v3504_v44  ;;  %s3251_s27 = smov 88  }
 0x231   : > { %913 = vmatpush.bf16.xpose.msrb.mxu3 %v904_v28 }
 0x239   : > { %940 = vmatpush.bf16.xpose.msra.mxu3 %v931_v39 }
 0x240   : > { %2878 = vmatmul.msk.bf16.vlgmr.msrb.gmra.mxu3 %vm872_vm11, %v3508_v9 }
 0x250   : > { %2879 = vmatmul.msk.bf16.vlgmr.msra.gmra.mxu3 %vm872_vm11, %v3512_v16 }
 0x2a2   : > { %v953_v32 = vpop.permute.xlu0 %952 }
 0x2a3   : > { %v958_v33 = vsel %vm872_vm11, %v953_v32, 0 }
 0x2a4   : > { %967 = vmatpush.bf16.xpose.msra.mxu1 %v958_v33 }
 0x2ab   : > { %2880 = vmatmul.msk.bf16.vlgmr.msra.gmra.mxu1 %vm872_vm11, %v3518_v52 }
 0x2b3   : > { %v888_v36 = vpop.f32.mrf.mxu3 }
 0x2b4   : > { %v889_v41 = vadd.f32 %v888_v36, %v841_v34 }
 0x2b6   : > { %v3541_v42 = vadd.f32 %v889_v41, %v3538_v38 }
 0x2b8   : > { %v983_v43 = vsel %vm982_vm12, %v3541_v42, -inf }
 0x2b9   : > { %984 = vmax.xlane.f32.xlu1 %v983_v43 }
 0x2bb   : > { %v890_v46 = vpop.f32.mrf.mxu3 }
 0x2bc   : > { %v891_v48 = vadd.f32 %v890_v46, %v842_v45 }
 0x2be   : > { %v975_v49 = vadd.f32 %v891_v48, %v3551_v47 }
 0x2c0   : > { %v986_v51 = vsel %vm982_vm12, %v975_v49, -inf }
 0x2c1   : > { %987 = vmax.xlane.f32.xlu0 %v986_v51 }
 0x2c3   : > { %v915_v53 = vpop.f32.mrf.mxu3 }
 0x2c4   : > { %v916_v55 = vadd.f32 %v915_v53, %v841_v34 }
 0x2c6   : > { %v3561_v56 = vadd.f32 %v916_v55, %v3558_v54 }
 0x2c8   : > { %v989_v37 = vsel %vm982_vm12, %v3561_v56, -inf }
 0x2c9   : > { %990 = vmax.xlane.f32.xlu2 %v989_v37 }
 0x2cb   : > { %v917_v57 = vpop.f32.mrf.mxu3 }
 0x2cc   : > { %v918_v50 = vadd.f32 %v917_v57, %v842_v45 }
 0x2ce   : > { %v977_v59 = vadd.f32 %v918_v50, %v3568_v58 }
 0x2d0   : > { %v992_v60 = vsel %vm982_vm12, %v977_v59, -inf }
 0x2d1   : > { %993 = vmax.xlane.f32.xlu1 %v992_v60 }
 0x2d3   : > { %v942_v61 = vpop.f32.mrf.mxu3 }
 0x2d4   : > { %v943_v62 = vadd.f32 %v942_v61, %v841_v34 }
 0x2d6   : > { %v3578_v63 = vadd.f32 %v943_v62, %v3575_v8 }
 0x2d8   : > { %v995_v0 = vsel %vm982_vm12, %v3578_v63, -inf }
 0x2d9   : > { %996 = vmax.xlane.f32.xlu1 %v995_v0 }
 0x2db   : > { %v944_v1 = vpop.f32.mrf.mxu3 }
 0x2dc   : > { %v945_v2 = vadd.f32 %v944_v1, %v842_v45 }
 0x2de   : > { %v979_v3 = vadd.f32 %v945_v2, %v3585_v25 }
 0x2e0   : > { %v998_v4 = vsel %vm982_vm12, %v979_v3, -inf }
 0x2e1   : > { %1159 = vrot.lane.b32.xlu2 %v3518_v52, %s3250_s26  ;;  %999 = vmax.xlane.f32.xlu0 %v998_v4 }
 0x2e9   : > { %1189 = vrot.lane.b32.xlu2 %v3504_v44, %s3251_s27 }
 0x2f2   : > { %1109 = vrot.lane.b32.xlu1 %v3508_v9, %s3250_s26 }
 0x2fa   : > { %1134 = vrot.lane.b32.xlu1 %v3512_v16, %s3250_s26 }
 0x302   : > { %1237 = vrot.lane.b32.xlu1 %v3512_v16, %s3251_s27 }
 0x328   : > { %v969_v5 = vpop.f32.mrf.mxu1 }
 0x329   : > { %v970_v7 = vadd.f32 %v969_v5, %v841_v34 }
 0x32b   : > { %v3602_v10 = vadd.f32 %v970_v7, %v3599_v6 }
 0x32c   : > { %v985_v19 = vpop.xlane.xlu1 %984 }
 0x32d   : > { %v1001_v11 = vsel %vm982_vm12, %v3602_v10, -inf  ;;  %v1007_v36 = vsub.f32 %v3541_v42, %v985_v19 }
 0x32e   : > { %1002 = vmax.xlane.f32.xlu0 %v1001_v11 }
 0x32f   : > { %v1015_v46 = vmul.f32 1.442695, %v1007_v36 }
 0x330   : > { %v971_v12 = vpop.f32.mrf.mxu1 }
 0x331   : > { %v972_v14 = vadd.f32 %v971_v12, %v842_v45 }
 0x333   : > { %v3612_v40 = vadd.f32 %v972_v14, %v3609_v13 }
 0x334   : > { %v988_v15 = vpop.xlane.xlu0 %987 }
 0x335   : > { %v1004_v35 = vsel %vm982_vm12, %v3612_v40, -inf  ;;  %v1008_v17 = vsub.f32 %v975_v49, %v988_v15 }
 0x336   : > { %1005 = vmax.xlane.f32.xlu2 %v1004_v35 }
 0x337   : > { %v1017_v18 = vmul.f32 1.442695, %v1008_v17 }
 0x339   : > { %3048 = vpow2.f32 %v1017_v18 }
 0x33c   : > { %v991_v27 = vpop.xlane.xlu2 %990 }
 0x33d   : > { %v1009_v49 = vsub.f32 %v3561_v56, %v991_v27 }
 0x33f   : > { %v3616_v21 = vpop.eup %3048  ;;  %v1019_v42 = vmul.f32 1.442695, %v1009_v49 }
 0x340   : > { %v1034_v22 = vsel %vm982_vm12, %v3616_v21, 0.0 }
 0x341   : > { %1035 = vadd.xlane.f32.xlu1 %v1034_v22 }
 0x342   : > { %1084 = vrot.lane.b32.xlu0 %v3504_v44, %s3250_s26 }
 0x344   : > { %v994_v23 = vpop.xlane.xlu1 %993  ;;  %v1160_v31 = vpop.permute.xlu2 %1159 }
 0x345   : > { %v1010_v24 = vsub.f32 %v977_v59, %v994_v23 }
 0x347   : > { %v1021_v26 = vmul.f32 1.442695, %v1010_v24 }
 0x349   : > { %3050 = vpow2.f32 %v1021_v26 }
 0x34c   : > { %v997_v32 = vpop.xlane.xlu1 %996  ;;  %v1190_v34 = vpop.permute.xlu2 %1189 }
 0x34d   : > { %v1195_v43 = vsel %vm872_vm11, %v1190_v34, 0  ;;  %v1011_v55 = vsub.f32 %v3578_v63, %v997_v32 }
 0x34e   : > { %1187 = vrot.lane.b32.xlu2 %v3504_v44, %s3252_s17 }
 0x34f   : > { %v3623_v28 = vpop.eup %3050  ;;  %v1023_v57 = vmul.f32 1.442695, %v1011_v55 }
 0x350   : > { %v1040_v29 = vsel %vm982_vm12, %v3623_v28, 0.0 }
 0x351   : > { %1041 = vadd.xlane.f32.xlu1 %v1040_v29 }
 0x354   : > { %v1000_v30 = vpop.xlane.xlu0 %999 }
 0x355   : > { %v1012_v39 = vsub.f32 %v979_v3, %v1000_v30 }
 0x357   : > { %v1025_v33 = vmul.f32 1.442695, %v1012_v39 }
 0x359   : > { %3052 = vpow2.f32 %v1025_v33 }
 0x35a   : > { %3054 = vpow2.f32 %v1015_v46 }
 0x35b   : > { %3056 = vpow2.f32 %v1019_v42 }
 0x35c   : > { %3058 = vpow2.f32 %v1023_v57 }
 0x35f   : > { %v3629_v45 = vpop.eup %3052 }
 0x360   : > { %v1046_v48 = vsel %vm982_vm12, %v3629_v45, 0.0  ;;  %v3055_v53 = vpop.eup %3054 }
 0x361   : > { %v1031_v37 = vsel %vm982_vm12, %v3055_v53, 0.0  ;;  %v3057_v50 = vpop.eup %3056 }
 0x362   : > { %v1037_v59 = vsel %vm982_vm12, %v3057_v50, 0.0  ;;  %v3641_v56 = vpop.eup %3058 }
 0x363   : > { %v1043_v60 = vsel %vm982_vm12, %v3641_v56, 0.0 }
 0x364   : > { %v1110_v41 = vpop.permute.xlu1 %1109 }
 0x365   : > { %1122 = vmatpush.bf16.msrb.mxu3 %v1110_v41 }
 0x369   : > { %1204 = vmatpush.bf16.xpose.msra.mxu3 %v1195_v43 }
 0x36a   : > { %1235 = vrot.lane.b32.xlu1 %v3512_v16, %s3252_s17 }
 0x36c   : > { %1047 = vadd.xlane.f32.xlu0 %v1046_v48  ;;  %v1135_v51 = vpop.permute.xlu1 %1134 }
 0x36d   : > { %1147 = vmatpush.bf16.msrb.mxu1 %v1135_v51 }
 0x374   : > { %v1238_v11 = vpop.permute.xlu1 %1237 }
 0x377   : > { %1032 = vadd.xlane.f32.xlu2 %v1031_v37 }
 0x37f   : > { %1038 = vadd.xlane.f32.xlu2 %v1037_v59 }
 0x380   : > { %1213 = vrot.lane.b32.xlu0 %v3508_v9, %s3251_s27 }
 0x387   : > { %1044 = vadd.xlane.f32.xlu2 %v1043_v60 }
 0x3a1   : > { %v1003_v61 = vpop.xlane.xlu0 %1002 }
 0x3a2   : > { %v1013_v62 = vsub.f32 %v3602_v10, %v1003_v61 }
 0x3a4   : > { %v1027_v63 = vmul.f32 1.442695, %v1013_v62 }
 0x3a6   : > { %3060 = vpow2.f32 %v1027_v63 }
 0x3a9   : > { %v1006_v0 = vpop.xlane.xlu2 %1005 }
 0x3aa   : > { %v1014_v1 = vsub.f32 %v3612_v40, %v1006_v0 }
 0x3ac   : > { %v3647_v2 = vpop.eup %3060  ;;  %v1029_v3 = vmul.f32 1.442695, %v1014_v1 }
 0x3ad   : > { %v1049_v4 = vsel %vm982_vm12, %v3647_v2, 0.0 }
 0x3ae   : > { %3062 = vpow2.f32 %v1029_v3  ;;  %1050 = vadd.xlane.f32.xlu2 %v1049_v4 }
 0x3b1   : > { %v1188_v14 = vpop.permute.xlu2 %1187 }
 0x3b4   : > { %v3651_v5 = vpop.eup %3062  ;;  %v1085_v7 = vpop.permute.xlu0 %1084 }
 0x3b5   : > { %1097 = vmatpush.bf16.msra.mxu2 %v1085_v7  ;;  %v1052_v10 = vsel %vm982_vm12, %v3651_v5, 0.0  ;;  %v1036_v12 = vpop.xlane.xlu1 %1035 }
 0x3b6   : > { %1053 = vadd.xlane.f32.xlu1 %v1052_v10  ;;  %3064 = vrcp.f32 %v1036_v12 }
 0x3b9   : > { %1172 = vmatpush.bf16.msrb.mxu2 %v1160_v31 }
 0x3bc   : > { %v3065_v17 = vpop.eup %3064 }
 0x3bd   : > { %v1064_v18 = vmul.f32 %v3065_v17, %v3616_v21  ;;  %v1243_v21 = vsel %vm872_vm11, %v1238_v11, 0 }
 0x3bf   : > { %v1072_v26 = vpack.c.bf16 %v1064_v18, %v1064_v18 }
 0x3c1   : > { %v1082_v32 = vunpack.c.l.b16 %v1072_v26 }
 0x3c4   : > { %v1042_v40 = vpop.xlane.xlu1 %1041 }
 0x3c6   : > { %1211 = vrot.lane.b32.xlu2 %v3508_v9, %s3252_s17 }
 0x3ce   : > { %1259 = vrot.lane.b32.xlu2 %v3518_v52, %s3252_s17  ;;  %s3260_s17 = smov 16  }
 0x3cf   : > { %1261 = vrot.lane.b32.xlu1 %v3518_v52, %s3251_s27  ;;  %s3257_s27 = smov 104  }
 0x3d6   : > { %1530 = vrot.lane.b32.xlu2 %v3504_v44, %s3253_s23 }
 0x3dc   : > { %v1236_v61 = vpop.permute.xlu1 %1235 }
 0x3df   : > { %v1048_v15 = vpop.xlane.xlu0 %1047 }
 0x3ea   : > { %v1033_v35 = vpop.xlane.xlu2 %1032 }
 0x3eb   : > { %3066 = vrcp.f32 %v1033_v35 }
 0x3ec   : > { %3068 = vrcp.f32 %v1042_v40 }
 0x3f1   : > { %v3067_v19 = vpop.eup %3066 }
 0x3f2   : > { %v1039_v22 = vpop.xlane.xlu2 %1038  ;;  %v1214_v23 = vpop.permute.xlu0 %1213  ;;  %v1063_v24 = vmul.f32 %v3067_v19, %v3055_v53 }
 0x3f3   : > { %v3069_v27 = vpop.eup %3068  ;;  %3070 = vrcp.f32 %v1039_v22  ;;  %v1219_v29 = vsel %vm872_vm11, %v1214_v23, 0 }
 0x3f4   : > { %1228 = vmatpush.bf16.xpose.msra.mxu1 %v1219_v29  ;;  %v1071_v30 = vpack.c.bf16 %v1063_v24, %v1063_v24  ;;  %3072 = vrcp.f32 %v1048_v15  ;;  %v1066_v31 = vmul.f32 %v3069_v27, %v3623_v28  ;;  %v843_v24 = vld [vmem:[%s4314_s1 + $0x10] sm:$0xff] }
 0x3f6   : > { %v1081_v39 = vunpack.c.l.b16 %v1071_v30  ;;  %v1074_v36 = vpack.c.bf16 %v1066_v31, %v1066_v31  ;;  %v844_v31 = vld [vmem:[%s4314_s1 + $0x18] sm:$0xff] }
 0x3f8   : > { %v1083_v33 = vpack.c.b16 %v1082_v32, %v1081_v39  ;;  %v1107_v49 = vunpack.c.l.b16 %v1074_v36 }
 0x3f9   : > { %v3071_v34 = vpop.eup %3070 }
 0x3fa   : > { %v1065_v41 = vmul.f32 %v3071_v34, %v3057_v50  ;;  %v1045_v43 = vpop.xlane.xlu2 %1044  ;;  %2881 = vmatmul.msk.bf16.vlgmr.msra.gmra.mxu2 %vm982_vm12, %v1083_v33  ;;  %v3073_v46 = vpop.eup %3072 }
 0x3fb   : > { %3074 = vrcp.f32 %v1045_v43  ;;  %1252 = vmatpush.bf16.xpose.msra.mxu2 %v1243_v21  ;;  %v1068_v51 = vmul.f32 %v3073_v46, %v3629_v45 }
 0x3fc   : > { %v1073_v48 = vpack.c.bf16 %v1065_v41, %v1065_v41 }
 0x3fd   : > { %v1076_v55 = vpack.c.bf16 %v1068_v51, %v1068_v51 }
 0x3fe   : > { %v1106_v42 = vunpack.c.l.b16 %v1073_v48 }
 0x3ff   : > { %v1132_v50 = vunpack.c.l.b16 %v1076_v55 }
 0x400   : > { %v1108_v28 = vpack.c.b16 %v1107_v49, %v1106_v42 }
 0x401   : > { %v3075_v53 = vpop.eup %3074 }
 0x402   : > { %v1067_v37 = vmul.f32 %v3075_v53, %v3641_v56  ;;  %2882 = vmatmul.msk.bf16.vlgmr.msrb.gmra.mxu3 %vm982_vm12, %v1108_v28 }
 0x404   : > { %v1075_v57 = vpack.c.bf16 %v1067_v37, %v1067_v37 }
 0x406   : > { %v1131_v59 = vunpack.c.l.b16 %v1075_v57 }
 0x408   : > { %v1133_v60 = vpack.c.b16 %v1132_v50, %v1131_v59 }
 0x40a   : > { %2883 = vmatmul.msk.bf16.vlgmr.msrb.gmra.mxu1 %vm982_vm12, %v1133_v60 }
 0x412   : > { %2885 = vmatmul.msk.bf16.vlgmr.msra.gmra.mxu3 %vm872_vm11, %v1188_v14 }
 0x421   : > { %v1051_v62 = vpop.xlane.xlu2 %1050 }
 0x422   : > { %3076 = vrcp.f32 %v1051_v62 }
 0x428   : > { %v3077_v0 = vpop.eup %3076 }
 0x429   : > { %v1054_v45 = vpop.xlane.xlu1 %1053  ;;  %v1212_v63 = vpop.permute.xlu2 %1211  ;;  %v1069_v56 = vmul.f32 %v3077_v0, %v3647_v2 }
 0x42a   : > { %3078 = vrcp.f32 %v1054_v45  ;;  %2886 = vmatmul.msk.bf16.vlgmr.msra.gmra.mxu1 %vm872_vm11, %v1212_v63 }
 0x42b   : > { %v1077_v3 = vpack.c.bf16 %v1069_v56, %v1069_v56 }
 0x42d   : > { %v1156_v12 = vunpack.c.l.b16 %v1077_v3 }
 0x430   : > { %v3079_v1 = vpop.eup %3078 }
 0x431   : > { %v1070_v4 = vmul.f32 %v3079_v1, %v3651_v5  ;;  %v1260_v7 = vpop.permute.xlu2 %1259 }
 0x433   : > { %v1078_v10 = vpack.c.bf16 %v1070_v4, %v1070_v4 }
 0x435   : > { %v1157_v11 = vunpack.c.l.b16 %v1078_v10 }
 0x437   : > { %v1158_v14 = vpack.c.b16 %v1157_v11, %v1156_v12 }
 0x439   : > { %v1531_v40 = vpop.permute.xlu2 %1530  ;;  %2884 = vmatmul.msk.bf16.vlgmr.msrb.gmra.mxu2 %vm982_vm12, %v1158_v14 }
 0x43a   : > { %v1536_v15 = vsel %vm872_vm11, %v1531_v40, 0 }
 0x43b   : > { %1545 = vmatpush.bf16.xpose.msrb.mxu0 %v1536_v15 }
 0x441   : > { %v1262_v35 = vpop.permute.xlu1 %1261 }
 0x442   : > { %v1267_v17 = vsel %vm872_vm11, %v1262_v35, 0 }
 0x443   : > { %1276 = vmatpush.bf16.xpose.msrb.mxu3 %v1267_v17 }
 0x449   : > { %2887 = vmatmul.msk.bf16.vlgmr.msra.gmra.mxu2 %vm872_vm11, %v1236_v61 }
 0x44a   : > { %2888 = vmatmul.msk.bf16.vlgmr.msrb.gmra.mxu3 %vm872_vm11, %v1260_v7 }
 0x47d   : > { %v1099_v2 = vpop.f32.mrf.mxu2 }
 0x47e   : > { %1179 = vst.msk [vmem:[#allocation2] sm:$0xff] %vm872_vm11, %v1099_v2 }
 0x485   : > { %v1101_v5 = vpop.f32.mrf.mxu2  ;;  %v1124_v18 = vpop.f32.mrf.mxu3 }
 0x486   : > { %1180 = vst.msk [vmem:[#allocation2 + $0x8] sm:$0xff] %vm872_vm11, %v1101_v5 }
 0x487   : > { %1181 = vst.msk [vmem:[#allocation2 + $0x10] sm:$0xff] %vm872_vm11, %v1124_v18  ;;  %v1149_v19 = vpop.f32.mrf.mxu1 }
 0x488   : > { %1183 = vst.msk [vmem:[#allocation2 + $0x20] sm:$0xff] %vm872_vm11, %v1149_v19 }
 0x48d   : > { %v1126_v22 = vpop.f32.mrf.mxu3 }
 0x48e   : > { %1182 = vst.msk [vmem:[#allocation2 + $0x18] sm:$0xff] %vm872_vm11, %v1126_v22 }
 0x48f   : > { %v1151_v23 = vpop.f32.mrf.mxu1 }
 0x490   : > { %1184 = vst.msk [vmem:[#allocation2 + $0x28] sm:$0xff] %vm872_vm11, %v1151_v23 }
 0x495   : > { %v1206_v26 = vpop.f32.mrf.mxu3 }
 0x496   : > { %v1207_v27 = vadd.f32 %v1206_v26, %v843_v24 }
 0x498   : > { %v3691_v29 = vadd.f32 %v1207_v27, %v3538_v38 }
 0x49a   : > { %v1291_v30 = vsel %vm982_vm12, %v3691_v29, -inf }
 0x49b   : > { %1292 = vmax.xlane.f32.xlu1 %v1291_v30 }
 0x49d   : > { %v1208_v39 = vpop.f32.mrf.mxu3 }
 0x49e   : > { %v1209_v32 = vadd.f32 %v1208_v39, %v844_v31 }
 0x4a0   : > { %v1284_v33 = vadd.f32 %v1209_v32, %v3551_v47 }
 0x4a2   : > { %v1294_v34 = vsel %vm982_vm12, %v1284_v33, -inf }
 0x4a3   : > { %1295 = vmax.xlane.f32.xlu0 %v1294_v34 }
 0x4a7   : > { %v1230_v21 = vpop.f32.mrf.mxu1 }
 0x4a8   : > { %v1231_v36 = vadd.f32 %v1230_v21, %v843_v24 }
 0x4aa   : > { %v1285_v41 = vadd.f32 %v1231_v36, %v3558_v54 }
 0x4ac   : > { %v1297_v43 = vsel %vm982_vm12, %v1285_v41, -inf }
 0x4ad   : > { %1298 = vmax.xlane.f32.xlu0 %v1297_v43 }
 0x4af   : > { %v1232_v46 = vpop.f32.mrf.mxu1 }
 0x4b0   : > { %v1233_v48 = vadd.f32 %v1232_v46, %v844_v31 }
 0x4b2   : > { %v3703_v49 = vadd.f32 %v1233_v48, %v3568_v58 }
 0x4b4   : > { %v1300_v51 = vsel %vm982_vm12, %v3703_v49, -inf }
 0x4b5   : > { %1301 = vmax.xlane.f32.xlu2 %v1300_v51 }
 0x4bc   : > { %v1174_v42 = vpop.f32.mrf.mxu2 }
 0x4bd   : > { %1185 = vst.msk [vmem:[#allocation2 + $0x30] sm:$0xff] %vm872_vm11, %v1174_v42 }
 0x4c4   : > { %v1176_v28 = vpop.f32.mrf.mxu2 }
 0x4c5   : > { %1186 = vst.msk [vmem:[#allocation2 + $0x38] sm:$0xff] %vm872_vm11, %v1176_v28 }
 0x4cc   : > { %v1254_v53 = vpop.f32.mrf.mxu2 }
 0x4cd   : > { %v1255_v55 = vadd.f32 %v1254_v53, %v843_v24  ;;  %v1278_v37 = vpop.f32.mrf.mxu3 }
 0x4ce   : > { %v1279_v57 = vadd.f32 %v1278_v37, %v843_v24 }
 0x4cf   : > { %v3710_v50 = vadd.f32 %v1255_v55, %v3575_v8 }
 0x4d0   : > { %v1289_v59 = vadd.f32 %v1279_v57, %v3599_v6 }
 0x4d1   : > { %v1303_v60 = vsel %vm982_vm12, %v3710_v50, -inf }
 0x4d2   : > { %1304 = vmax.xlane.f32.xlu2 %v1303_v60  ;;  %v1309_v61 = vsel %vm982_vm12, %v1289_v59, -inf }
 0x4d3   : > { %1310 = vmax.xlane.f32.xlu1 %v1309_v61 }
 0x4d4   : > { %v1256_v62 = vpop.f32.mrf.mxu2 }
 0x4d5   : > { %v1257_v45 = vadd.f32 %v1256_v62, %v844_v31  ;;  %v1280_v63 = vpop.f32.mrf.mxu3 }
 0x4d6   : > { %v1281_v0 = vadd.f32 %v1280_v63, %v844_v31 }
 0x4d7   : > { %v1288_v56 = vadd.f32 %v1257_v45, %v3585_v25 }
 0x4d8   : > { %v1290_v1 = vadd.f32 %v1281_v0, %v3609_v13 }
 0x4d9   : > { %v1306_v3 = vsel %vm982_vm12, %v1288_v56, -inf }
 0x4da   : > { %v1312_v4 = vsel %vm982_vm12, %v1290_v1, -inf }
 0x4db   : > { %1307 = vmax.xlane.f32.xlu1 %v1306_v3  ;;  %1313 = vmax.xlane.f32.xlu0 %v1312_v4 }
 0x4ea   : > { %1417 = vrot.lane.b32.xlu2 %v3508_v9, %s3254_s29 }
 0x4ef   : > { %1442 = vrot.lane.b32.xlu0 %v3512_v16, %s3254_s29 }
 0x4f2   : > { %1528 = vrot.lane.b32.xlu2 %v3504_v44, %s3255_s30 }
 0x4f4   : > { %1392 = vrot.lane.b32.xlu1 %v3504_v44, %s3254_s29 }
 0x4fa   : > { %1578 = vrot.lane.b32.xlu2 %v3512_v16, %s3253_s23 }
 0x502   : > { %1554 = vrot.lane.b32.xlu2 %v3508_v9, %s3253_s23 }
 0x50a   : > { %1467 = vrot.lane.b32.xlu2 %v3518_v52, %s3254_s29 }
 0x50e   : > { %v1293_v12 = vpop.xlane.xlu1 %1292 }
 0x50f   : > { %v1315_v15 = vsub.f32 %v3691_v29, %v1293_v12 }
 0x511   : > { %v1323_v5 = vmul.f32 1.442695, %v1315_v15 }
 0x516   : > { %v1296_v7 = vpop.xlane.xlu0 %1295 }
 0x517   : > { %v1316_v10 = vsub.f32 %v1284_v33, %v1296_v7 }
 0x519   : > { %v1325_v11 = vmul.f32 1.442695, %v1316_v10 }
 0x51b   : > { %3080 = vpow2.f32 %v1325_v11 }
 0x520   : > { %v1299_v14 = vpop.xlane.xlu0 %1298 }
 0x521   : > { %v3730_v40 = vpop.eup %3080  ;;  %v1317_v35 = vsub.f32 %v1285_v41, %v1299_v14 }
 0x522   : > { %v1342_v17 = vsel %vm982_vm12, %v3730_v40, 0.0 }
 0x523   : > { %v1327_v2 = vmul.f32 1.442695, %v1317_v35  ;;  %1343 = vadd.xlane.f32.xlu1 %v1342_v17 }
 0x525   : > { %3082 = vpow2.f32 %v1327_v2 }
 0x526   : > { %3084 = vpow2.f32 %v1323_v5 }
 0x528   : > { %v1302_v24 = vpop.xlane.xlu2 %1301 }
 0x529   : > { %v1318_v30 = vsub.f32 %v3703_v49, %v1302_v24 }
 0x52b   : > { %v3735_v18 = vpop.eup %3082  ;;  %v1329_v39 = vmul.f32 1.442695, %v1318_v30 }
 0x52c   : > { %v1345_v19 = vsel %vm982_vm12, %v3735_v18, 0.0  ;;  %v3739_v22 = vpop.eup %3084 }
 0x52d   : > { %1346 = vadd.xlane.f32.xlu1 %v1345_v19  ;;  %v1339_v23 = vsel %vm982_vm12, %v3739_v22, 0.0 }
 0x533   : > { %1340 = vadd.xlane.f32.xlu2 %v1339_v23 }
 0x545   : > { %v1305_v26 = vpop.xlane.xlu2 %1304 }
 0x546   : > { %v1311_v27 = vpop.xlane.xlu1 %1310  ;;  %v1319_v43 = vsub.f32 %v3710_v50, %v1305_v26 }
 0x547   : > { %v1321_v29 = vsub.f32 %v1289_v59, %v1311_v27 }
 0x548   : > { %v1331_v49 = vmul.f32 1.442695, %v1319_v43 }
 0x549   : > { %v1335_v31 = vmul.f32 1.442695, %v1321_v29 }
 0x54b   : > { %3086 = vpow2.f32 %v1335_v31 }
 0x54c   : > { %3088 = vpow2.f32 %v1329_v39 }
 0x54d   : > { %v1418_v32 = vpop.permute.xlu2 %1417 }
 0x54e   : > { %v1308_v33 = vpop.xlane.xlu1 %1307  ;;  %1430 = vmatpush.bf16.msrb.mxu1 %v1418_v32  ;;  %v1314_v34 = vpop.xlane.xlu0 %1313 }
 0x54f   : > { %v1320_v21 = vsub.f32 %v1288_v56, %v1308_v33  ;;  %v1322_v36 = vsub.f32 %v1290_v1, %v1314_v34 }
 0x551   : > { %v3744_v41 = vpop.eup %3086  ;;  %v1333_v46 = vmul.f32 1.442695, %v1320_v21  ;;  %v1337_v48 = vmul.f32 1.442695, %v1322_v36 }
 0x552   : > { %v1357_v51 = vsel %vm982_vm12, %v3744_v41, 0.0  ;;  %v3750_v28 = vpop.eup %3088 }
 0x553   : > { %3090 = vpow2.f32 %v1333_v46  ;;  %1358 = vadd.xlane.f32.xlu0 %v1357_v51  ;;  %v1348_v57 = vsel %vm982_vm12, %v3750_v28, 0.0 }
 0x554   : > { %3092 = vpow2.f32 %v1337_v48 }
 0x555   : > { %v1529_v42 = vpop.permute.xlu2 %1528  ;;  %3094 = vpow2.f32 %v1331_v49 }
 0x556   : > { %2893 = vmatmul.msk.bf16.vlgmr.msrb.gmra.mxu0 %vm872_vm11, %v1529_v42 }
 0x559   : > { %v3752_v53 = vpop.eup %3090 }
 0x55a   : > { %v3754_v55 = vpop.eup %3092  ;;  %v1354_v37 = vsel %vm982_vm12, %v3752_v53, 0.0 }
 0x55b   : > { %1355 = vadd.xlane.f32.xlu2 %v1354_v37  ;;  %1349 = vadd.xlane.f32.xlu0 %v1348_v57  ;;  %v1360_v50 = vsel %vm982_vm12, %v3754_v55, 0.0  ;;  %v3762_v60 = vpop.eup %3094 }
 0x55c   : > { %1361 = vadd.xlane.f32.xlu1 %v1360_v50  ;;  %v1351_v45 = vsel %vm982_vm12, %v3762_v60, 0.0 }
 0x55d   : > { %v1579_v59 = vpop.permute.xlu2 %1578 }
 0x55e   : > { %v1584_v62 = vsel %vm872_vm11, %v1579_v59, 0 }
 0x561   : > { %v1443_v61 = vpop.permute.xlu0 %1442 }
 0x562   : > { %1455 = vmatpush.bf16.msrb.mxu2 %v1443_v61 }
 0x563   : > { %1352 = vadd.xlane.f32.xlu0 %v1351_v45 }
 0x565   : > { %v1555_v63 = vpop.permute.xlu2 %1554 }
 0x566   : > { %1593 = vmatpush.bf16.xpose.msra.mxu2 %v1584_v62  ;;  %v1560_v0 = vsel %vm872_vm11, %v1555_v63, 0  ;;  %v1393_v56 = vpop.permute.xlu1 %1392 }
 0x567   : > { %1405 = vmatpush.bf16.msra.mxu3 %v1393_v56  ;;  %1569 = vmatpush.bf16.xpose.msra.mxu1 %v1560_v0 }
 0x56d   : > { %v1468_v1 = vpop.permute.xlu2 %1467 }
 0x56e   : > { %1480 = vmatpush.bf16.msrb.mxu3 %v1468_v1 }
 0x573   : > { %1576 = vrot.lane.b32.xlu2 %v3512_v16, %s3255_s30 }
 0x575   : > { %1602 = vrot.lane.b32.xlu1 %v3518_v52, %s3253_s23  ;;  %s3261_s23 = smov 8  }
 0x577   : > { %1552 = vrot.lane.b32.xlu0 %v3508_v9, %s3255_s30 }
 0x57b   : > { %1600 = vrot.lane.b32.xlu2 %v3518_v52, %s3255_s30 }
 0x57d   : > { %1733 = vrot.lane.b32.xlu1 %v3504_v44, %s3256_s16 }
 0x596   : > { %v1344_v3 = vpop.xlane.xlu1 %1343 }
 0x597   : > { %3096 = vrcp.f32 %v1344_v3 }
 0x59d   : > { %v3097_v7 = vpop.eup %3096 }
 0x59e   : > { %v1372_v10 = vmul.f32 %v3097_v7, %v3730_v40 }
 0x5a0   : > { %v1380_v12 = vpack.c.bf16 %v1372_v10, %v1372_v10  ;;  %v1347_v19 = vpop.xlane.xlu1 %1346 }
 0x5a2   : > { %v1390_v35 = vunpack.c.l.b16 %v1380_v12 }
 0x5a6   : > { %v1341_v4 = vpop.xlane.xlu2 %1340 }
 0x5a7   : > { %3098 = vrcp.f32 %v1341_v4 }
 0x5ad   : > { %v3099_v11 = vpop.eup %3098 }
 0x5ae   : > { %v1371_v14 = vmul.f32 %v3099_v11, %v3739_v22  ;;  %v3784_v22 = vld [vmem:[%s4314_s1 + $0x20] sm:$0xff] }
 0x5b0   : > { %v1379_v15 = vpack.c.bf16 %v1371_v14, %v1371_v14 }
 0x5b2   : > { %v1389_v17 = vunpack.c.l.b16 %v1379_v15 }
 0x5b4   : > { %v1391_v2 = vpack.c.b16 %v1390_v35, %v1389_v17 }
 0x5b6   : > { %2889 = vmatmul.msk.bf16.vlgmr.msra.gmra.mxu3 %vm982_vm12, %v1391_v2 }
 0x5c6   : > { %v1359_v5 = vpop.xlane.xlu0 %1358 }
 0x5c7   : > { %3100 = vrcp.f32 %v1359_v5 }
 0x5c8   : > { %3102 = vrcp.f32 %v1347_v19 }
 0x5cd   : > { %v3101_v27 = vpop.eup %3100 }
 0x5ce   : > { %v1356_v23 = vpop.xlane.xlu2 %1355  ;;  %v1350_v24 = vpop.xlane.xlu0 %1349  ;;  %v1377_v29 = vmul.f32 %v3101_v27, %v3744_v41 }
 0x5cf   : > { %3104 = vrcp.f32 %v1356_v23  ;;  %v1362_v26 = vpop.xlane.xlu1 %1361  ;;  %v3103_v40 = vpop.eup %3102 }
 0x5d0   : > { %3106 = vrcp.f32 %v1362_v26  ;;  %v1373_v31 = vmul.f32 %v3103_v40, %v3735_v18  ;;  %v1385_v43 = vpack.c.bf16 %v1377_v29, %v1377_v29  ;;  %v3796_v18 = vld [vmem:[%s4314_s1 + $0x28] sm:$0xff] }
 0x5d1   : > { %3108 = vrcp.f32 %v1350_v24 }
 0x5d2   : > { %v1381_v48 = vpack.c.bf16 %v1373_v31, %v1373_v31  ;;  %v1464_v37 = vunpack.c.l.b16 %v1385_v43 }
 0x5d3   : > { %v1547_v30 = vpop.f32.mrf.mxu0 }
 0x5d4   : > { %v1548_v39 = vadd.f32 %v1547_v30, %v3784_v22 }
 0x5d5   : > { %v3105_v32 = vpop.eup %3104 }
 0x5d6   : > { %v3107_v33 = vpop.eup %3106  ;;  %v1353_v34 = vpop.xlane.xlu0 %1352  ;;  %v1624_v21 = vadd.f32 %v1548_v39, %v3538_v38  ;;  %v1376_v42 = vmul.f32 %v3105_v32, %v3752_v53 }
 0x5d7   : > { %v3109_v36 = vpop.eup %3108  ;;  %v1378_v46 = vmul.f32 %v3107_v33, %v3754_v55  ;;  %3110 = vrcp.f32 %v1353_v34  ;;  %v1414_v55 = vunpack.c.l.b16 %v1381_v48  ;;  %v1577_v7 = vpop.permute.xlu2 %1576 }
 0x5d8   : > { %v1374_v51 = vmul.f32 %v3109_v36, %v3750_v28  ;;  %v1632_v41 = vsel %vm982_vm12, %v1624_v21, -inf  ;;  %v1384_v45 = vpack.c.bf16 %v1376_v42, %v1376_v42 }
 0x5d9   : > { %v1386_v49 = vpack.c.bf16 %v1378_v46, %v1378_v46  ;;  %1633 = vmax.xlane.f32.xlu2 %v1632_v41 }
 0x5da   : > { %v1382_v38 = vpack.c.bf16 %v1374_v51, %v1374_v51  ;;  %v1440_v3 = vunpack.c.l.b16 %v1384_v45 }
 0x5db   : > { %v1465_v57 = vunpack.c.l.b16 %v1386_v49  ;;  %v1549_v50 = vpop.f32.mrf.mxu0 }
 0x5dc   : > { %v1415_v59 = vunpack.c.l.b16 %v1382_v38  ;;  %v1550_v61 = vadd.f32 %v1549_v50, %v3796_v18 }
 0x5dd   : > { %v3111_v28 = vpop.eup %3110  ;;  %v1466_v62 = vpack.c.b16 %v1465_v57, %v1464_v37 }
 0x5de   : > { %v1416_v63 = vpack.c.b16 %v1415_v59, %v1414_v55  ;;  %v1375_v0 = vmul.f32 %v3111_v28, %v3762_v60  ;;  %v1625_v56 = vadd.f32 %v1550_v61, %v3551_v47 }
 0x5df   : > { %2892 = vmatmul.msk.bf16.vlgmr.msrb.gmra.mxu3 %vm982_vm12, %v1466_v62  ;;  %v1601_v60 = vpop.permute.xlu2 %1600 }
 0x5e0   : > { %v1383_v1 = vpack.c.bf16 %v1375_v0, %v1375_v0  ;;  %2890 = vmatmul.msk.bf16.vlgmr.msrb.gmra.mxu1 %vm982_vm12, %v1416_v63  ;;  %v1635_v53 = vsel %vm982_vm12, %v1625_v56, -inf }
 0x5e1   : > { %1636 = vmax.xlane.f32.xlu0 %v1635_v53 }
 0x5e2   : > { %v1439_v4 = vunpack.c.l.b16 %v1383_v1 }
 0x5e4   : > { %v1441_v10 = vpack.c.b16 %v1440_v3, %v1439_v4 }
 0x5e6   : > { %2891 = vmatmul.msk.bf16.vlgmr.msrb.gmra.mxu2 %vm982_vm12, %v1441_v10 }
 0x5e7   : > { %v1603_v11 = vpop.permute.xlu1 %1602 }
 0x5e8   : > { %v1608_v12 = vsel %vm872_vm11, %v1603_v11, 0 }
 0x5e9   : > { %1617 = vmatpush.bf16.xpose.msra.mxu3 %v1608_v12  ;;  %v1553_v47 = vpop.permute.xlu0 %1552 }
 0x5ef   : > { %v1734_v14 = vpop.permute.xlu1 %1733 }
 0x5f0   : > { %2894 = vmatmul.msk.bf16.vlgmr.msra.gmra.mxu1 %vm872_vm11, %v1553_v47  ;;  %2896 = vmatmul.msk.bf16.vlgmr.msra.gmra.mxu3 %vm872_vm11, %v1601_v60 }
 0x5f1   : > { %1746 = vmatpush.bf16.msra.mxu0 %v1734_v14 }
 0x5f6   : > { %2895 = vmatmul.msk.bf16.vlgmr.msra.gmra.mxu2 %vm872_vm11, %v1577_v7 }
 0x639   : > { %v3810_v2 = vpop.f32.mrf.mxu3 }
 0x641   : > { %v3813_v27 = vpop.f32.mrf.mxu3 }
 0x64c   : > { %v1634_v15 = vpop.xlane.xlu2 %1633 }
 0x64d   : > { %v1656_v35 = vsub.f32 %v1624_v21, %v1634_v15 }
 0x64f   : > { %v1664_v17 = vmul.f32 1.442695, %v1656_v35 }
 0x651   : > { %3112 = vpow2.f32 %v1664_v17 }
 0x654   : > { %v1637_v5 = vpop.xlane.xlu0 %1636 }
 0x655   : > { %v1657_v19 = vsub.f32 %v1625_v56, %v1637_v5 }
 0x657   : > { %v3113_v23 = vpop.eup %3112  ;;  %v1666_v24 = vmul.f32 1.442695, %v1657_v19 }
 0x658   : > { %v1680_v26 = vsel %vm982_vm12, %v3113_v23, 0.0 }
 0x659   : > { %3114 = vpow2.f32 %v1666_v24  ;;  %1681 = vadd.xlane.f32.xlu0 %v1680_v26 }
 0x65d   : > { %v3815_v40 = vpop.f32.mrf.mxu1 }
 0x65f   : > { %v3115_v29 = vpop.eup %3114 }
 0x660   : > { %v1683_v30 = vsel %vm982_vm12, %v3115_v29, 0.0 }
 0x661   : > { %1684 = vadd.xlane.f32.xlu2 %v1683_v30 }
 0x662   : > { %v3818_v31 = vpop.f32.mrf.mxu3 }
 0x665   : > { %v3820_v39 = vpop.f32.mrf.mxu1 }
 0x669   : > { %v3822_v32 = vpop.f32.mrf.mxu2 }
 0x66a   : > { %v3824_v33 = vpop.f32.mrf.mxu3 }
 0x66d   : > { %v1571_v34 = vpop.f32.mrf.mxu1 }
 0x66e   : > { %v1572_v21 = vadd.f32 %v1571_v34, %v3784_v22 }
 0x670   : > { %v1626_v36 = vadd.f32 %v1572_v21, %v3558_v54 }
 0x671   : > { %v3828_v43 = vpop.f32.mrf.mxu2 }
 0x672   : > { %v1638_v46 = vsel %vm982_vm12, %v1626_v36, -inf }
 0x673   : > { %1639 = vmax.xlane.f32.xlu1 %v1638_v46  ;;  %v1619_v48 = vpop.f32.mrf.mxu3 }
 0x674   : > { %v1620_v38 = vadd.f32 %v1619_v48, %v3784_v22 }
 0x675   : > { %v1573_v51 = vpop.f32.mrf.mxu1 }
 0x676   : > { %v1574_v41 = vadd.f32 %v1573_v51, %v3796_v18  ;;  %v1630_v55 = vadd.f32 %v1620_v38, %v3599_v6 }
 0x678   : > { %v1627_v49 = vadd.f32 %v1574_v41, %v3568_v58  ;;  %v1650_v62 = vsel %vm982_vm12, %v1630_v55, -inf }
 0x679   : > { %v1595_v42 = vpop.f32.mrf.mxu2 }
 0x67a   : > { %v1641_v37 = vsel %vm982_vm12, %v1627_v49, -inf  ;;  %v1596_v28 = vadd.f32 %v1595_v42, %v3784_v22 }
 0x67b   : > { %1642 = vmax.xlane.f32.xlu2 %v1641_v37  ;;  %v1621_v57 = vpop.f32.mrf.mxu3 }
 0x67c   : > { %v1622_v54 = vadd.f32 %v1621_v57, %v3796_v18  ;;  %v1628_v0 = vadd.f32 %v1596_v28, %v3575_v8 }
 0x67e   : > { %v1631_v50 = vadd.f32 %v1622_v54, %v3609_v13  ;;  %v1644_v6 = vsel %vm982_vm12, %v1628_v0, -inf }
 0x680   : > { %v1653_v59 = vsel %vm982_vm12, %v1631_v50, -inf }
 0x681   : > { %1654 = vmax.xlane.f32.xlu1 %v1653_v59  ;;  %v1597_v61 = vpop.f32.mrf.mxu2 }
 0x682   : > { %v1598_v58 = vadd.f32 %v1597_v61, %v3796_v18 }
 0x683   : > { %1651 = vmax.xlane.f32.xlu2 %v1650_v62 }
 0x684   : > { %v1629_v45 = vadd.f32 %v1598_v58, %v3585_v25 }
 0x686   : > { %v1647_v63 = vsel %vm982_vm12, %v1629_v45, -inf }
 0x687   : > { %1648 = vmax.xlane.f32.xlu0 %v1647_v63 }
 0x68b   : > { %1645 = vmax.xlane.f32.xlu2 %v1644_v6 }
 0x69a   : > { %1869 = vrot.lane.b32.xlu1 %v3504_v44, %s3257_s27 }
 0x69b   : > { %1871 = vrot.lane.b32.xlu0 %v3504_v44, %s3258_s28 }
 0x6a2   : > { %1783 = vrot.lane.b32.xlu1 %v3512_v16, %s3256_s16 }
 0x6a3   : > { %1758 = vrot.lane.b32.xlu2 %v3508_v9, %s3256_s16 }
 0x6ab   : > { %1895 = vrot.lane.b32.xlu2 %v3508_v9, %s3258_s28 }
 0x6b3   : > { %1919 = vrot.lane.b32.xlu2 %v3512_v16, %s3258_s28 }
 0x6bb   : > { %1893 = vrot.lane.b32.xlu2 %v3508_v9, %s3257_s27 }
 0x6c3   : > { %1808 = vrot.lane.b32.xlu2 %v3518_v52, %s3256_s16  ;;  %s3259_s16 = smov 40  }
 0x6cc   : > { %v1682_v8 = vpop.xlane.xlu0 %1681 }
 0x6cd   : > { %3116 = vrcp.f32 %v1682_v8 }
 0x6d3   : > { %v3117_v13 = vpop.eup %3116 }
 0x6d4   : > { %v1685_v25 = vpop.xlane.xlu2 %1684  ;;  %v1712_v22 = vmul.f32 %v3117_v13, %v3113_v23 }
 0x6d5   : > { %3118 = vrcp.f32 %v1685_v25 }
 0x6d6   : > { %v1720_v56 = vpack.c.bf16 %v1712_v22, %v1712_v22 }
 0x6d8   : > { %v1730_v3 = vunpack.c.l.b16 %v1720_v56 }
 0x6db   : > { %v3119_v18 = vpop.eup %3118 }
 0x6dc   : > { %v1713_v1 = vmul.f32 %v3119_v18, %v3115_v29 }
 0x6de   : > { %v1721_v53 = vpack.c.bf16 %v1713_v1, %v1713_v1 }
 0x6e0   : > { %v1731_v4 = vunpack.c.l.b16 %v1721_v53 }
 0x6e2   : > { %v1732_v7 = vpack.c.b16 %v1731_v4, %v1730_v3 }
 0x6e4   : > { %2897 = vmatmul.msk.bf16.vlgmr.msra.gmra.mxu0 %vm982_vm12, %v1732_v7 }
 0x6e6   : > { %v1640_v10 = vpop.xlane.xlu1 %1639 }
 0x6e7   : > { %v1658_v11 = vsub.f32 %v1626_v36, %v1640_v10 }
 0x6e9   : > { %v1668_v12 = vmul.f32 1.442695, %v1658_v11 }
 0x6eb   : > { %3120 = vpow2.f32 %v1668_v12 }
 0x6ee   : > { %v1643_v60 = vpop.xlane.xlu2 %1642 }
 0x6ef   : > { %v1659_v47 = vsub.f32 %v1627_v49, %v1643_v60 }
 0x6f1   : > { %v3121_v14 = vpop.eup %3120  ;;  %v1670_v15 = vmul.f32 1.442695, %v1659_v47 }
 0x6f2   : > { %v1686_v35 = vsel %vm982_vm12, %v3121_v14, 0.0 }
 0x6f3   : > { %3122 = vpow2.f32 %v1670_v15  ;;  %1687 = vadd.xlane.f32.xlu0 %v1686_v35 }
 0x6f4   : > { %v1655_v17 = vpop.xlane.xlu1 %1654 }
 0x6f5   : > { %v1663_v5 = vsub.f32 %v1631_v50, %v1655_v17 }
 0x6f6   : > { %v1652_v19 = vpop.xlane.xlu2 %1651 }
 0x6f7   : > { %v1678_v23 = vmul.f32 1.442695, %v1663_v5  ;;  %v1662_v24 = vsub.f32 %v1630_v55, %v1652_v19 }
 0x6f9   : > { %v3123_v26 = vpop.eup %3122  ;;  %3124 = vpow2.f32 %v1678_v23  ;;  %v1676_v29 = vmul.f32 1.442695, %v1662_v24 }
 0x6fa   : > { %v1689_v30 = vsel %vm982_vm12, %v3123_v26, 0.0  ;;  %v1649_v34 = vpop.xlane.xlu0 %1648 }
 0x6fb   : > { %3126 = vpow2.f32 %v1676_v29  ;;  %1690 = vadd.xlane.f32.xlu2 %v1689_v30  ;;  %v1661_v21 = vsub.f32 %v1629_v45, %v1649_v34 }
 0x6fd   : > { %v1674_v36 = vmul.f32 1.442695, %v1661_v21 }
 0x6fe   : > { %v1646_v46 = vpop.xlane.xlu2 %1645 }
 0x6ff   : > { %v3125_v48 = vpop.eup %3124  ;;  %3128 = vpow2.f32 %v1674_v36  ;;  %v1660_v51 = vsub.f32 %v1628_v0, %v1646_v46 }
 0x700   : > { %v1701_v41 = vsel %vm982_vm12, %v3125_v48, 0.0 }
 0x701   : > { %v3127_v49 = vpop.eup %3126  ;;  %v1672_v42 = vmul.f32 1.442695, %v1660_v51  ;;  %1702 = vadd.xlane.f32.xlu1 %v1701_v41 }
 0x702   : > { %v1698_v38 = vsel %vm982_vm12, %v3127_v49, 0.0 }
 0x703   : > { %3130 = vpow2.f32 %v1672_v42  ;;  %1699 = vadd.xlane.f32.xlu0 %v1698_v38 }
 0x705   : > { %v3129_v37 = vpop.eup %3128 }
 0x706   : > { %v1759_v57 = vpop.permute.xlu2 %1758  ;;  %v1695_v54 = vsel %vm982_vm12, %v3129_v37, 0.0 }
 0x707   : > { %1771 = vmatpush.bf16.msrb.mxu1 %v1759_v57  ;;  %1696 = vadd.xlane.f32.xlu2 %v1695_v54 }
 0x709   : > { %v3131_v50 = vpop.eup %3130 }
 0x70a   : > { %v1692_v55 = vsel %vm982_vm12, %v3131_v50, 0.0 }
 0x70b   : > { %1693 = vadd.xlane.f32.xlu0 %v1692_v55  ;;  %v3208_v55 = vld [vmem:[%s4315_s2] sm:$0xff] }
 0x70c   : > { %v1870_v59 = vpop.permute.xlu1 %1869 }
 0x70d   : > { %v1872_v61 = vpop.permute.xlu0 %1871 }
 0x70e   : > { %v1896_v28 = vpop.permute.xlu2 %1895  ;;  %v1877_v58 = vsel %vm872_vm11, %v1872_v61, 0 }
 0x70f   : > { %v1901_v62 = vsel %vm872_vm11, %v1896_v28, 0  ;;  %1886 = vmatpush.bf16.xpose.msrb.mxu0 %v1877_v58  ;;  %v848_v58 = vld [vmem:[%s4314_s1 + $0x38] sm:$0xff] }
 0x710   : > { %1910 = vmatpush.bf16.xpose.msra.mxu1 %v1901_v62 }
 0x714   : > { %v1784_v45 = vpop.permute.xlu1 %1783 }
 0x715   : > { %1796 = vmatpush.bf16.msrb.mxu2 %v1784_v45 }
 0x716   : > { %v1920_v63 = vpop.permute.xlu2 %1919  ;;  %2901 = vmatmul.msk.bf16.vlgmr.msrb.gmra.mxu0 %vm872_vm11, %v1870_v59 }
 0x717   : > { %v1925_v0 = vsel %vm872_vm11, %v1920_v63, 0 }
 0x719   : > { %1934 = vmatpush.bf16.xpose.msra.mxu2 %v1925_v0  ;;  %v3209_v0 = vld [vmem:[%s4315_s2 + $0x8] sm:$0xff] }
 0x71a   : > { %1941 = vrot.lane.b32.xlu1 %v3518_v52, %s3257_s27 }
 0x71e   : > { %v1894_v6 = vpop.permute.xlu2 %1893 }
 0x71f   : > { %1943 = vrot.lane.b32.xlu0 %v3518_v52, %s3258_s28  ;;  %1917 = vrot.lane.b32.xlu2 %v3512_v16, %s3257_s27 }
 0x726   : > { %v1809_v8 = vpop.permute.xlu2 %1808 }
 0x727   : > { %1821 = vmatpush.bf16.msrb.mxu3 %v1809_v8 }
 0x766   : > { %v1688_v25 = vpop.xlane.xlu0 %1687 }
 0x767   : > { %3132 = vrcp.f32 %v1688_v25 }
 0x76d   : > { %v3133_v22 = vpop.eup %3132 }
 0x76e   : > { %v1691_v13 = vpop.xlane.xlu2 %1690  ;;  %v1714_v18 = vmul.f32 %v3133_v22, %v3121_v14 }
 0x76f   : > { %3134 = vrcp.f32 %v1691_v13 }
 0x770   : > { %v1722_v53 = vpack.c.bf16 %v1714_v18, %v1714_v18 }
 0x772   : > { %v1755_v10 = vunpack.c.l.b16 %v1722_v53 }
 0x774   : > { %v1703_v56 = vpop.xlane.xlu1 %1702 }
 0x775   : > { %v3135_v1 = vpop.eup %3134  ;;  %3136 = vrcp.f32 %v1703_v56 }
 0x776   : > { %v1715_v3 = vmul.f32 %v3135_v1, %v3123_v26  ;;  %v1700_v4 = vpop.xlane.xlu0 %1699  ;;  %v3880_v26 = vpop.f32.mrf.mxu0 }
 0x777   : > { %3138 = vrcp.f32 %v1700_v4 }
 0x778   : > { %v1723_v7 = vpack.c.bf16 %v1715_v3, %v1715_v3 }
 0x77a   : > { %v1756_v11 = vunpack.c.l.b16 %v1723_v7  ;;  %v1697_v12 = vpop.xlane.xlu2 %1696 }
 0x77b   : > { %v3137_v60 = vpop.eup %3136  ;;  %3140 = vrcp.f32 %v1697_v12 }
 0x77c   : > { %v1757_v47 = vpack.c.b16 %v1756_v11, %v1755_v10  ;;  %v1719_v15 = vmul.f32 %v3137_v60, %v3125_v48 }
 0x77d   : > { %v3139_v35 = vpop.eup %3138 }
 0x77e   : > { %v1727_v17 = vpack.c.bf16 %v1719_v15, %v1719_v15  ;;  %v1718_v5 = vmul.f32 %v3139_v35, %v3127_v49  ;;  %2898 = vmatmul.msk.bf16.vlgmr.msrb.gmra.mxu1 %vm982_vm12, %v1757_v47  ;;  %v1694_v14 = vpop.xlane.xlu0 %1693  ;;  %v3883_v49 = vpop.f32.mrf.mxu0  ;;  %v3210_v35 = vld [vmem:[%s4315_s2 + $0x10] sm:$0xff] }
 0x77f   : > { %3142 = vrcp.f32 %v1694_v14 }
 0x780   : > { %v1806_v19 = vunpack.c.l.b16 %v1727_v17  ;;  %v1726_v23 = vpack.c.bf16 %v1718_v5, %v1718_v5 }
 0x781   : > { %v3141_v24 = vpop.eup %3140 }
 0x782   : > { %v1805_v29 = vunpack.c.l.b16 %v1726_v23  ;;  %v1717_v30 = vmul.f32 %v3141_v24, %v3129_v37  ;;  %v3890_v37 = vld [vmem:[%s4314_s1 + $0x30] sm:$0xff]  ;;  %v1918_v63 = vpop.permute.xlu2 %1917 }
 0x784   : > { %v1807_v34 = vpack.c.b16 %v1806_v19, %v1805_v29  ;;  %v1725_v36 = vpack.c.bf16 %v1717_v30, %v1717_v30 }
 0x785   : > { %v3143_v21 = vpop.eup %3142 }
 0x786   : > { %v1716_v46 = vmul.f32 %v3143_v21, %v3131_v50  ;;  %2900 = vmatmul.msk.bf16.vlgmr.msrb.gmra.mxu3 %vm982_vm12, %v1807_v34  ;;  %v1781_v51 = vunpack.c.l.b16 %v1725_v36  ;;  %v3211_v34 = vld [vmem:[%s4315_s2 + $0x18] sm:$0xff] }
 0x788   : > { %v1724_v48 = vpack.c.bf16 %v1716_v46, %v1716_v46 }
 0x78a   : > { %v1780_v41 = vunpack.c.l.b16 %v1724_v48 }
 0x78c   : > { %v1782_v42 = vpack.c.b16 %v1781_v51, %v1780_v41  ;;  %v1942_v28 = vpop.permute.xlu1 %1941  ;;  %v3212_v51 = vld [vmem:[%s4315_s2 + $0x38] sm:$0xff] }
 0x78e   : > { %2899 = vmatmul.msk.bf16.vlgmr.msrb.gmra.mxu2 %vm982_vm12, %v1782_v42  ;;  %2902 = vmatmul.msk.bf16.vlgmr.msra.gmra.mxu1 %vm872_vm11, %v1894_v6 }
 0x791   : > { %v1944_v38 = vpop.permute.xlu0 %1943 }
 0x792   : > { %v1949_v57 = vsel %vm872_vm11, %v1944_v38, 0 }
 0x793   : > { %1958 = vmatpush.bf16.xpose.msra.mxu3 %v1949_v57  ;;  %v1888_v54 = vpop.f32.mrf.mxu0 }
 0x794   : > { %v1889_v50 = vadd.f32 %v1888_v54, %v3890_v37 }
 0x796   : > { %v1965_v59 = vadd.f32 %v3208_v55, %v1889_v50  ;;  %v3213_v50 = vld [vmem:[%s4315_s2 + $0x30] sm:$0xff] }
 0x798   : > { %v1973_v61 = vsel %vm982_vm12, %v1965_v59, -inf }
 0x799   : > { %1974 = vmax.xlane.f32.xlu2 %v1973_v61 }
 0x79a   : > { %2904 = vmatmul.msk.bf16.vlgmr.msra.gmra.mxu3 %vm872_vm11, %v1942_v28 }
 0x79b   : > { %v1890_v62 = vpop.f32.mrf.mxu0 }
 0x79c   : > { %v1891_v45 = vadd.f32 %v1890_v62, %v848_v58 }
 0x79e   : > { %2903 = vmatmul.msk.bf16.vlgmr.msra.gmra.mxu2 %vm872_vm11, %v1918_v63  ;;  %v1966_v6 = vadd.f32 %v3209_v0, %v1891_v45  ;;  %v3215_v45 = vld [vmem:[%s4315_s2 + $0x20] sm:$0xff] }
 0x7a0   : > { %v1976_v8 = vsel %vm982_vm12, %v1966_v6, -inf }
 0x7a1   : > { %1977 = vmax.xlane.f32.xlu0 %v1976_v8 }
 0x7fb   : > { %v3907_v25 = vpop.f32.mrf.mxu1 }
 0x803   : > { %v3909_v13 = vpop.f32.mrf.mxu1 }
 0x809   : > { %v3911_v22 = vpop.f32.mrf.mxu3 }
 0x80b   : > { %v1912_v3 = vpop.f32.mrf.mxu1 }
 0x80c   : > { %v1975_v18 = vpop.xlane.xlu2 %1974  ;;  %v1913_v60 = vadd.f32 %v1912_v3, %v3890_v37 }
 0x80d   : > { %v1997_v56 = vsub.f32 %v1965_v59, %v1975_v18  ;;  %v3214_v59 = vld [vmem:[%s4315_s2 + $0x28] sm:$0xff] }
 0x80e   : > { %v1967_v17 = vadd.f32 %v3210_v35, %v1913_v60 }
 0x80f   : > { %v2005_v1 = vmul.f32 1.442695, %v1997_v56 }
 0x810   : > { %v1979_v24 = vsel %vm982_vm12, %v1967_v17, -inf }
 0x811   : > { %3144 = vpow2.f32 %v2005_v1  ;;  %v3913_v53 = vpop.f32.mrf.mxu2  ;;  %v3915_v7 = vpop.f32.mrf.mxu3 }
 0x813   : > { %v1914_v5 = vpop.f32.mrf.mxu1 }
 0x814   : > { %v1978_v4 = vpop.xlane.xlu0 %1977  ;;  %v1915_v23 = vadd.f32 %v1914_v5, %v848_v58 }
 0x815   : > { %v1998_v10 = vsub.f32 %v1966_v6, %v1978_v4 }
 0x816   : > { %v1968_v21 = vadd.f32 %v3211_v34, %v1915_v23 }
 0x817   : > { %v3917_v11 = vpop.eup %3144  ;;  %v2007_v12 = vmul.f32 1.442695, %v1998_v10 }
 0x818   : > { %v2021_v47 = vsel %vm982_vm12, %v3917_v11, 0.0  ;;  %v1982_v42 = vsel %vm982_vm12, %v1968_v21, -inf }
 0x819   : > { %3146 = vpow2.f32 %v2007_v12  ;;  %v3922_v15 = vpop.f32.mrf.mxu2  ;;  %2022 = vadd.xlane.f32.xlu1 %v2021_v47 }
 0x81d   : > { %v1960_v14 = vpop.f32.mrf.mxu3 }
 0x81e   : > { %v1961_v48 = vadd.f32 %v1960_v14, %v3890_v37 }
 0x81f   : > { %v3927_v19 = vpop.eup %3146 }
 0x820   : > { %v2024_v29 = vsel %vm982_vm12, %v3927_v19, 0.0  ;;  %v1971_v55 = vadd.f32 %v3213_v50, %v1961_v48 }
 0x821   : > { %v1936_v30 = vpop.f32.mrf.mxu2  ;;  %1980 = vmax.xlane.f32.xlu1 %v1979_v24  ;;  %2025 = vadd.xlane.f32.xlu2 %v2024_v29 }
 0x822   : > { %v1937_v28 = vadd.f32 %v1936_v30, %v3890_v37  ;;  %v1991_v62 = vsel %vm982_vm12, %v1971_v55, -inf }
 0x824   : > { %v1969_v63 = vadd.f32 %v3215_v45, %v1937_v28 }
 0x825   : > { %v1962_v36 = vpop.f32.mrf.mxu3 }
 0x826   : > { %v1963_v46 = vadd.f32 %v1962_v36, %v848_v58  ;;  %v1985_v0 = vsel %vm982_vm12, %v1969_v63, -inf }
 0x828   : > { %v3939_v41 = vadd.f32 %v3212_v51, %v1963_v46 }
 0x829   : > { %v1938_v38 = vpop.f32.mrf.mxu2  ;;  %1983 = vmax.xlane.f32.xlu2 %v1982_v42 }
 0x82a   : > { %v1939_v57 = vadd.f32 %v1938_v38, %v848_v58  ;;  %v1994_v54 = vsel %vm982_vm12, %v3939_v41, -inf }
 0x82b   : > { %1995 = vmax.xlane.f32.xlu0 %v1994_v54 }
 0x82c   : > { %v3950_v61 = vadd.f32 %v3214_v59, %v1939_v57 }
 0x82e   : > { %v1988_v58 = vsel %vm982_vm12, %v3950_v61, -inf }
 0x831   : > { %1992 = vmax.xlane.f32.xlu2 %v1991_v62 }
 0x833   : > { %1989 = vmax.xlane.f32.xlu0 %v1988_v58 }
 0x839   : > { %1986 = vmax.xlane.f32.xlu2 %v1985_v0 }
 0x847   : > { %2074 = vrot.lane.b32.xlu0 %v3504_v44, %s3259_s16 }
 0x88c   : > { %v2023_v37 = vpop.xlane.xlu1 %2022 }
 0x894   : > { %v1981_v6 = vpop.xlane.xlu1 %1980  ;;  %v2026_v8 = vpop.xlane.xlu2 %2025 }
 0x895   : > { %v1999_v18 = vsub.f32 %v1967_v17, %v1981_v6 }
 0x897   : > { %v2009_v56 = vmul.f32 1.442695, %v1999_v18 }
 0x899   : > { %3148 = vpow2.f32 %v2009_v56 }
 0x89c   : > { %v1984_v1 = vpop.xlane.xlu2 %1983 }
 0x89d   : > { %v2000_v3 = vsub.f32 %v1968_v21, %v1984_v1 }
 0x89e   : > { %v1996_v35 = vpop.xlane.xlu0 %1995 }
 0x89f   : > { %v3962_v4 = vpop.eup %3148  ;;  %v2011_v10 = vmul.f32 1.442695, %v2000_v3  ;;  %v2004_v58 = vsub.f32 %v3939_v41, %v1996_v35 }
 0x8a0   : > { %v2027_v12 = vsel %vm982_vm12, %v3962_v4, 0.0 }
 0x8a1   : > { %3150 = vpow2.f32 %v2011_v10  ;;  %2028 = vadd.xlane.f32.xlu1 %v2027_v12  ;;  %v2019_v45 = vmul.f32 1.442695, %v2004_v58 }
 0x8a2   : > { %3152 = vrcp.f32 %v2026_v8 }
 0x8a3   : > { %3154 = vrcp.f32 %v2023_v37 }
 0x8a4   : > { %v1993_v60 = vpop.xlane.xlu2 %1992 }
 0x8a5   : > { %v2003_v47 = vsub.f32 %v1971_v55, %v1993_v60 }
 0x8a6   : > { %v1990_v48 = vpop.xlane.xlu0 %1989 }
 0x8a7   : > { %v3151_v44 = vpop.eup %3150  ;;  %v2017_v5 = vmul.f32 1.442695, %v2003_v47 }
 0x8a8   : > { %v2030_v17 = vsel %vm982_vm12, %v3151_v44, 0.0  ;;  %v3153_v14 = vpop.eup %3152 }
 0x8a9   : > { %3156 = vpow2.f32 %v2017_v5  ;;  %2031 = vadd.xlane.f32.xlu2 %v2030_v17  ;;  %v3155_v29 = vpop.eup %3154  ;;  %v2054_v34 = vmul.f32 %v3153_v14, %v3927_v19 }
 0x8aa   : > { %v2053_v46 = vmul.f32 %v3155_v29, %v3917_v11  ;;  %v2002_v11 = vsub.f32 %v3950_v61, %v1990_v48 }
 0x8ab   : > { %v2062_v51 = vpack.c.bf16 %v2054_v34, %v2054_v34 }
 0x8ac   : > { %v1987_v23 = vpop.xlane.xlu2 %1986  ;;  %v2061_v42 = vpack.c.bf16 %v2053_v46, %v2053_v46  ;;  %v2015_v59 = vmul.f32 1.442695, %v2002_v11 }
 0x8ad   : > { %v2001_v24 = vsub.f32 %v1969_v63, %v1987_v23  ;;  %v2072_v57 = vunpack.c.l.b16 %v2062_v51 }
 0x8ae   : > { %v2071_v50 = vunpack.c.l.b16 %v2061_v42 }
 0x8af   : > { %v3967_v30 = vpop.eup %3156  ;;  %v2013_v21 = vmul.f32 1.442695, %v2001_v24 }
 0x8b0   : > { %v2039_v36 = vsel %vm982_vm12, %v3967_v30, 0.0  ;;  %v2073_v19 = vpack.c.b16 %v2072_v57, %v2071_v50  ;;  %v2971_v50 = vld [vmem:[%s4320_s7] sm:$0xff] }
 0x8b1   : > { %3158 = vpow2.f32 %v2013_v21  ;;  %2040 = vadd.xlane.f32.xlu0 %v2039_v36 }
 0x8b2   : > { %3160 = vpow2.f32 %v2015_v59 }
 0x8b3   : > { %3162 = vpow2.f32 %v2019_v45 }
 0x8b7   : > { %v3973_v38 = vpop.eup %3158 }
 0x8b8   : > { %v2033_v54 = vsel %vm982_vm12, %v3973_v38, 0.0  ;;  %v3161_v28 = vpop.eup %3160 }
 0x8b9   : > { %v2075_v55 = vpop.permute.xlu0 %2074  ;;  %2034 = vadd.xlane.f32.xlu1 %v2033_v54  ;;  %v2036_v62 = vsel %vm982_vm12, %v3161_v28, 0.0  ;;  %v2972_v54 = vld [vmem:[%s4320_s7 + $0x8] sm:$0xff] }
 0x8ba   : > { %2087 = vmatpush.bf16.msra.mxu0 %v2075_v55 }
 0x8bd   : > { %2905 = vmatmul.msk.bf16.vlgmr.msra.gmra.mxu0 %vm982_vm12, %v2073_v19 }
 0x8be   : > { %2256 = vmatpush.bf16.msrb.mxu0 %v2972_v54 }
 0x8c1   : > { %2124 = vrot.lane.b32.xlu2 %v3512_v16, %s3259_s16  ;;  %v3987_v16 = vpop.eup %3162 }
 0x8c2   : > { %2257 = vmatpush.bf16.msrb.mxu0 %v2971_v50 }
 0x8c5   : > { %1836 = vrot.lane.b32.xlu0 %v3880_v26, %s3260_s17  ;;  %v2042_v26 = vsel %vm982_vm12, %v3987_v16, 0.0 }
 0x8d2   : > { %2099 = vrot.lane.b32.xlu1 %v3508_v9, %s3259_s16 }
 0x8ea   : > { %2037 = vadd.xlane.f32.xlu2 %v2036_v62 }
 0x8fc   : > { %2043 = vadd.xlane.f32.xlu1 %v2042_v26 }
 0x902   : > { %2149 = vrot.lane.b32.xlu2 %v3518_v52, %s3259_s16 }
 0x90a   : > { %1495 = vrot.lane.b32.xlu2 %v3810_v2, %s3261_s23 }
 0x912   : > { %1497 = vrot.lane.b32.xlu2 %v3813_v27, %s3261_s23 }
 0x914   : > { %v2029_v52 = vpop.xlane.xlu1 %2028 }
 0x915   : > { %1501 = vrot.lane.b32.xlu1 %v3820_v39, %s3261_s23 }
 0x91a   : > { %1838 = vrot.lane.b32.xlu2 %v3883_v49, %s3260_s17 }
 0x91c   : > { %v2032_v9 = vpop.xlane.xlu2 %2031 }
 0x91d   : > { %1844 = vrot.lane.b32.xlu1 %v3913_v53, %s3260_s17  ;;  %3164 = vrcp.f32 %v2032_v9 }
 0x91e   : > { %3166 = vrcp.f32 %v2029_v52 }
 0x923   : > { %v3165_v61 = vpop.eup %3164 }
 0x924   : > { %v2125_v41 = vpop.permute.xlu2 %2124  ;;  %v3167_v2 = vpop.eup %3166  ;;  %v2056_v63 = vmul.f32 %v3165_v61, %v3151_v44 }
 0x925   : > { %2137 = vmatpush.bf16.msrb.mxu2 %v2125_v41  ;;  %v2055_v27 = vmul.f32 %v3167_v2, %v3962_v4  ;;  %v2041_v47 = vpop.xlane.xlu0 %2040  ;;  %v3216_v41 = vld [vmem:[%s3369_s25] sm:$0xff] }
 0x926   : > { %v2064_v49 = vpack.c.bf16 %v2056_v63, %v2056_v63 }
 0x927   : > { %v2063_v37 = vpack.c.bf16 %v2055_v27, %v2055_v27 }
 0x928   : > { %v2097_v6 = vunpack.c.l.b16 %v2064_v49 }
 0x929   : > { %v2096_v53 = vunpack.c.l.b16 %v2063_v37 }
 0x92b   : > { %v2098_v56 = vpack.c.b16 %v2097_v6, %v2096_v53  ;;  %v3217_v6 = vld [vmem:[%s3369_s25 + $0x8] sm:$0xff] }
 0x92c   : > { %v2035_v39 = vpop.xlane.xlu1 %2034 }
 0x92d   : > { %3168 = vrcp.f32 %v2035_v39 }
 0x933   : > { %v3169_v3 = vpop.eup %3168 }
 0x937   : > { %v1837_v17 = vpop.permute.xlu0 %1836 }
 0x93a   : > { %v2089_v0 = vpop.f32.mrf.mxu0 }
 0x93b   : > { %2177 = vrot.lane.b32.xlu2 %v2089_v0, %s3262_s24 }
 0x942   : > { %v2091_v8 = vpop.f32.mrf.mxu0 }
 0x943   : > { %1499 = vrot.lane.b32.xlu2 %v3815_v40, %s3261_s23  ;;  %2179 = vrot.lane.b32.xlu0 %v2091_v8, %s3262_s24  ;;  %v2057_v40 = vmul.f32 %v3169_v3, %v3973_v38 }
 0x944   : > { %v2100_v18 = vpop.permute.xlu1 %2099 }
 0x945   : > { %2112 = vmatpush.bf16.msrb.mxu1 %v2100_v18  ;;  %v2065_v10 = vpack.c.bf16 %v2057_v40, %v2057_v40 }
 0x947   : > { %v2121_v35 = vunpack.c.l.b16 %v2065_v10 }
 0x948   : > { %2906 = vmatmul.msk.bf16.vlgmr.msrb.gmra.mxu1 %vm982_vm12, %v2098_v56 }
 0x94b   : > { %1842 = vrot.lane.b32.xlu2 %v3909_v13, %s3260_s17  ;;  %1840 = vrot.lane.b32.xlu0 %v3907_v25, %s3260_s17 }
 0x95d   : > { %v2038_v1 = vpop.xlane.xlu2 %2037 }
 0x95e   : > { %3170 = vrcp.f32 %v2038_v1 }
 0x95f   : > { %3172 = vrcp.f32 %v2041_v47 }
 0x964   : > { %v3171_v4 = vpop.eup %3170 }
 0x965   : > { %v2058_v12 = vmul.f32 %v3171_v4, %v3161_v28  ;;  %v2150_v60 = vpop.permute.xlu2 %2149  ;;  %v3173_v23 = vpop.eup %3172 }
 0x966   : > { %2162 = vmatpush.bf16.msrb.mxu3 %v2150_v60  ;;  %v2059_v24 = vmul.f32 %v3173_v23, %v3967_v30  ;;  %v3218_v23 = vld [vmem:[%s3369_s25 + $0x10] sm:$0xff] }
 0x967   : > { %v2066_v44 = vpack.c.bf16 %v2058_v12, %v2058_v12 }
 0x968   : > { %v2067_v21 = vpack.c.bf16 %v2059_v24, %v2059_v24 }
 0x969   : > { %v2122_v5 = vunpack.c.l.b16 %v2066_v44 }
 0x96a   : > { %v2146_v48 = vunpack.c.l.b16 %v2067_v21 }
 0x96b   : > { %v2123_v13 = vpack.c.b16 %v2122_v5, %v2121_v35 }
 0x96d   : > { %2907 = vmatmul.msk.bf16.vlgmr.msrb.gmra.mxu2 %vm982_vm12, %v2123_v13  ;;  %v1496_v25 = vpop.permute.xlu2 %1495 }
 0x96e   : > { %1520 = vst.msk [vmem:[#allocation2] sm:$0xff] %vm1519_vm13, %v1496_v25 }
 0x96f   : > { %v2044_v14 = vpop.xlane.xlu1 %2043  ;;  %1861 = vst.msk [vmem:[#allocation2] sm:$0xff] %vm1860_vm14, %v1837_v17 }
 0x970   : > { %3174 = vrcp.f32 %v2044_v14 }
 0x975   : > { %v1498_v29 = vpop.permute.xlu2 %1497 }
 0x976   : > { %v3175_v34 = vpop.eup %3174  ;;  %1521 = vst.msk [vmem:[#allocation2 + $0x8] sm:$0xff] %vm1519_vm13, %v1498_v29 }
 0x977   : > { %v2060_v36 = vmul.f32 %v3175_v34, %v3987_v16 }
 0x979   : > { %v2068_v46 = vpack.c.bf16 %v2060_v36, %v2060_v36 }
 0x97b   : > { %v2147_v51 = vunpack.c.l.b16 %v2068_v46 }
 0x97d   : > { %v2148_v42 = vpack.c.b16 %v2147_v51, %v2146_v48  ;;  %v1839_v38 = vpop.permute.xlu2 %1838  ;;  %v3219_v48 = vld [vmem:[%s3369_s25 + $0x18] sm:$0xff] }
 0x97e   : > { %1862 = vst.msk [vmem:[#allocation2 + $0x8] sm:$0xff] %vm1860_vm14, %v1839_v38 }
 0x97f   : > { %2908 = vmatmul.msk.bf16.vlgmr.msrb.gmra.mxu3 %vm982_vm12, %v2148_v42 }
 0x987   : > { %v1502_v57 = vpop.permute.xlu1 %1501 }
 0x988   : > { %1523 = vst.msk [vmem:[#allocation2 + $0x18] sm:$0xff] %vm1519_vm13, %v1502_v57 }
 0x98f   : > { %v1845_v27 = vpop.permute.xlu1 %1844 }
 0x995   : > { %v2178_v30 = vpop.permute.xlu2 %2177 }
 0x996   : > { %2202 = vst.msk [vmem:[#allocation2] sm:$0xff] %vm2201_vm15, %v2178_v30 }
 0x99d   : > { %v1500_v55 = vpop.permute.xlu2 %1499  ;;  %v2210_v28 = vld [vmem:[#allocation2] sm:$0xff] }
 0x99e   : > { %1522 = vst.msk [vmem:[#allocation2 + $0x10] sm:$0xff] %vm1519_vm13, %v1500_v55 }
 0x9a5   : > { %v1843_v19 = vpop.permute.xlu2 %1842 }
 0x9a6   : > { %1864 = vst.msk [vmem:[#allocation2 + $0x18] sm:$0xff] %vm1860_vm14, %v1843_v19 }
 0x9b5   : > { %v2180_v11 = vpop.permute.xlu0 %2179 }
 0x9b6   : > { %2203 = vst.msk [vmem:[#allocation2 + $0x8] sm:$0xff] %vm2201_vm15, %v2180_v11  ;;  %v3220_v11 = vld [vmem:[%s3369_s25 + $0x20] sm:$0xff] }
 0x9bd   : > { %v1841_v59 = vpop.permute.xlu0 %1840  ;;  %v2211_v62 = vld [vmem:[#allocation2 + $0x8] sm:$0xff] }
 0x9be   : > { %1863 = vst.msk [vmem:[#allocation2 + $0x10] sm:$0xff] %vm1860_vm14, %v1841_v59  ;;  %v2218_v58 = vpack.c.bf16 %v2211_v62, %v2210_v28 }
 0x9c0   : > { %2917 = vmatmul.msk.bf16.vlgmr.msrb.gmra.mxu0 %vm570_vm0, %v2218_v58 }
 0x9c5   : > { %v2114_v45 = vpop.f32.mrf.mxu1 }
 0x9c6   : > { %2181 = vrot.lane.b32.xlu0 %v2114_v45, %s3262_s24 }
 0x9cd   : > { %v2116_v16 = vpop.f32.mrf.mxu1 }
 0x9ce   : > { %2183 = vrot.lane.b32.xlu2 %v2116_v16, %s3262_s24  ;;  %1503 = vrot.lane.b32.xlu0 %v3822_v32, %s3261_s23  ;;  %v3221_v16 = vld [vmem:[%s3369_s25 + $0x28] sm:$0xff] }
 0x9d6   : > { %1505 = vrot.lane.b32.xlu2 %v3828_v43, %s3261_s23  ;;  %1846 = vrot.lane.b32.xlu0 %v3922_v15, %s3260_s17 }
 0x9de   : > { %1507 = vrot.lane.b32.xlu0 %v3818_v31, %s3261_s23 }
 0x9e6   : > { %1850 = vrot.lane.b32.xlu0 %v3915_v7, %s3260_s17 }
 0x9f0   : > { %v2139_v26 = vpop.f32.mrf.mxu2 }
 0x9f1   : > { %2185 = vrot.lane.b32.xlu2 %v2139_v26, %s3262_s24 }
 0x9f8   : > { %v2141_v9 = vpop.f32.mrf.mxu2 }
 0x9f9   : > { %2187 = vrot.lane.b32.xlu1 %v2141_v9, %s3262_s24  ;;  %1509 = vrot.lane.b32.xlu2 %v3824_v33, %s3261_s23  ;;  %v4061_v33 = vld [vmem:[%s4321_s8] ss:$0 sm:$0xff] }
 0xa01   : > { %1848 = vrot.lane.b32.xlu1 %v3911_v22, %s3260_s17 }
 0xa02   : > { %v2164_v32 = vpop.f32.mrf.mxu3 }
 0xa03   : > { %2189 = vrot.lane.b32.xlu2 %v2164_v32, %s3262_s24 }
 0xa0a   : > { %v2166_v31 = vpop.f32.mrf.mxu3 }
 0xa0b   : > { %2191 = vrot.lane.b32.xlu1 %v2166_v31, %s3262_s24 }
 0xa28   : > { %v2184_v43 = vpop.permute.xlu2 %2183 }
 0xa29   : > { %2205 = vst.msk [vmem:[#allocation2 + $0x18] sm:$0xff] %vm2201_vm15, %v2184_v43 }
 0xa30   : > { %v1506_v7 = vpop.permute.xlu2 %1505  ;;  %v2213_v0 = vld [vmem:[#allocation2 + $0x18] sm:$0xff] }
 0xa31   : > { %1525 = vst.msk [vmem:[#allocation2 + $0x28] sm:$0xff] %vm1519_vm13, %v1506_v7 }
 0xa38   : > { %v2182_v15 = vpop.permute.xlu0 %2181 }
 0xa39   : > { %2204 = vst.msk [vmem:[#allocation2 + $0x10] sm:$0xff] %vm2201_vm15, %v2182_v15  ;;  %v3222_v15 = vld [vmem:[%s3369_s25 + $0x30] sm:$0xff] }
 0xa3d   : > { %v2259_v22 = vpop.f32.mrf.mxu0 }
 0xa3e   : > { %v2279_v52 = vadd.f32 %v3216_v41, %v2259_v22 }
 0xa40   : > { %v4065_v61 = vadd.f32 %v4061_v33, %v2279_v52  ;;  %v1504_v2 = vpop.permute.xlu0 %1503  ;;  %v2212_v63 = vld [vmem:[#allocation2 + $0x10] sm:$0xff] }
 0xa41   : > { %1524 = vst.msk [vmem:[#allocation2 + $0x20] sm:$0xff] %vm1519_vm13, %v1504_v2  ;;  %v2219_v39 = vpack.c.bf16 %v2213_v0, %v2212_v63  ;;  %v3223_v63 = vld [vmem:[%s3369_s25 + $0x38] sm:$0xff]  ;;  %s4278_s25 = scalar_lea.vmem %s4328_s15, %s2967_s22 }
 0xa42   : > { %1865 = vst.msk [vmem:[#allocation2 + $0x20] sm:$0xff] %vm1860_vm14, %v1845_v27  ;;  %v2301_v49 = vsel %vm570_vm0, %v4065_v61, 0.0 }
 0xa43   : > { %2302 = vadd.xlane.f32.xlu0 %v2301_v49  ;;  %2918 = vmatmul.msk.bf16.gmra.mxu0 %vm570_vm0, %v2219_v39 }
 0xa45   : > { %v2261_v37 = vpop.f32.mrf.mxu0 }
 0xa46   : > { %v2280_v8 = vadd.f32 %v3217_v6, %v2261_v37 }
 0xa48   : > { %v4074_v53 = vadd.f32 %v4061_v33, %v2280_v8  ;;  %v1847_v18 = vpop.permute.xlu0 %1846 }
 0xa49   : > { %1866 = vst.msk [vmem:[#allocation2 + $0x28] sm:$0xff] %vm1860_vm14, %v1847_v18 }
 0xa4a   : > { %v2304_v56 = vsel %vm570_vm0, %v4074_v53, 0.0 }
 0xa4b   : > { %2305 = vadd.xlane.f32.xlu2 %v2304_v56  ;;  %v2186_v1 = vpop.permute.xlu2 %2185 }
 0xa4c   : > { %2206 = vst.msk [vmem:[#allocation2 + $0x20] sm:$0xff] %vm2201_vm15, %v2186_v1 }
 0xa50   : > { %v1508_v3 = vpop.permute.xlu0 %1507 }
 0xa51   : > { %1526 = vst.msk [vmem:[#allocation2 + $0x30] sm:$0xff] %vm1519_vm13, %v1508_v3 }
 0xa53   : > { %v1510_v40 = vpop.permute.xlu2 %1509  ;;  %v2214_v60 = vld [vmem:[#allocation2 + $0x20] sm:$0xff] }
 0xa54   : > { %1527 = vst.msk [vmem:[#allocation2 + $0x38] sm:$0xff] %vm1519_vm13, %v1510_v40 }
 0xa58   : > { %v1851_v4 = vpop.permute.xlu0 %1850 }
 0xa59   : > { %1868 = vst.msk [vmem:[#allocation2 + $0x38] sm:$0xff] %vm1860_vm14, %v1851_v4 }
 0xa5d   : > { %v2190_v44 = vpop.permute.xlu2 %2189 }
 0xa6b   : > { %v2188_v10 = vpop.permute.xlu1 %2187 }
 0xa6c   : > { %2207 = vst.msk [vmem:[#allocation2 + $0x28] sm:$0xff] %vm2201_vm15, %v2188_v10 }
 0xa73   : > { %v1849_v12 = vpop.permute.xlu1 %1848  ;;  %v2215_v47 = vld [vmem:[#allocation2 + $0x28] sm:$0xff] }
 0xa74   : > { %1867 = vst.msk [vmem:[#allocation2 + $0x30] sm:$0xff] %vm1860_vm14, %v1849_v12  ;;  %v2220_v35 = vpack.c.bf16 %v2215_v47, %v2214_v60  ;;  %v2974_v47 = vld [vmem:[%s4324_s11 + $0x8] sm:$0xff] }
 0xa75   : > { %2208 = vst.msk [vmem:[#allocation2 + $0x30] sm:$0xff] %vm2201_vm15, %v2190_v44  ;;  %2541 = vmatpush.bf16.msra.mxu1 %v2974_v47 }
 0xa76   : > { %2919 = vmatmul.msk.bf16.gmra.mxu0 %vm570_vm0, %v2220_v35 }
 0xa7c   : > { %v2216_v13 = vld [vmem:[#allocation2 + $0x30] sm:$0xff] }
 0xa7d   : > { %v2192_v5 = vpop.permute.xlu1 %2191 }
 0xa7e   : > { %2209 = vst.msk [vmem:[#allocation2 + $0x38] sm:$0xff] %vm2201_vm15, %v2192_v5 }
 0xa85   : > { %v2217_v25 = vld [vmem:[#allocation2 + $0x38] sm:$0xff] }
 0xa86   : > { %v2221_v17 = vpack.c.bf16 %v2217_v25, %v2216_v13  ;;  %v2973_v13 = vld [vmem:[%s4324_s11] sm:$0xff] }
 0xa87   : > { %2542 = vmatpush.bf16.msra.mxu1 %v2973_v13 }
 0xa88   : > { %2920 = vmatmul.msk.bf16.gmra.mxu0 %vm570_vm0, %v2221_v17 }
 0xab6   : > { %v2303_v21 = vpop.xlane.xlu0 %2302 }
 0xab7   : > { %v2325_v46 = vmul.f32 %v2303_v21, %v3385_v20 }
 0xab9   : > { %v4101_v38 = vsub.f32 %v4065_v61, %v2325_v46 }
 0xabb   : > { %v2341_v30 = vmul.f32 %v4101_v38, %v4101_v38 }
 0xabd   : > { %v2349_v54 = vsel %vm570_vm0, %v2341_v30, 0.0 }
 0xabe   : > { %v2306_v50 = vpop.xlane.xlu2 %2305 }
 0xabf   : > { %v2326_v19 = vmul.f32 %v2306_v50, %v3385_v20 }
 0xac0   : > { %v2264_v14 = vpop.f32.mrf.mxu0 }
 0xac1   : > { %v2281_v24 = vadd.f32 %v3218_v23, %v2264_v14  ;;  %v4114_v62 = vsub.f32 %v4074_v53, %v2326_v19 }
 0xac3   : > { %v4091_v29 = vadd.f32 %v4061_v33, %v2281_v24  ;;  %v2342_v9 = vmul.f32 %v4114_v62, %v4114_v62 }
 0xac5   : > { %v2307_v34 = vsel %vm570_vm0, %v4091_v29, 0.0  ;;  %v2352_v31 = vsel %vm570_vm0, %v2342_v9, 0.0 }
 0xac6   : > { %2308 = vadd.xlane.f32.xlu1 %v2307_v34 }
 0xac8   : > { %v2266_v36 = vpop.f32.mrf.mxu0 }
 0xac9   : > { %v2282_v51 = vadd.f32 %v3219_v48, %v2266_v36 }
 0xacb   : > { %v4098_v42 = vadd.f32 %v4061_v33, %v2282_v51 }
 0xacd   : > { %v2310_v57 = vsel %vm570_vm0, %v4098_v42, 0.0 }
 0xace   : > { %2311 = vadd.xlane.f32.xlu2 %v2310_v57 }
 0xad6   : > { %2350 = vadd.xlane.f32.xlu2 %v2349_v54 }
 0xaf3   : > { %v2269_v55 = vpop.f32.mrf.mxu0 }
 0xaf4   : > { %v2283_v59 = vadd.f32 %v3220_v11, %v2269_v55 }
 0xaf6   : > { %v4111_v28 = vadd.f32 %v4061_v33, %v2283_v59 }
 0xaf8   : > { %v2313_v58 = vsel %vm570_vm0, %v4111_v28, 0.0 }
 0xaf9   : > { %2314 = vadd.xlane.f32.xlu0 %v2313_v58 }
 0xafb   : > { %v2271_v45 = vpop.f32.mrf.mxu0 }
 0xafc   : > { %v2284_v26 = vadd.f32 %v3221_v16, %v2271_v45 }
 0xafe   : > { %v4122_v32 = vadd.f32 %v4061_v33, %v2284_v26 }
 0xb00   : > { %v2316_v43 = vsel %vm570_vm0, %v4122_v32, 0.0 }
 0xb01   : > { %2353 = vadd.xlane.f32.xlu0 %v2352_v31  ;;  %2317 = vadd.xlane.f32.xlu1 %v2316_v43 }
 0xb05   : > { %v2274_v7 = vpop.f32.mrf.mxu0 }
 0xb06   : > { %v2285_v22 = vadd.f32 %v3222_v15, %v2274_v7  ;;  %v4185_v15 = vld [vmem:[%s4322_s9] ss:$0 sm:$0xff] }
 0xb08   : > { %v4129_v41 = vadd.f32 %v4061_v33, %v2285_v22 }
 0xb0a   : > { %v2319_v52 = vsel %vm570_vm0, %v4129_v41, 0.0 }
 0xb0b   : > { %2320 = vadd.xlane.f32.xlu1 %v2319_v52 }
 0xb0d   : > { %v2276_v2 = vpop.f32.mrf.mxu0 }
 0xb0e   : > { %v2286_v0 = vadd.f32 %v3223_v63, %v2276_v2 }
 0xb10   : > { %v4135_v27 = vadd.f32 %v4061_v33, %v2286_v0 }
 0xb12   : > { %v2322_v39 = vsel %vm570_vm0, %v4135_v27, 0.0 }
 0xb13   : > { %2323 = vadd.xlane.f32.xlu2 %v2322_v39  ;;  %v4195_v39 = vld [vmem:[%s4323_s10] ss:$0 sm:$0xff] }
 0xb39   : > { %v2309_v49 = vpop.xlane.xlu1 %2308 }
 0xb3a   : > { %v2327_v37 = vmul.f32 %v2309_v49, %v3385_v20 }
 0xb3c   : > { %v4141_v6 = vsub.f32 %v4091_v29, %v2327_v37 }
 0xb3e   : > { %v2343_v8 = vmul.f32 %v4141_v6, %v4141_v6 }
 0xb40   : > { %v2355_v18 = vsel %vm570_vm0, %v2343_v8, 0.0 }
 0xb41   : > { %v2312_v56 = vpop.xlane.xlu2 %2311  ;;  %2356 = vadd.xlane.f32.xlu0 %v2355_v18 }
 0xb42   : > { %v2328_v33 = vmul.f32 %v2312_v56, %v3385_v20 }
 0xb44   : > { %v4148_v1 = vsub.f32 %v4098_v42, %v2328_v33 }
 0xb46   : > { %v2344_v3 = vmul.f32 %v4148_v1, %v4148_v1 }
 0xb48   : > { %v2358_v40 = vsel %vm570_vm0, %v2344_v3, 0.0 }
 0xb49   : > { %2359 = vadd.xlane.f32.xlu1 %v2358_v40  ;;  %v2351_v4 = vpop.xlane.xlu2 %2350 }
 0xb4a   : > { %v2373_v10 = vmul.f32 %v2351_v4, %v3385_v20 }
 0xb4c   : > { %v2381_v12 = vadd.f32 1e-05, %v2373_v10 }
 0xb4e   : > { %3176 = vrsqrt.f32 %v2381_v12  ;;  %vm2395_vm2 = vweird.f32 %v2381_v12 }
 0xb54   : > { %v3177_v44 = vpop.eup %3176 }
 0xb55   : > { %v2390_v25 = vmul.f32 %v3177_v44, %v2381_v12  ;;  %vm2396_vm1 = vweird.f32 %v3177_v44 }
 0xb56   : > { %vm2397_vm3 = vmor %vm2395_vm2, %vm2396_vm1 }
 0xb57   : > { %v2391_v23 = vmul.f32 %v3177_v44, %v2390_v25 }
 0xb59   : > { %v2392_v51 = vmul.f32 0.5, %v2391_v23 }
 0xb5b   : > { %v2393_v54 = vsub.f32 1.5, %v2392_v51 }
 0xb5d   : > { %v2394_v11 = vmul.f32 %v3177_v44, %v2393_v54 }
 0xb5f   : > { %v2398_v26 = vsel %vm2397_vm3, %v3177_v44, %v2394_v11 }
 0xb60   : > { %v2469_v22 = vmul.f32 %v2398_v26, %v4101_v38 }
 0xb62   : > { %v2480_v49 = vmul.f32 %v4185_v15, %v2469_v22 }
 0xb64   : > { %v2491_v56 = vadd.f32 %v4195_v39, %v2480_v49 }
 0xb6c   : > { %v2315_v60 = vpop.xlane.xlu0 %2314 }
 0xb6d   : > { %v2329_v35 = vmul.f32 %v2315_v60, %v3385_v20 }
 0xb6f   : > { %v4159_v5 = vsub.f32 %v4111_v28, %v2329_v35 }
 0xb71   : > { %v2345_v17 = vmul.f32 %v4159_v5, %v4159_v5 }
 0xb73   : > { %v2361_v14 = vsel %vm570_vm0, %v2345_v17, 0.0 }
 0xb74   : > { %v2318_v24 = vpop.xlane.xlu1 %2317  ;;  %2362 = vadd.xlane.f32.xlu2 %v2361_v14  ;;  %v2354_v34 = vpop.xlane.xlu0 %2353 }
 0xb75   : > { %v2330_v21 = vmul.f32 %v2318_v24, %v3385_v20  ;;  %v2374_v36 = vmul.f32 %v2354_v34, %v3385_v20 }
 0xb77   : > { %v4170_v46 = vsub.f32 %v4122_v32, %v2330_v21  ;;  %v2382_v48 = vadd.f32 1e-05, %v2374_v36 }
 0xb79   : > { %3178 = vrsqrt.f32 %v2382_v48  ;;  %v2346_v57 = vmul.f32 %v4170_v46, %v4170_v46  ;;  %vm2405_vm5 = vweird.f32 %v2382_v48 }
 0xb7b   : > { %v2364_v30 = vsel %vm570_vm0, %v2346_v57, 0.0 }
 0xb7c   : > { %2365 = vadd.xlane.f32.xlu0 %v2364_v30 }
 0xb7e   : > { %v2321_v50 = vpop.xlane.xlu1 %2320 }
 0xb7f   : > { %v3179_v55 = vpop.eup %3178  ;;  %v2331_v19 = vmul.f32 %v2321_v50, %v3385_v20 }
 0xb80   : > { %v2400_v59 = vmul.f32 %v3179_v55, %v2382_v48  ;;  %vm2406_vm4 = vweird.f32 %v3179_v55 }
 0xb81   : > { %v4177_v58 = vsub.f32 %v4129_v41, %v2331_v19  ;;  %vm2407_vm6 = vmor %vm2405_vm5, %vm2406_vm4 }
 0xb82   : > { %v2401_v45 = vmul.f32 %v3179_v55, %v2400_v59 }
 0xb83   : > { %v2347_v16 = vmul.f32 %v4177_v58, %v4177_v58 }
 0xb84   : > { %v2402_v9 = vmul.f32 0.5, %v2401_v45 }
 0xb85   : > { %v2367_v31 = vsel %vm570_vm0, %v2347_v16, 0.0 }
 0xb86   : > { %v2403_v43 = vsub.f32 1.5, %v2402_v9  ;;  %2368 = vadd.xlane.f32.xlu1 %v2367_v31  ;;  %v2324_v7 = vpop.xlane.xlu2 %2323 }
 0xb87   : > { %v2332_v52 = vmul.f32 %v2324_v7, %v3385_v20 }
 0xb88   : > { %v2404_v2 = vmul.f32 %v3179_v55, %v2403_v43  ;;  %v2982_v43 = vld [vmem:[%s4326_s13 + $0x38] sm:$0xff] }
 0xb89   : > { %v4190_v63 = vsub.f32 %v4135_v27, %v2332_v52  ;;  %2708 = vmatpush.bf16.msra.mxu2 %v2982_v43  ;;  %v2981_v52 = vld [vmem:[%s4326_s13 + $0x30] sm:$0xff] }
 0xb8a   : > { %v2408_v0 = vsel %vm2407_vm6, %v3179_v55, %v2404_v2 }
 0xb8b   : > { %v2470_v37 = vmul.f32 %v2408_v0, %v4114_v62  ;;  %v2348_v38 = vmul.f32 %v4190_v63, %v4190_v63 }
 0xb8d   : > { %v2481_v8 = vmul.f32 %v4185_v15, %v2470_v37  ;;  %v2370_v18 = vsel %vm570_vm0, %v2348_v38, 0.0  ;;  %2709 = vmatpush.bf16.msra.mxu2 %v2981_v52 }
 0xb8e   : > { %2371 = vadd.xlane.f32.xlu2 %v2370_v18  ;;  %v2980_v18 = vld [vmem:[%s4326_s13 + $0x28] sm:$0xff] }
 0xb8f   : > { %v2492_v33 = vadd.f32 %v4195_v39, %v2481_v8 }
 0xb91   : > { %v2499_v3 = vpack.c.bf16 %v2492_v33, %v2491_v56  ;;  %2710 = vmatpush.bf16.msra.mxu2 %v2980_v18 }
 0xb93   : > { %2929 = vmatmul.msk.bf16.vlgmr.msra.gmra.mxu1 %vm570_vm0, %v2499_v3 }
 0xbb4   : > { %v2357_v40 = vpop.xlane.xlu0 %2356 }
 0xbb5   : > { %v2375_v4 = vmul.f32 %v2357_v40, %v3385_v20 }
 0xbb7   : > { %v2383_v10 = vadd.f32 1e-05, %v2375_v4  ;;  %v2979_v4 = vld [vmem:[%s4326_s13 + $0x20] sm:$0xff] }
 0xbb8   : > { %2711 = vmatpush.bf16.msra.mxu2 %v2979_v4 }
 0xbb9   : > { %3180 = vrsqrt.f32 %v2383_v10  ;;  %vm2415_vm8 = vweird.f32 %v2383_v10 }
 0xbbc   : > { %v2360_v62 = vpop.xlane.xlu1 %2359 }
 0xbbd   : > { %v2376_v12 = vmul.f32 %v2360_v62, %v3385_v20 }
 0xbbf   : > { %v3181_v60 = vpop.eup %3180  ;;  %v2384_v47 = vadd.f32 1e-05, %v2376_v12 }
 0xbc0   : > { %v2410_v44 = vmul.f32 %v3181_v60, %v2383_v10  ;;  %vm2416_vm7 = vweird.f32 %v3181_v60 }
 0xbc1   : > { %3182 = vrsqrt.f32 %v2384_v47  ;;  %vm2417_vm9 = vmor %vm2415_vm8, %vm2416_vm7  ;;  %vm2425_vm11 = vweird.f32 %v2384_v47 }
 0xbc2   : > { %v2411_v35 = vmul.f32 %v3181_v60, %v2410_v44  ;;  %v2978_v44 = vld [vmem:[%s4326_s13 + $0x18] sm:$0xff] }
 0xbc3   : > { %2712 = vmatpush.bf16.msra.mxu2 %v2978_v44 }
 0xbc4   : > { %v2412_v13 = vmul.f32 0.5, %v2411_v35 }
 0xbc6   : > { %v2413_v25 = vsub.f32 1.5, %v2412_v13 }
 0xbc7   : > { %v3183_v17 = vpop.eup %3182 }
 0xbc8   : > { %v2414_v14 = vmul.f32 %v3181_v60, %v2413_v25  ;;  %v2420_v23 = vmul.f32 %v3183_v17, %v2384_v47  ;;  %vm2426_vm10 = vweird.f32 %v3183_v17 }
 0xbc9   : > { %vm2427_vm12 = vmor %vm2425_vm11, %vm2426_vm10 }
 0xbca   : > { %v2421_v24 = vmul.f32 %v3183_v17, %v2420_v23  ;;  %v2418_v34 = vsel %vm2417_vm9, %v3181_v60, %v2414_v14 }
 0xbcb   : > { %v2471_v48 = vmul.f32 %v2418_v34, %v4141_v6 }
 0xbcc   : > { %v2422_v21 = vmul.f32 0.5, %v2421_v24 }
 0xbcd   : > { %v2482_v54 = vmul.f32 %v4185_v15, %v2471_v48 }
 0xbce   : > { %v2423_v36 = vsub.f32 1.5, %v2422_v21 }
 0xbcf   : > { %v2493_v55 = vadd.f32 %v4195_v39, %v2482_v54 }
 0xbd0   : > { %v2424_v51 = vmul.f32 %v3183_v17, %v2423_v36 }
 0xbd2   : > { %v2428_v57 = vsel %vm2427_vm12, %v3183_v17, %v2424_v51 }
 0xbd3   : > { %v2472_v30 = vmul.f32 %v2428_v57, %v4148_v1 }
 0xbd5   : > { %v2483_v50 = vmul.f32 %v4185_v15, %v2472_v30 }
 0xbd7   : > { %v2494_v19 = vadd.f32 %v4195_v39, %v2483_v50  ;;  %v4249_v50 = vld [vmem:[%s4325_s12] ss:$0 sm:$0xff] }
 0xbd9   : > { %v2500_v11 = vpack.c.bf16 %v2494_v19, %v2493_v55  ;;  %v2975_v55 = vld [vmem:[%s4326_s13] sm:$0xff] }
 0xbdb   : > { %2930 = vmatmul.msk.bf16.gmra.mxu1 %vm570_vm0, %v2500_v11 }
 0xbe7   : > { %v2363_v59 = vpop.xlane.xlu2 %2362 }
 0xbe8   : > { %v2377_v6 = vmul.f32 %v2363_v59, %v3385_v20 }
 0xbea   : > { %v2385_v45 = vadd.f32 1e-05, %v2377_v6 }
 0xbec   : > { %3184 = vrsqrt.f32 %v2385_v45  ;;  %vm2435_vm14 = vweird.f32 %v2385_v45 }
 0xbef   : > { %v2366_v16 = vpop.xlane.xlu0 %2365 }
 0xbf0   : > { %v2378_v26 = vmul.f32 %v2366_v16, %v3385_v20 }
 0xbf2   : > { %v3185_v1 = vpop.eup %3184  ;;  %v2386_v9 = vadd.f32 1e-05, %v2378_v26 }
 0xbf3   : > { %v2430_v31 = vmul.f32 %v3185_v1, %v2385_v45  ;;  %vm2436_vm13 = vweird.f32 %v3185_v1 }
 0xbf4   : > { %3186 = vrsqrt.f32 %v2386_v9  ;;  %vm2437_vm15 = vmor %vm2435_vm14, %vm2436_vm13  ;;  %vm2445_vm2 = vweird.f32 %v2386_v9 }
 0xbf5   : > { %v2431_v7 = vmul.f32 %v3185_v1, %v2430_v31 }
 0xbf7   : > { %v2432_v22 = vmul.f32 0.5, %v2431_v7 }
 0xbf9   : > { %v2433_v2 = vsub.f32 1.5, %v2432_v22  ;;  %v2369_v0 = vpop.xlane.xlu1 %2368 }
 0xbfa   : > { %v3187_v49 = vpop.eup %3186  ;;  %v2379_v37 = vmul.f32 %v2369_v0, %v3385_v20 }
 0xbfb   : > { %v2434_v38 = vmul.f32 %v3185_v1, %v2433_v2  ;;  %v2440_v8 = vmul.f32 %v3187_v49, %v2386_v9  ;;  %vm2446_vm1 = vweird.f32 %v3187_v49 }
 0xbfc   : > { %v2387_v56 = vadd.f32 1e-05, %v2379_v37  ;;  %vm2447_vm3 = vmor %vm2445_vm2, %vm2446_vm1 }
 0xbfd   : > { %v2441_v33 = vmul.f32 %v3187_v49, %v2440_v8  ;;  %v2438_v3 = vsel %vm2437_vm15, %v3185_v1, %v2434_v38 }
 0xbfe   : > { %3188 = vrsqrt.f32 %v2387_v56  ;;  %v2473_v12 = vmul.f32 %v2438_v3, %v4159_v5  ;;  %vm2455_vm5 = vweird.f32 %v2387_v56 }
 0xbff   : > { %v2442_v40 = vmul.f32 0.5, %v2441_v33 }
 0xc00   : > { %v2484_v23 = vmul.f32 %v4185_v15, %v2473_v12 }
 0xc01   : > { %v2443_v10 = vsub.f32 1.5, %v2442_v40  ;;  %v2372_v62 = vpop.xlane.xlu2 %2371 }
 0xc02   : > { %v2380_v60 = vmul.f32 %v2372_v62, %v3385_v20  ;;  %v2977_v20 = vld [vmem:[%s4326_s13 + $0x10] sm:$0xff]  ;;  %v2495_v21 = vadd.f32 %v4195_v39, %v2484_v23 }
 0xc03   : > { %v2444_v47 = vmul.f32 %v3187_v49, %v2443_v10  ;;  %2713 = vmatpush.bf16.msra.mxu2 %v2977_v20 }
 0xc04   : > { %v3189_v35 = vpop.eup %3188  ;;  %v2388_v13 = vadd.f32 1e-05, %v2380_v60 }
 0xc05   : > { %v2448_v25 = vsel %vm2447_vm3, %v3187_v49, %v2444_v47  ;;  %v2450_v17 = vmul.f32 %v3189_v35, %v2387_v56  ;;  %vm2456_vm4 = vweird.f32 %v3189_v35 }
 0xc06   : > { %v2474_v14 = vmul.f32 %v2448_v25, %v4170_v46  ;;  %3190 = vrsqrt.f32 %v2388_v13  ;;  %v2976_v46 = vld [vmem:[%s4326_s13 + $0x8] sm:$0xff]  ;;  %vm2457_vm6 = vmor %vm2455_vm5, %vm2456_vm4  ;;  %vm2465_vm8 = vweird.f32 %v2388_v13 }
 0xc07   : > { %v2451_v5 = vmul.f32 %v3189_v35, %v2450_v17  ;;  %2714 = vmatpush.bf16.msra.mxu2 %v2976_v46 }
 0xc08   : > { %v2485_v24 = vmul.f32 %v4185_v15, %v2474_v14 }
 0xc09   : > { %v2452_v34 = vmul.f32 0.5, %v2451_v5 }
 0xc0a   : > { %v2496_v36 = vadd.f32 %v4195_v39, %v2485_v24 }
 0xc0b   : > { %v2453_v48 = vsub.f32 1.5, %v2452_v34  ;;  %2715 = vmatpush.bf16.msra.mxu2 %v2975_v55 }
 0xc0c   : > { %v3191_v51 = vpop.eup %3190  ;;  %v2501_v57 = vpack.c.bf16 %v2496_v36, %v2495_v21 }
 0xc0d   : > { %v2454_v30 = vmul.f32 %v3189_v35, %v2453_v48  ;;  %v2460_v54 = vmul.f32 %v3191_v51, %v2388_v13  ;;  %vm2466_vm7 = vweird.f32 %v3191_v51 }
 0xc0e   : > { %2931 = vmatmul.msk.bf16.gmra.mxu1 %vm570_vm0, %v2501_v57  ;;  %vm2467_vm9 = vmor %vm2465_vm8, %vm2466_vm7 }
 0xc0f   : > { %v2461_v19 = vmul.f32 %v3191_v51, %v2460_v54  ;;  %v2458_v59 = vsel %vm2457_vm6, %v3189_v35, %v2454_v30 }
 0xc10   : > { %v2544_v11 = vpop.f32.mrf.mxu1  ;;  %v2475_v1 = vmul.f32 %v2458_v59, %v4177_v58 }
 0xc11   : > { %v2462_v6 = vmul.f32 0.5, %v2461_v19  ;;  %v2545_v45 = vadd.f32 %v4249_v50, %v2544_v11 }
 0xc12   : > { %v2486_v2 = vmul.f32 %v4185_v15, %v2475_v1 }
 0xc13   : > { %v2463_v16 = vsub.f32 1.5, %v2462_v6  ;;  %v2572_v26 = vmul.f32 %v2545_v45, %v2545_v45  ;;  %v2564_v12 = vmul.f32 0.5, %v2545_v45 }
 0xc14   : > { %v2497_v8 = vadd.f32 %v4195_v39, %v2486_v2 }
 0xc15   : > { %v2464_v9 = vmul.f32 %v3191_v51, %v2463_v16  ;;  %v2580_v31 = vmul.f32 %v2572_v26, %v2545_v45 }
 0xc17   : > { %v2468_v43 = vsel %vm2467_vm9, %v3191_v51, %v2464_v9  ;;  %v2588_v7 = vmul.f32 0.044715, %v2580_v31 }
 0xc18   : > { %v2476_v22 = vmul.f32 %v2468_v43, %v4190_v63  ;;  %v2546_v52 = vpop.f32.mrf.mxu1 }
 0xc19   : > { %v2596_v0 = vadd.f32 %v2588_v7, %v2545_v45  ;;  %v2547_v49 = vadd.f32 %v4249_v50, %v2546_v52 }
 0xc1a   : > { %v2487_v37 = vmul.f32 %v4185_v15, %v2476_v22 }
 0xc1b   : > { %v2573_v38 = vmul.f32 %v2547_v49, %v2547_v49  ;;  %v2604_v18 = vmul.f32 0.7978846, %v2596_v0  ;;  %v2565_v15 = vmul.f32 0.5, %v2547_v49 }
 0xc1c   : > { %v2498_v58 = vadd.f32 %v4195_v39, %v2487_v37 }
 0xc1d   : > { %v2581_v56 = vmul.f32 %v2573_v38, %v2547_v49  ;;  %3192 = vtanh.f32 %v2604_v18 }
 0xc1e   : > { %v2502_v33 = vpack.c.bf16 %v2498_v58, %v2497_v8 }
 0xc1f   : > { %v2589_v3 = vmul.f32 0.044715, %v2581_v56 }
 0xc20   : > { %2932 = vmatmul.msk.bf16.gmra.mxu1 %vm570_vm0, %v2502_v33 }
 0xc21   : > { %v2597_v63 = vadd.f32 %v2589_v3, %v2547_v49 }
 0xc23   : > { %v2605_v40 = vmul.f32 0.7978846, %v2597_v63  ;;  %v3193_v4 = vpop.eup %3192 }
 0xc24   : > { %v2620_v10 = vadd.f32 1.0, %v3193_v4 }
 0xc25   : > { %3194 = vtanh.f32 %v2605_v40 }
 0xc26   : > { %v2628_v47 = vmul.f32 %v2620_v10, %v2564_v12 }
 0xc2b   : > { %v3195_v62 = vpop.eup %3194 }
 0xc2c   : > { %v2621_v60 = vadd.f32 1.0, %v3195_v62 }
 0xc2e   : > { %v2629_v44 = vmul.f32 %v2621_v60, %v2565_v15 }
 0xc30   : > { %v2636_v35 = vpack.c.bf16 %v2629_v44, %v2628_v47 }
 0xc32   : > { %2716 = vmatmul.bf16.vlgmr.msra.gmra.mxu2 %v2636_v35 }
 0xc58   : > { %v2549_v39 = vpop.f32.mrf.mxu1 }
 0xc59   : > { %v2550_v13 = vadd.f32 %v4249_v50, %v2549_v39 }
 0xc5b   : > { %v2574_v25 = vmul.f32 %v2550_v13, %v2550_v13  ;;  %v2566_v54 = vmul.f32 0.5, %v2550_v13 }
 0xc5d   : > { %v2582_v17 = vmul.f32 %v2574_v25, %v2550_v13 }
 0xc5f   : > { %v2590_v14 = vmul.f32 0.044715, %v2582_v17 }
 0xc60   : > { %v2551_v23 = vpop.f32.mrf.mxu1 }
 0xc61   : > { %v2552_v5 = vadd.f32 %v4249_v50, %v2551_v23  ;;  %v2598_v20 = vadd.f32 %v2590_v14, %v2550_v13 }
 0xc63   : > { %v2575_v24 = vmul.f32 %v2552_v5, %v2552_v5  ;;  %v2606_v21 = vmul.f32 0.7978846, %v2598_v20  ;;  %v2567_v55 = vmul.f32 0.5, %v2552_v5 }
 0xc65   : > { %v2583_v34 = vmul.f32 %v2575_v24, %v2552_v5  ;;  %3196 = vtanh.f32 %v2606_v21 }
 0xc67   : > { %v2591_v36 = vmul.f32 0.044715, %v2583_v34 }
 0xc69   : > { %v2599_v48 = vadd.f32 %v2591_v36, %v2552_v5 }
 0xc6b   : > { %v2607_v46 = vmul.f32 0.7978846, %v2599_v48  ;;  %v3197_v51 = vpop.eup %3196 }
 0xc6c   : > { %v2622_v57 = vadd.f32 1.0, %v3197_v51 }
 0xc6d   : > { %3198 = vtanh.f32 %v2607_v46 }
 0xc6e   : > { %v2630_v11 = vmul.f32 %v2622_v57, %v2566_v54 }
 0xc73   : > { %v3199_v30 = vpop.eup %3198 }
 0xc74   : > { %v2623_v19 = vadd.f32 1.0, %v3199_v30 }
 0xc76   : > { %v2631_v59 = vmul.f32 %v2623_v19, %v2567_v55 }
 0xc78   : > { %v2637_v6 = vpack.c.bf16 %v2631_v59, %v2630_v11 }
 0xc7a   : > { %2721 = vmatmul.bf16.gmra.mxu2 %v2637_v6 }
 0xc8b   : > { %v2554_v45 = vpop.f32.mrf.mxu1 }
 0xc8c   : > { %v2555_v16 = vadd.f32 %v4249_v50, %v2554_v45 }
 0xc8e   : > { %v2576_v26 = vmul.f32 %v2555_v16, %v2555_v16  ;;  %v2568_v62 = vmul.f32 0.5, %v2555_v16 }
 0xc90   : > { %v2584_v1 = vmul.f32 %v2576_v26, %v2555_v16 }
 0xc92   : > { %v2592_v9 = vmul.f32 0.044715, %v2584_v1 }
 0xc93   : > { %v2556_v31 = vpop.f32.mrf.mxu1 }
 0xc94   : > { %v2557_v43 = vadd.f32 %v4249_v50, %v2556_v31  ;;  %v2600_v7 = vadd.f32 %v2592_v9, %v2555_v16 }
 0xc96   : > { %v2577_v22 = vmul.f32 %v2557_v43, %v2557_v43  ;;  %v2608_v2 = vmul.f32 0.7978846, %v2600_v7  ;;  %v2569_v12 = vmul.f32 0.5, %v2557_v43 }
 0xc98   : > { %v2585_v52 = vmul.f32 %v2577_v22, %v2557_v43  ;;  %3200 = vtanh.f32 %v2608_v2 }
 0xc9a   : > { %v2593_v0 = vmul.f32 0.044715, %v2585_v52 }
 0xc9c   : > { %v2601_v49 = vadd.f32 %v2593_v0, %v2557_v43 }
 0xc9d   : > { %v2559_v37 = vpop.f32.mrf.mxu1 }
 0xc9e   : > { %v2560_v38 = vadd.f32 %v4249_v50, %v2559_v37  ;;  %v2609_v8 = vmul.f32 0.7978846, %v2601_v49  ;;  %v3201_v18 = vpop.eup %3200 }
 0xc9f   : > { %v2624_v63 = vadd.f32 1.0, %v3201_v18 }
 0xca0   : > { %v2578_v58 = vmul.f32 %v2560_v38, %v2560_v38  ;;  %3202 = vtanh.f32 %v2609_v8  ;;  %v2570_v36 = vmul.f32 0.5, %v2560_v38 }
 0xca1   : > { %v2632_v47 = vmul.f32 %v2624_v63, %v2568_v62 }
 0xca2   : > { %v2586_v56 = vmul.f32 %v2578_v58, %v2560_v38 }
 0xca4   : > { %v2594_v33 = vmul.f32 0.044715, %v2586_v56 }
 0xca5   : > { %v2561_v3 = vpop.f32.mrf.mxu1 }
 0xca6   : > { %v3203_v40 = vpop.eup %3202  ;;  %v2562_v4 = vadd.f32 %v4249_v50, %v2561_v3  ;;  %v2602_v10 = vadd.f32 %v2594_v33, %v2560_v38  ;;  %v3029_v50 = vld [vmem:[%s4327_s14] ss:$0 sm:$0xff] }
 0xca7   : > { %v2625_v15 = vadd.f32 1.0, %v3203_v40 }
 0xca8   : > { %v2579_v60 = vmul.f32 %v2562_v4, %v2562_v4  ;;  %v2610_v39 = vmul.f32 0.7978846, %v2602_v10  ;;  %v2571_v48 = vmul.f32 0.5, %v2562_v4 }
 0xca9   : > { %v2633_v44 = vmul.f32 %v2625_v15, %v2569_v12 }
 0xcaa   : > { %v2587_v35 = vmul.f32 %v2579_v60, %v2562_v4  ;;  %3204 = vtanh.f32 %v2610_v39 }
 0xcab   : > { %v2638_v13 = vpack.c.bf16 %v2633_v44, %v2632_v47 }
 0xcac   : > { %v2595_v25 = vmul.f32 0.044715, %v2587_v35 }
 0xcad   : > { %2726 = vmatmul.bf16.gmra.mxu2 %v2638_v13 }
 0xcae   : > { %v2603_v17 = vadd.f32 %v2595_v25, %v2562_v4 }
 0xcb0   : > { %v2611_v14 = vmul.f32 0.7978846, %v2603_v17  ;;  %v3205_v23 = vpop.eup %3204 }
 0xcb1   : > { %v2626_v24 = vadd.f32 1.0, %v3205_v23 }
 0xcb2   : > { %3206 = vtanh.f32 %v2611_v14 }
 0xcb3   : > { %v2634_v51 = vmul.f32 %v2626_v24, %v2570_v36 }
 0xcb5   : > { %v2717_v5 = vpop.f32.mrf.mxu2 }
 0xcb6   : > { %v2718_v20 = vadd.f32 %v3029_v50, %v2717_v5 }
 0xcb8   : > { %v3207_v34 = vpop.eup %3206  ;;  %v2737_v21 = vadd.f32 %v2718_v20, %v4065_v61 }
 0xcb9   : > { %v2627_v46 = vadd.f32 1.0, %v3207_v34 }
 0xcba   : > { %2745 = vst.msk [vmem:[%s4278_s25] sm:$0xff] %vm570_vm0, %v2737_v21 }
 0xcbb   : > { %v2635_v57 = vmul.f32 %v2627_v46, %v2571_v48 }
 0xcbd   : > { %v2719_v30 = vpop.f32.mrf.mxu2  ;;  %v2639_v54 = vpack.c.bf16 %v2635_v57, %v2634_v51 }
 0xcbe   : > { %v2720_v55 = vadd.f32 %v3029_v50, %v2719_v30 }
 0xcbf   : > { %2731 = vmatmul.bf16.gmra.mxu2 %v2639_v54 }
 0xcc0   : > { %v2738_v19 = vadd.f32 %v2720_v55, %v4074_v53 }
 0xcc2   : > { %2746 = vst.msk [vmem:[%s4278_s25 + $0x8] sm:$0xff] %vm570_vm0, %v2738_v19 }
 0xcfd   : > { %v2722_v61 = vpop.f32.mrf.mxu2 }
 0xcfe   : > { %v2723_v11 = vadd.f32 %v3029_v50, %v2722_v61 }
 0xd00   : > { %v2739_v59 = vadd.f32 %v2723_v11, %v4091_v29 }
 0xd02   : > { %2747 = vst.msk [vmem:[%s4278_s25 + $0x10] sm:$0xff] %vm570_vm0, %v2739_v59 }
 0xd05   : > { %v2724_v6 = vpop.f32.mrf.mxu2 }
 0xd06   : > { %v2725_v45 = vadd.f32 %v3029_v50, %v2724_v6 }
 0xd08   : > { %v2740_v16 = vadd.f32 %v2725_v45, %v4098_v42 }
 0xd0a   : > { %2748 = vst.msk [vmem:[%s4278_s25 + $0x18] sm:$0xff] %vm570_vm0, %v2740_v16 }
 0xd30   : > { %v2727_v26 = vpop.f32.mrf.mxu2 }
 0xd31   : > { %v2728_v1 = vadd.f32 %v3029_v50, %v2727_v26 }
 0xd33   : > { %v2741_v53 = vadd.f32 %v2728_v1, %v4111_v28 }
 0xd35   : > { %2749 = vst.msk [vmem:[%s4278_s25 + $0x20] sm:$0xff] %vm570_vm0, %v2741_v53 }
 0xd38   : > { %v2729_v9 = vpop.f32.mrf.mxu2 }
 0xd39   : > { %v2730_v31 = vadd.f32 %v3029_v50, %v2729_v9 }
 0xd3b   : > { %v2742_v29 = vadd.f32 %v2730_v31, %v4122_v32 }
 0xd3d   : > { %2750 = vst.msk [vmem:[%s4278_s25 + $0x28] sm:$0xff] %vm570_vm0, %v2742_v29 }
 0xd42   : > { %v2732_v43 = vpop.f32.mrf.mxu2 }
 0xd43   : > { %v2733_v7 = vadd.f32 %v3029_v50, %v2732_v43 }
 0xd45   : > { %v2743_v22 = vadd.f32 %v2733_v7, %v4129_v41 }
 0xd47   : > { %2751 = vst.msk [vmem:[%s4278_s25 + $0x30] sm:$0xff] %vm570_vm0, %v2743_v22 }
 0xd4a   : > { %v2734_v42 = vpop.f32.mrf.mxu2 }
 0xd4b   : > { %v2735_v52 = vadd.f32 %v3029_v50, %v2734_v42 }
 0xd4d   : > { %v2744_v2 = vadd.f32 %v2735_v52, %v4135_v27 }
 0xd4f   : > { %2752 = vst.msk [vmem:[%s4278_s25 + $0x38] sm:$0xff] %vm570_vm0, %v2744_v2 }
 0xd50 PF: > { %s25_s20 = sadd.s32 1, %s3246_s20   ;;  %s4329_s18 = smov %s3242_s19 }
 0xd51   : > { %p22_p5 = scmp.ge.s32.totalorder %s25_s20, 4   ;;  %s4330_s19 = smov %s4332_s21 }
 0xd53   :  { %24 = sbr.rel (!%p22_p5) target bundleno = 2 (0x2), region = 113 }

</bundles_post_ra>
